<compile_context>
chip_gen: v6e
topology: v6e:2x2x1
jax: 0.10.0
libtpu: 0.0.40
codegen_flags: <defaults>
</compile_context>

<pallas_src>
import numpy as np
import jax
import jax.numpy as jnp
from jax import lax
from jax.experimental import pallas as pl
from jax.experimental.pallas import tpu as pltpu


_CPARAMS = pltpu.CompilerParams(
    dimension_semantics=("parallel",),
    vmem_limit_bytes=32 * 1024 * 1024,
)


# ----------------------------- host-side constants -----------------------------

def _pool_matrix(bn, h, w, time_major):
    """(bn*h*w/4, bn*h*w) bf16 matrix implementing 2x2 avg-pool on the flattened
    (b, y, x) activation.  time_major=True orders output rows as (x/2, y/2, b),
    which hands the CNN features to the LSTM already time-major."""
    hp_n, wp_n = h // 2, w // 2
    p = np.zeros((bn * hp_n * wp_n, bn * h * w), np.float32)
    for b in range(bn):
        for hp in range(hp_n):
            for wp in range(wp_n):
                if time_major:
                    r = (wp * hp_n + hp) * bn + b
                else:
                    r = (b * hp_n + hp) * wp_n + wp
                for dh in range(2):
                    for dw in range(2):
                        p[r, (b * h + 2 * hp + dh) * w + 2 * wp + dw] = 0.25
    return jnp.asarray(p, jnp.bfloat16)


def _const_spec(a):
    nd = a.ndim
    return pl.BlockSpec(a.shape, lambda *args, _nd=nd: (0,) * _nd)


def _batch_tile(n):
    # >= 2 grid steps whenever n > 1 (v7x: 2 TensorCores); cap at 8 so the
    # block-diagonal pool matrices stay tiny.
    for cand in (8, 4, 2, 1):
        if cand < n and n % cand == 0:
            return cand
    return n


# ----------------------------- kernel -----------------------------

def _lstm_cell(gates, c, h):
    # PyTorch gate order: i, f, g, o.  Elementwise math in f32 (v5e-safe).
    i = jax.nn.sigmoid(gates[:, 0 * h:1 * h])
    f = jax.nn.sigmoid(gates[:, 1 * h:2 * h])
    g = jnp.tanh(gates[:, 2 * h:3 * h])
    o = jax.nn.sigmoid(gates[:, 3 * h:4 * h])
    c_new = f * c + i * g
    return o * jnp.tanh(c_new), c_new


def make_fused_kernel(bn, conv_dims, t_len, hf, h_lstm):
    """Whole CNN_LSTM forward for one batch tile of `bn` samples."""
    h4 = 4 * h_lstm

    def conv_block(act, dims, wc_ref, bc_ref, pool_ref):
        # act: (bn*H*W, Cin) bf16, rows ordered (b, y, x).
        # Conv k=2, s=1, p=1 -> BN(folded) -> ReLU -> AvgPool(2,2) (floor mode
        # never touches conv row/col index H/W, so only the top/left pad exists).
        hh, ww, ci, _co = dims
        m = act.shape[0]
        row = lax.broadcasted_iota(jnp.int32, (m, ci), 0)
        w_ok = (row % ww) != 0                 # a left neighbour exists (x >= 1)
        h_ok = (row % (hh * ww)) >= ww         # a row above exists    (y >= 1)
        zeros = jnp.zeros_like(act)

        def shifted(k):                        # u[i] = act[i - k], zero-fill head
            return jnp.concatenate(
                [jnp.zeros((k, ci), act.dtype), act[:m - k]], axis=0)

        a_w = jnp.where(w_ok, shifted(1), zeros)                       # (y, x-1)
        a_h = jnp.where(h_ok, shifted(ww), zeros)                      # (y-1, x)
        a_hw = jnp.where(jnp.logical_and(w_ok, h_ok),
                         shifted(ww + 1), zeros)                       # (y-1, x-1)
        # tap order (kh, kw) = (0,0),(0,1),(1,0),(1,1) matches the host-side
        # weight reshape (2, 2, Cin, Cout) -> (4*Cin, Cout).
        op = jnp.concatenate([a_hw, a_h, a_w, act], axis=-1)           # (M, 4*Cin)
        conv = jnp.dot(op, wc_ref[...], preferred_element_type=jnp.float32)
        conv = jnp.maximum(conv + bc_ref[...], 0.0)
        # 2x2 avg-pool as one bf16 matmul with a constant matrix.
        return jnp.dot(pool_ref[...], conv.astype(jnp.bfloat16),
                       preferred_element_type=jnp.float32)             # (M/4, Cout)

    def lstm_layer(x_seq, wih_ref, whh_ref, b_ref, last_only):
        # Input projection for BOTH directions hoisted into ONE matmul.
        xs = jnp.concatenate(x_seq, axis=0)                            # (T*bn, D) bf16
        xp = (jnp.dot(xs, wih_ref[...], preferred_element_type=jnp.float32)
              + b_ref[...])                                            # (T*bn, 8H) f32
        whh = whh_ref[...]                                             # (2, H, 4H) bf16
        zero = jnp.zeros((bn, h_lstm), jnp.float32)

        h_f, c_f = zero, zero
        outs_f = []
        for t in range(t_len):
            g = xp[t * bn:(t + 1) * bn, :h4] + jnp.dot(
                h_f.astype(jnp.bfloat16), whh[0], preferred_element_type=jnp.float32)
            h_f, c_f = _lstm_cell(g, c_f, h_lstm)
            outs_f.append(h_f)

        if last_only:
            # lstm_out[:, -1, H:] is the reverse direction after its FIRST step
            # (input t = T-1, zero initial state), so one cell step is exact.
            h_r, _ = _lstm_cell(xp[(t_len - 1) * bn:, h4:], zero, h_lstm)
            return h_f, h_r

        h_r, c_r = zero, zero
        outs_r = [None] * t_len
        for t in range(t_len - 1, -1, -1):
            g = xp[t * bn:(t + 1) * bn, h4:] + jnp.dot(
                h_r.astype(jnp.bfloat16), whh[1], preferred_element_type=jnp.float32)
            h_r, c_r = _lstm_cell(g, c_r, h_lstm)
            outs_r[t] = h_r
        return [jnp.concatenate([outs_f[t], outs_r[t]], axis=-1).astype(jnp.bfloat16)
                for t in range(t_len)]

    def kernel(x_ref,
               wc1, bc1, p1, wc2, bc2, p2, wc3, bc3, p3,
               wih1, whh1, bl1, wih2, whh2, bl2,
               w1, bb1, w2, bb2, o_ref):
        # ---- CNN: three fused conv blocks, activations never leave VMEM ----
        h0, w0, c0, _ = conv_dims[0]
        act = x_ref[...].reshape(bn * h0 * w0, c0)                     # bf16 (b, y, x)
        for dims, refs in zip(conv_dims,
                              ((wc1, bc1, p1), (wc2, bc2, p2), (wc3, bc3, p3))):
            act = conv_block(act, dims, *refs).astype(jnp.bfloat16)

        # act rows are now ordered (t=w, h, b); lane-concat the h chunks to get
        # the reference's permute(0,3,2,1).reshape(N, W, H*C) feature layout.
        seq = []
        for t in range(t_len):
            pieces = [act[(t * hf + h) * bn:(t * hf + h + 1) * bn] for h in range(hf)]
            seq.append(jnp.concatenate(pieces, axis=-1))               # (bn, hf*C) bf16

        # ---- bidirectional LSTM (layer 1 full sequence, layer 2 last step) ----
        seq = lstm_layer(seq, wih1, whh1, bl1, last_only=False)
        h_f, h_r = lstm_layer(seq, wih2, whh2, bl2, last_only=True)

        # ---- classifier (BatchNorm1d folded into w1); the [h_f | h_r] concat is
        # avoided by splitting w1's rows between the directions ----
        w1v = w1[...]
        hid = (jnp.dot(h_f.astype(jnp.bfloat16), w1v[:h_lstm],
                       preferred_element_type=jnp.float32)
               + jnp.dot(h_r.astype(jnp.bfloat16), w1v[h_lstm:],
                         preferred_element_type=jnp.float32)
               + bb1[...])
        hid = jnp.maximum(hid, 0.0)
        o_ref[0] = (jnp.dot(hid.astype(jnp.bfloat16), w2[...],
                            preferred_element_type=jnp.float32) + bb2[...])

    return kernel


# ----------------------------- wrapper -----------------------------

def cnn_lstm_forward(x_nchw, params):
    assert len(params["conv"]) == 3 and len(params["lstm"]) == 2
    n, cin, hin, win = x_nchw.shape
    bn = _batch_tile(n)
    n_tiles = n // bn

    conv_dims = []
    h, w, c = hin, win, cin
    for (wk, _bk) in params["conv"]:
        cout = wk.shape[-1]
        assert wk.shape[0] == 4 * c
        # TODO(synk): odd spatial sizes would need an extra bottom/right pad row;
        # this module only ever produces even sizes (16 -> 8 -> 4 -> 2).
        assert h % 2 == 0 and w % 2 == 0
        conv_dims.append((h, w, c, cout))
        h, w, c = h // 2, w // 2, cout
    hf, t_len, cf = h, w, c
    h_lstm = params["lstm"][0]["whh"].shape[1]
    nc = params["cls"][2].shape[-1]
    assert hf * cf == params["lstm"][0]["wih"].shape[0]

    # NCHW -> NHWC -> (N, H*W, C): channels on lanes, spatial flattened; bf16.
    x = jnp.transpose(x_nchw, (0, 2, 3, 1)).reshape(n, hin * win, cin)
    x = x.astype(jnp.bfloat16)

    pools = [_pool_matrix(bn, d[0], d[1], time_major=(i == len(conv_dims) - 1))
             for i, d in enumerate(conv_dims)]

    operands = [x]
    in_specs = [pl.BlockSpec((bn, hin * win, cin), lambda i: (i, 0, 0))]
    for (wk, bk), pk in zip(params["conv"], pools):
        for a in (wk, bk, pk):
            operands.append(a)
            in_specs.append(_const_spec(a))
    for lp in params["lstm"]:
        for name in ("wih", "whh", "b"):
            operands.append(lp[name])
            in_specs.append(_const_spec(lp[name]))
    for a in params["cls"]:
        operands.append(a)
        in_specs.append(_const_spec(a))

    out = pl.pallas_call(
        make_fused_kernel(bn, tuple(conv_dims), t_len, hf, h_lstm),
        out_shape=jax.ShapeDtypeStruct((n_tiles, bn, nc), jnp.float32),
        grid=(n_tiles,),
        in_specs=in_specs,
        out_specs=pl.BlockSpec((1, bn, nc), lambda i: (i, 0, 0)),
        compiler_params=_CPARAMS,
    )(*operands)
    return out.reshape(n, nc)


# ----------------------------- parameters -----------------------------

def init_params(key, input_dim, lstm_hidden, num_classes):
    cin, hin, win = input_dim
    eps = 1e-5
    keys = iter(jax.random.split(key, 64))

    def uniform(shape, bound):
        return jax.random.uniform(next(keys), shape, jnp.float32, -bound, bound)

    def bn_params(c):
        gamma = 1.0 + 0.1 * jax.random.normal(next(keys), (c,), jnp.float32)
        beta = 0.1 * jax.random.normal(next(keys), (c,), jnp.float32)
        mean = 0.1 * jax.random.normal(next(keys), (c,), jnp.float32)
        var = jax.random.uniform(next(keys), (c,), jnp.float32, 0.5, 1.5)
        return gamma, beta, mean, var

    params = {}

    # conv blocks: conv bias + eval-mode BatchNorm2d folded into (w_fold, b_fold);
    # weight layout (kh, kw, cin, cout) reshaped to (4*cin, cout).
    chans = [cin, 16, 32, 64]
    conv = []
    for l in range(3):
        ci, co = chans[l], chans[l + 1]
        bound = 1.0 / np.sqrt(ci * 4)
        w = uniform((2, 2, ci, co), bound)
        bias = uniform((co,), bound)
        gamma, beta, mean, var = bn_params(co)
        s = gamma / jnp.sqrt(var + eps)
        w_fold = (w * s).reshape(4 * ci, co).astype(jnp.bfloat16)
        b_fold = (bias * s + beta - mean * s).reshape(1, co)
        conv.append((w_fold, b_fold))
    params["conv"] = conv

    # CNN output spatial size: conv(k=2, p=1) -> +1, floor-pool -> //2, x3
    hf, wf = hin, win
    for _ in range(3):
        hf, wf = (hf + 1) // 2, (wf + 1) // 2
    lstm_in = hf * 64

    # LSTM: 2 layers, bidirectional; per direction wih (din, 4H), gates i,f,g,o
    # on lanes; both directions' wih / biases concatenated to (din, 8H).
    hh = lstm_hidden
    k = 1.0 / np.sqrt(hh)
    lstm = []
    for layer in range(2):
        din = lstm_in if layer == 0 else 2 * hh
        wih_d, whh_d, b_d = [], [], []
        for _direction in range(2):
            wih_d.append(uniform((din, 4 * hh), k))
            whh_d.append(uniform((hh, 4 * hh), k))
            b_d.append(uniform((1, 4 * hh), k) + uniform((1, 4 * hh), k))  # bih + bhh
        lstm.append({
            "wih": jnp.concatenate(wih_d, axis=-1).astype(jnp.bfloat16),   # (din, 8H)
            "whh": jnp.stack(whh_d, axis=0).astype(jnp.bfloat16),          # (2, H, 4H)
            "b": jnp.concatenate(b_d, axis=-1),                            # (1, 8H) f32
        })
    params["lstm"] = lstm

    # classifier: eval-mode BatchNorm1d(2H) folded into the first Linear.
    d = 2 * hh
    gamma, beta, mean, var = bn_params(d)
    s = gamma / jnp.sqrt(var + eps)
    t = beta - mean * s
    w1 = uniform((d, 100), 1.0 / np.sqrt(d))
    b1 = uniform((100,), 1.0 / np.sqrt(d))
    w1_fold = (w1 * s[:, None]).astype(jnp.bfloat16)
    b1_fold = (t @ w1 + b1).reshape(1, 100)
    w2 = uniform((100, num_classes), 0.1).astype(jnp.bfloat16)
    b2 = uniform((num_classes,), 0.1).reshape(1, num_classes)
    params["cls"] = (w1_fold, b1_fold, w2, b2)
    return params


# ----------------------------- main -----------------------------

if __name__ == "__main__":
    key = jax.random.PRNGKey(0)
    k_x, k_p = jax.random.split(key)

    input_dim = (4, 16, 16)        # (channels, height, width)
    lstm_hidden = 32               # 4H = 128 -> lane-aligned fused gates
    num_classes = 1
    batch = 2

    x = jax.random.normal(k_x, (batch,) + input_dim, jnp.float32)
    params = init_params(k_p, input_dim, lstm_hidden, num_classes)

    fwd = jax.jit(cnn_lstm_forward)
    out = jax.block_until_ready(fwd(x, params))
    assert out.shape == (batch, num_classes), out.shape
    assert bool(jnp.all(jnp.isfinite(out)))
    print("KERNEL_OK")
</pallas_src>

<mosaic_0001>
module attributes {stable_mosaic.version = 11 : i64} {
  func.func @kernel(%arg0: i32, %arg1: memref<1x256x4xbf16, #tpu.memory_space<vmem>>, %arg2: memref<16x16xbf16, #tpu.memory_space<vmem>>, %arg3: memref<1x16xf32, #tpu.memory_space<vmem>>, %arg4: memref<64x256xbf16, #tpu.memory_space<vmem>>, %arg5: memref<64x32xbf16, #tpu.memory_space<vmem>>, %arg6: memref<1x32xf32, #tpu.memory_space<vmem>>, %arg7: memref<16x64xbf16, #tpu.memory_space<vmem>>, %arg8: memref<128x64xbf16, #tpu.memory_space<vmem>>, %arg9: memref<1x64xf32, #tpu.memory_space<vmem>>, %arg10: memref<4x16xbf16, #tpu.memory_space<vmem>>, %arg11: memref<128x256xbf16, #tpu.memory_space<vmem>>, %arg12: memref<2x32x128xbf16, #tpu.memory_space<vmem>>, %arg13: memref<1x256xf32, #tpu.memory_space<vmem>>, %arg14: memref<64x256xbf16, #tpu.memory_space<vmem>>, %arg15: memref<2x32x128xbf16, #tpu.memory_space<vmem>>, %arg16: memref<1x256xf32, #tpu.memory_space<vmem>>, %arg17: memref<64x100xbf16, #tpu.memory_space<vmem>>, %arg18: memref<1x100xf32, #tpu.memory_space<vmem>>, %arg19: memref<100x1xbf16, #tpu.memory_space<vmem>>, %arg20: memref<1x1xf32, #tpu.memory_space<vmem>>, %arg21: memref<1x1x1xf32, #tpu.memory_space<vmem>>) attributes {dimension_semantics = [#tpu.dimension_semantics<parallel>], iteration_bounds = array<i64: 2>, scalar_prefetch = 0 : i64, scratch_operands = 0 : i64, tpu.core_type = #tpu.core_type<tc>, window_params = [{transform_indices = @transform_0, window_bounds = array<i64: 1, 256, 4>}, {pipeline_mode = #tpu.pipeline_mode<synchronous>, transform_indices = @transform_1, window_bounds = array<i64: 16, 16>}, {pipeline_mode = #tpu.pipeline_mode<synchronous>, transform_indices = @transform_2, window_bounds = array<i64: 1, 16>}, {pipeline_mode = #tpu.pipeline_mode<synchronous>, transform_indices = @transform_3, window_bounds = array<i64: 64, 256>}, {pipeline_mode = #tpu.pipeline_mode<synchronous>, transform_indices = @transform_4, window_bounds = array<i64: 64, 32>}, {pipeline_mode = #tpu.pipeline_mode<synchronous>, transform_indices = @transform_5, window_bounds = array<i64: 1, 32>}, {pipeline_mode = #tpu.pipeline_mode<synchronous>, transform_indices = @transform_6, window_bounds = array<i64: 16, 64>}, {pipeline_mode = #tpu.pipeline_mode<synchronous>, transform_indices = @transform_7, window_bounds = array<i64: 128, 64>}, {pipeline_mode = #tpu.pipeline_mode<synchronous>, transform_indices = @transform_8, window_bounds = array<i64: 1, 64>}, {pipeline_mode = #tpu.pipeline_mode<synchronous>, transform_indices = @transform_9, window_bounds = array<i64: 4, 16>}, {pipeline_mode = #tpu.pipeline_mode<synchronous>, transform_indices = @transform_10, window_bounds = array<i64: 128, 256>}, {pipeline_mode = #tpu.pipeline_mode<synchronous>, transform_indices = @transform_11, window_bounds = array<i64: 2, 32, 128>}, {pipeline_mode = #tpu.pipeline_mode<synchronous>, transform_indices = @transform_12, window_bounds = array<i64: 1, 256>}, {pipeline_mode = #tpu.pipeline_mode<synchronous>, transform_indices = @transform_13, window_bounds = array<i64: 64, 256>}, {pipeline_mode = #tpu.pipeline_mode<synchronous>, transform_indices = @transform_14, window_bounds = array<i64: 2, 32, 128>}, {pipeline_mode = #tpu.pipeline_mode<synchronous>, transform_indices = @transform_15, window_bounds = array<i64: 1, 256>}, {pipeline_mode = #tpu.pipeline_mode<synchronous>, transform_indices = @transform_16, window_bounds = array<i64: 64, 100>}, {pipeline_mode = #tpu.pipeline_mode<synchronous>, transform_indices = @transform_17, window_bounds = array<i64: 1, 100>}, {pipeline_mode = #tpu.pipeline_mode<synchronous>, transform_indices = @transform_18, window_bounds = array<i64: 100, 1>}, {pipeline_mode = #tpu.pipeline_mode<synchronous>, transform_indices = @transform_19, window_bounds = array<i64: 1, 1>}, {transform_indices = @transform_20, window_bounds = array<i64: 1, 1, 1>}]} {
    %c0 = arith.constant 0 : index
    %c0_0 = arith.constant 0 : index
    %c0_1 = arith.constant 0 : index
    %0 = vector.load %arg1[%c0, %c0_0, %c0_1] : memref<1x256x4xbf16, #tpu.memory_space<vmem>>, vector<1x256x4xbf16>
    %1 = vector.shape_cast %0 : vector<1x256x4xbf16> to vector<256x4xbf16>
    %2 = tpu.iota {dimensions = array<i32: 0>} : vector<256x4xi32>
    %c16_i32 = arith.constant 16 : i32
    %c0_i32 = arith.constant 0 : i32
    %3 = arith.cmpi eq, %c16_i32, %c0_i32 : i32
    %c1_i32 = arith.constant 1 : i32
    %4 = arith.select %3, %c1_i32, %c16_i32 : i32
    %5 = vector.broadcast %4 : i32 to vector<256x4xi32>
    %6 = arith.remsi %2, %5 : vector<256x4xi32>
    %c0_i32_2 = arith.constant 0 : i32
    %7 = vector.broadcast %c0_i32_2 : i32 to vector<256x4xi32>
    %8 = arith.cmpi ne, %6, %7 : vector<256x4xi32>
    %c0_i32_3 = arith.constant 0 : i32
    %9 = vector.broadcast %c0_i32_3 : i32 to vector<256x4xi32>
    %10 = arith.cmpi slt, %6, %9 : vector<256x4xi32>
    %c0_i32_4 = arith.constant 0 : i32
    %11 = arith.cmpi slt, %4, %c0_i32_4 : i32
    %12 = vector.broadcast %11 : i1 to vector<256x4xi1>
    %13 = vector.broadcast %12 : vector<256x4xi1> to vector<256x4xi1>
    %14 = arith.xori %10, %13 : vector<256x4xi1>
    %15 = arith.andi %14, %8 : vector<256x4xi1>
    %16 = vector.broadcast %4 : i32 to vector<256x4xi32>
    %17 = arith.addi %6, %16 : vector<256x4xi32>
    %18 = arith.select %15, %17, %6 : vector<256x4xi1>, vector<256x4xi32>
    %c0_i32_5 = arith.constant 0 : i32
    %19 = vector.broadcast %c0_i32_5 : i32 to vector<256x4xi32>
    %20 = arith.cmpi ne, %18, %19 : vector<256x4xi32>
    %c256_i32 = arith.constant 256 : i32
    %c0_i32_6 = arith.constant 0 : i32
    %21 = arith.cmpi eq, %c256_i32, %c0_i32_6 : i32
    %c1_i32_7 = arith.constant 1 : i32
    %22 = arith.select %21, %c1_i32_7, %c256_i32 : i32
    %23 = vector.broadcast %22 : i32 to vector<256x4xi32>
    %24 = arith.remsi %2, %23 : vector<256x4xi32>
    %c0_i32_8 = arith.constant 0 : i32
    %25 = vector.broadcast %c0_i32_8 : i32 to vector<256x4xi32>
    %26 = arith.cmpi ne, %24, %25 : vector<256x4xi32>
    %c0_i32_9 = arith.constant 0 : i32
    %27 = vector.broadcast %c0_i32_9 : i32 to vector<256x4xi32>
    %28 = arith.cmpi slt, %24, %27 : vector<256x4xi32>
    %c0_i32_10 = arith.constant 0 : i32
    %29 = arith.cmpi slt, %22, %c0_i32_10 : i32
    %30 = vector.broadcast %29 : i1 to vector<256x4xi1>
    %31 = vector.broadcast %30 : vector<256x4xi1> to vector<256x4xi1>
    %32 = arith.xori %28, %31 : vector<256x4xi1>
    %33 = arith.andi %32, %26 : vector<256x4xi1>
    %34 = vector.broadcast %22 : i32 to vector<256x4xi32>
    %35 = arith.addi %24, %34 : vector<256x4xi32>
    %36 = arith.select %33, %35, %24 : vector<256x4xi1>, vector<256x4xi32>
    %c16_i32_11 = arith.constant 16 : i32
    %37 = vector.broadcast %c16_i32_11 : i32 to vector<256x4xi32>
    %38 = arith.cmpi sge, %36, %37 : vector<256x4xi32>
    %cst = arith.constant 0.000000e+00 : bf16
    %39 = vector.broadcast %cst : bf16 to vector<256x4xbf16>
    %cst_12 = arith.constant 0.000000e+00 : bf16
    %40 = vector.broadcast %cst_12 : bf16 to vector<1x4xbf16>
    %41 = vector.extract_strided_slice %1 {offsets = [0, 0], sizes = [255, 4], strides = [1, 1]} : vector<256x4xbf16> to vector<255x4xbf16>
    %42 = tpu.concatenate %40, %41 in 0 : vector<1x4xbf16>, vector<255x4xbf16> -> vector<256x4xbf16>
    %43 = arith.select %20, %42, %39 : vector<256x4xi1>, vector<256x4xbf16>
    %cst_13 = arith.constant 0.000000e+00 : bf16
    %44 = vector.broadcast %cst_13 : bf16 to vector<16x4xbf16>
    %45 = vector.extract_strided_slice %1 {offsets = [0, 0], sizes = [240, 4], strides = [1, 1]} : vector<256x4xbf16> to vector<240x4xbf16>
    %46 = tpu.concatenate %44, %45 in 0 : vector<16x4xbf16>, vector<240x4xbf16> -> vector<256x4xbf16>
    %47 = arith.select %38, %46, %39 : vector<256x4xi1>, vector<256x4xbf16>
    %48 = arith.andi %20, %38 : vector<256x4xi1>
    %cst_14 = arith.constant 0.000000e+00 : bf16
    %49 = vector.broadcast %cst_14 : bf16 to vector<17x4xbf16>
    %50 = vector.extract_strided_slice %1 {offsets = [0, 0], sizes = [239, 4], strides = [1, 1]} : vector<256x4xbf16> to vector<239x4xbf16>
    %51 = tpu.concatenate %49, %50 in 0 : vector<17x4xbf16>, vector<239x4xbf16> -> vector<256x4xbf16>
    %52 = arith.select %48, %51, %39 : vector<256x4xi1>, vector<256x4xbf16>
    %53 = tpu.concatenate %52, %47, %43, %1 in 1 : vector<256x4xbf16>, vector<256x4xbf16>, vector<256x4xbf16>, vector<256x4xbf16> -> vector<256x16xbf16>
    %c0_15 = arith.constant 0 : index
    %c0_16 = arith.constant 0 : index
    %54 = vector.load %arg2[%c0_15, %c0_16] : memref<16x16xbf16, #tpu.memory_space<vmem>>, vector<16x16xbf16>
    %cst_17 = arith.constant dense<0.000000e+00> : vector<256x16xf32>
    %55 = tpu.matmul %53, %54, %cst_17 {dimension_numbers = #tpu.dot_dimension_numbers<[1], [0], [0], [1], [0, 0, 1, 1], [], []>} : vector<256x16xbf16>, vector<16x16xbf16>, vector<256x16xf32> -> vector<256x16xf32>
    %c0_18 = arith.constant 0 : index
    %c0_19 = arith.constant 0 : index
    %56 = vector.load %arg3[%c0_18, %c0_19] : memref<1x16xf32, #tpu.memory_space<vmem>>, vector<1x16xf32>
    %57 = vector.broadcast %56 : vector<1x16xf32> to vector<256x16xf32>
    %58 = arith.addf %55, %57 : vector<256x16xf32>
    %cst_20 = arith.constant 0.000000e+00 : f32
    %59 = vector.broadcast %cst_20 : f32 to vector<256x16xf32>
    %60 = arith.maximumf %58, %59 : vector<256x16xf32>
    %c0_21 = arith.constant 0 : index
    %c0_22 = arith.constant 0 : index
    %61 = vector.load %arg4[%c0_21, %c0_22] : memref<64x256xbf16, #tpu.memory_space<vmem>>, vector<64x256xbf16>
    %62 = arith.truncf %60 : vector<256x16xf32> to vector<256x16xbf16>
    %cst_23 = arith.constant dense<0.000000e+00> : vector<64x16xf32>
    %63 = tpu.matmul %61, %62, %cst_23 {dimension_numbers = #tpu.dot_dimension_numbers<[1], [0], [0], [1], [0, 0, 1, 1], [], []>} : vector<64x256xbf16>, vector<256x16xbf16>, vector<64x16xf32> -> vector<64x16xf32>
    %64 = arith.truncf %63 : vector<64x16xf32> to vector<64x16xbf16>
    %65 = tpu.iota {dimensions = array<i32: 0>} : vector<64x16xi32>
    %c8_i32 = arith.constant 8 : i32
    %c0_i32_24 = arith.constant 0 : i32
    %66 = arith.cmpi eq, %c8_i32, %c0_i32_24 : i32
    %c1_i32_25 = arith.constant 1 : i32
    %67 = arith.select %66, %c1_i32_25, %c8_i32 : i32
    %68 = vector.broadcast %67 : i32 to vector<64x16xi32>
    %69 = arith.remsi %65, %68 : vector<64x16xi32>
    %c0_i32_26 = arith.constant 0 : i32
    %70 = vector.broadcast %c0_i32_26 : i32 to vector<64x16xi32>
    %71 = arith.cmpi ne, %69, %70 : vector<64x16xi32>
    %c0_i32_27 = arith.constant 0 : i32
    %72 = vector.broadcast %c0_i32_27 : i32 to vector<64x16xi32>
    %73 = arith.cmpi slt, %69, %72 : vector<64x16xi32>
    %c0_i32_28 = arith.constant 0 : i32
    %74 = arith.cmpi slt, %67, %c0_i32_28 : i32
    %75 = vector.broadcast %74 : i1 to vector<64x16xi1>
    %76 = vector.broadcast %75 : vector<64x16xi1> to vector<64x16xi1>
    %77 = arith.xori %73, %76 : vector<64x16xi1>
    %78 = arith.andi %77, %71 : vector<64x16xi1>
    %79 = vector.broadcast %67 : i32 to vector<64x16xi32>
    %80 = arith.addi %69, %79 : vector<64x16xi32>
    %81 = arith.select %78, %80, %69 : vector<64x16xi1>, vector<64x16xi32>
    %c0_i32_29 = arith.constant 0 : i32
    %82 = vector.broadcast %c0_i32_29 : i32 to vector<64x16xi32>
    %83 = arith.cmpi ne, %81, %82 : vector<64x16xi32>
    %c64_i32 = arith.constant 64 : i32
    %c0_i32_30 = arith.constant 0 : i32
    %84 = arith.cmpi eq, %c64_i32, %c0_i32_30 : i32
    %c1_i32_31 = arith.constant 1 : i32
    %85 = arith.select %84, %c1_i32_31, %c64_i32 : i32
    %86 = vector.broadcast %85 : i32 to vector<64x16xi32>
    %87 = arith.remsi %65, %86 : vector<64x16xi32>
    %c0_i32_32 = arith.constant 0 : i32
    %88 = vector.broadcast %c0_i32_32 : i32 to vector<64x16xi32>
    %89 = arith.cmpi ne, %87, %88 : vector<64x16xi32>
    %c0_i32_33 = arith.constant 0 : i32
    %90 = vector.broadcast %c0_i32_33 : i32 to vector<64x16xi32>
    %91 = arith.cmpi slt, %87, %90 : vector<64x16xi32>
    %c0_i32_34 = arith.constant 0 : i32
    %92 = arith.cmpi slt, %85, %c0_i32_34 : i32
    %93 = vector.broadcast %92 : i1 to vector<64x16xi1>
    %94 = vector.broadcast %93 : vector<64x16xi1> to vector<64x16xi1>
    %95 = arith.xori %91, %94 : vector<64x16xi1>
    %96 = arith.andi %95, %89 : vector<64x16xi1>
    %97 = vector.broadcast %85 : i32 to vector<64x16xi32>
    %98 = arith.addi %87, %97 : vector<64x16xi32>
    %99 = arith.select %96, %98, %87 : vector<64x16xi1>, vector<64x16xi32>
    %c8_i32_35 = arith.constant 8 : i32
    %100 = vector.broadcast %c8_i32_35 : i32 to vector<64x16xi32>
    %101 = arith.cmpi sge, %99, %100 : vector<64x16xi32>
    %cst_36 = arith.constant 0.000000e+00 : bf16
    %102 = vector.broadcast %cst_36 : bf16 to vector<64x16xbf16>
    %cst_37 = arith.constant 0.000000e+00 : bf16
    %103 = vector.broadcast %cst_37 : bf16 to vector<1x16xbf16>
    %104 = vector.extract_strided_slice %64 {offsets = [0, 0], sizes = [63, 16], strides = [1, 1]} : vector<64x16xbf16> to vector<63x16xbf16>
    %105 = tpu.concatenate %103, %104 in 0 : vector<1x16xbf16>, vector<63x16xbf16> -> vector<64x16xbf16>
    %106 = arith.select %83, %105, %102 : vector<64x16xi1>, vector<64x16xbf16>
    %cst_38 = arith.constant 0.000000e+00 : bf16
    %107 = vector.broadcast %cst_38 : bf16 to vector<8x16xbf16>
    %108 = vector.extract_strided_slice %64 {offsets = [0, 0], sizes = [56, 16], strides = [1, 1]} : vector<64x16xbf16> to vector<56x16xbf16>
    %109 = tpu.concatenate %107, %108 in 0 : vector<8x16xbf16>, vector<56x16xbf16> -> vector<64x16xbf16>
    %110 = arith.select %101, %109, %102 : vector<64x16xi1>, vector<64x16xbf16>
    %111 = arith.andi %83, %101 : vector<64x16xi1>
    %cst_39 = arith.constant 0.000000e+00 : bf16
    %112 = vector.broadcast %cst_39 : bf16 to vector<9x16xbf16>
    %113 = vector.extract_strided_slice %64 {offsets = [0, 0], sizes = [55, 16], strides = [1, 1]} : vector<64x16xbf16> to vector<55x16xbf16>
    %114 = tpu.concatenate %112, %113 in 0 : vector<9x16xbf16>, vector<55x16xbf16> -> vector<64x16xbf16>
    %115 = arith.select %111, %114, %102 : vector<64x16xi1>, vector<64x16xbf16>
    %116 = tpu.concatenate %115, %110, %106, %64 in 1 : vector<64x16xbf16>, vector<64x16xbf16>, vector<64x16xbf16>, vector<64x16xbf16> -> vector<64x64xbf16>
    %c0_40 = arith.constant 0 : index
    %c0_41 = arith.constant 0 : index
    %117 = vector.load %arg5[%c0_40, %c0_41] : memref<64x32xbf16, #tpu.memory_space<vmem>>, vector<64x32xbf16>
    %cst_42 = arith.constant dense<0.000000e+00> : vector<64x32xf32>
    %118 = tpu.matmul %116, %117, %cst_42 {dimension_numbers = #tpu.dot_dimension_numbers<[1], [0], [0], [1], [0, 0, 1, 1], [], []>} : vector<64x64xbf16>, vector<64x32xbf16>, vector<64x32xf32> -> vector<64x32xf32>
    %c0_43 = arith.constant 0 : index
    %c0_44 = arith.constant 0 : index
    %119 = vector.load %arg6[%c0_43, %c0_44] : memref<1x32xf32, #tpu.memory_space<vmem>>, vector<1x32xf32>
    %120 = vector.broadcast %119 : vector<1x32xf32> to vector<64x32xf32>
    %121 = arith.addf %118, %120 : vector<64x32xf32>
    %cst_45 = arith.constant 0.000000e+00 : f32
    %122 = vector.broadcast %cst_45 : f32 to vector<64x32xf32>
    %123 = arith.maximumf %121, %122 : vector<64x32xf32>
    %c0_46 = arith.constant 0 : index
    %c0_47 = arith.constant 0 : index
    %124 = vector.load %arg7[%c0_46, %c0_47] : memref<16x64xbf16, #tpu.memory_space<vmem>>, vector<16x64xbf16>
    %125 = arith.truncf %123 : vector<64x32xf32> to vector<64x32xbf16>
    %cst_48 = arith.constant dense<0.000000e+00> : vector<16x32xf32>
    %126 = tpu.matmul %124, %125, %cst_48 {dimension_numbers = #tpu.dot_dimension_numbers<[1], [0], [0], [1], [0, 0, 1, 1], [], []>} : vector<16x64xbf16>, vector<64x32xbf16>, vector<16x32xf32> -> vector<16x32xf32>
    %127 = arith.truncf %126 : vector<16x32xf32> to vector<16x32xbf16>
    %128 = tpu.iota {dimensions = array<i32: 0>} : vector<16x32xi32>
    %c4_i32 = arith.constant 4 : i32
    %c0_i32_49 = arith.constant 0 : i32
    %129 = arith.cmpi eq, %c4_i32, %c0_i32_49 : i32
    %c1_i32_50 = arith.constant 1 : i32
    %130 = arith.select %129, %c1_i32_50, %c4_i32 : i32
    %131 = vector.broadcast %130 : i32 to vector<16x32xi32>
    %132 = arith.remsi %128, %131 : vector<16x32xi32>
    %c0_i32_51 = arith.constant 0 : i32
    %133 = vector.broadcast %c0_i32_51 : i32 to vector<16x32xi32>
    %134 = arith.cmpi ne, %132, %133 : vector<16x32xi32>
    %c0_i32_52 = arith.constant 0 : i32
    %135 = vector.broadcast %c0_i32_52 : i32 to vector<16x32xi32>
    %136 = arith.cmpi slt, %132, %135 : vector<16x32xi32>
    %c0_i32_53 = arith.constant 0 : i32
    %137 = arith.cmpi slt, %130, %c0_i32_53 : i32
    %138 = vector.broadcast %137 : i1 to vector<16x32xi1>
    %139 = vector.broadcast %138 : vector<16x32xi1> to vector<16x32xi1>
    %140 = arith.xori %136, %139 : vector<16x32xi1>
    %141 = arith.andi %140, %134 : vector<16x32xi1>
    %142 = vector.broadcast %130 : i32 to vector<16x32xi32>
    %143 = arith.addi %132, %142 : vector<16x32xi32>
    %144 = arith.select %141, %143, %132 : vector<16x32xi1>, vector<16x32xi32>
    %c0_i32_54 = arith.constant 0 : i32
    %145 = vector.broadcast %c0_i32_54 : i32 to vector<16x32xi32>
    %146 = arith.cmpi ne, %144, %145 : vector<16x32xi32>
    %c16_i32_55 = arith.constant 16 : i32
    %c0_i32_56 = arith.constant 0 : i32
    %147 = arith.cmpi eq, %c16_i32_55, %c0_i32_56 : i32
    %c1_i32_57 = arith.constant 1 : i32
    %148 = arith.select %147, %c1_i32_57, %c16_i32_55 : i32
    %149 = vector.broadcast %148 : i32 to vector<16x32xi32>
    %150 = arith.remsi %128, %149 : vector<16x32xi32>
    %c0_i32_58 = arith.constant 0 : i32
    %151 = vector.broadcast %c0_i32_58 : i32 to vector<16x32xi32>
    %152 = arith.cmpi ne, %150, %151 : vector<16x32xi32>
    %c0_i32_59 = arith.constant 0 : i32
    %153 = vector.broadcast %c0_i32_59 : i32 to vector<16x32xi32>
    %154 = arith.cmpi slt, %150, %153 : vector<16x32xi32>
    %c0_i32_60 = arith.constant 0 : i32
    %155 = arith.cmpi slt, %148, %c0_i32_60 : i32
    %156 = vector.broadcast %155 : i1 to vector<16x32xi1>
    %157 = vector.broadcast %156 : vector<16x32xi1> to vector<16x32xi1>
    %158 = arith.xori %154, %157 : vector<16x32xi1>
    %159 = arith.andi %158, %152 : vector<16x32xi1>
    %160 = vector.broadcast %148 : i32 to vector<16x32xi32>
    %161 = arith.addi %150, %160 : vector<16x32xi32>
    %162 = arith.select %159, %161, %150 : vector<16x32xi1>, vector<16x32xi32>
    %c4_i32_61 = arith.constant 4 : i32
    %163 = vector.broadcast %c4_i32_61 : i32 to vector<16x32xi32>
    %164 = arith.cmpi sge, %162, %163 : vector<16x32xi32>
    %cst_62 = arith.constant 0.000000e+00 : bf16
    %165 = vector.broadcast %cst_62 : bf16 to vector<16x32xbf16>
    %cst_63 = arith.constant 0.000000e+00 : bf16
    %166 = vector.broadcast %cst_63 : bf16 to vector<1x32xbf16>
    %167 = vector.extract_strided_slice %127 {offsets = [0, 0], sizes = [15, 32], strides = [1, 1]} : vector<16x32xbf16> to vector<15x32xbf16>
    %168 = tpu.concatenate %166, %167 in 0 : vector<1x32xbf16>, vector<15x32xbf16> -> vector<16x32xbf16>
    %169 = arith.select %146, %168, %165 : vector<16x32xi1>, vector<16x32xbf16>
    %cst_64 = arith.constant 0.000000e+00 : bf16
    %170 = vector.broadcast %cst_64 : bf16 to vector<4x32xbf16>
    %171 = vector.extract_strided_slice %127 {offsets = [0, 0], sizes = [12, 32], strides = [1, 1]} : vector<16x32xbf16> to vector<12x32xbf16>
    %172 = tpu.concatenate %170, %171 in 0 : vector<4x32xbf16>, vector<12x32xbf16> -> vector<16x32xbf16>
    %173 = arith.select %164, %172, %165 : vector<16x32xi1>, vector<16x32xbf16>
    %174 = arith.andi %146, %164 : vector<16x32xi1>
    %cst_65 = arith.constant 0.000000e+00 : bf16
    %175 = vector.broadcast %cst_65 : bf16 to vector<5x32xbf16>
    %176 = vector.extract_strided_slice %127 {offsets = [0, 0], sizes = [11, 32], strides = [1, 1]} : vector<16x32xbf16> to vector<11x32xbf16>
    %177 = tpu.concatenate %175, %176 in 0 : vector<5x32xbf16>, vector<11x32xbf16> -> vector<16x32xbf16>
    %178 = arith.select %174, %177, %165 : vector<16x32xi1>, vector<16x32xbf16>
    %179 = tpu.concatenate %178, %173, %169, %127 in 1 : vector<16x32xbf16>, vector<16x32xbf16>, vector<16x32xbf16>, vector<16x32xbf16> -> vector<16x128xbf16>
    %c0_66 = arith.constant 0 : index
    %c0_67 = arith.constant 0 : index
    %180 = vector.load %arg8[%c0_66, %c0_67] : memref<128x64xbf16, #tpu.memory_space<vmem>>, vector<128x64xbf16>
    %cst_68 = arith.constant dense<0.000000e+00> : vector<16x64xf32>
    %181 = tpu.matmul %179, %180, %cst_68 {dimension_numbers = #tpu.dot_dimension_numbers<[1], [0], [0], [1], [0, 0, 1, 1], [], []>} : vector<16x128xbf16>, vector<128x64xbf16>, vector<16x64xf32> -> vector<16x64xf32>
    %c0_69 = arith.constant 0 : index
    %c0_70 = arith.constant 0 : index
    %182 = vector.load %arg9[%c0_69, %c0_70] : memref<1x64xf32, #tpu.memory_space<vmem>>, vector<1x64xf32>
    %183 = vector.broadcast %182 : vector<1x64xf32> to vector<16x64xf32>
    %184 = arith.addf %181, %183 : vector<16x64xf32>
    %cst_71 = arith.constant 0.000000e+00 : f32
    %185 = vector.broadcast %cst_71 : f32 to vector<16x64xf32>
    %186 = arith.maximumf %184, %185 : vector<16x64xf32>
    %c0_72 = arith.constant 0 : index
    %c0_73 = arith.constant 0 : index
    %187 = vector.load %arg10[%c0_72, %c0_73] : memref<4x16xbf16, #tpu.memory_space<vmem>>, vector<4x16xbf16>
    %188 = arith.truncf %186 : vector<16x64xf32> to vector<16x64xbf16>
    %cst_74 = arith.constant dense<0.000000e+00> : vector<4x64xf32>
    %189 = tpu.matmul %187, %188, %cst_74 {dimension_numbers = #tpu.dot_dimension_numbers<[1], [0], [0], [1], [0, 0, 1, 1], [], []>} : vector<4x16xbf16>, vector<16x64xbf16>, vector<4x64xf32> -> vector<4x64xf32>
    %190 = arith.truncf %189 : vector<4x64xf32> to vector<4x64xbf16>
    %191 = vector.extract_strided_slice %190 {offsets = [0, 0], sizes = [1, 64], strides = [1, 1]} : vector<4x64xbf16> to vector<1x64xbf16>
    %192 = vector.extract_strided_slice %190 {offsets = [1, 0], sizes = [1, 64], strides = [1, 1]} : vector<4x64xbf16> to vector<1x64xbf16>
    %193 = tpu.concatenate %191, %192 in 1 : vector<1x64xbf16>, vector<1x64xbf16> -> vector<1x128xbf16>
    %194 = vector.extract_strided_slice %190 {offsets = [2, 0], sizes = [1, 64], strides = [1, 1]} : vector<4x64xbf16> to vector<1x64xbf16>
    %195 = vector.extract_strided_slice %190 {offsets = [3, 0], sizes = [1, 64], strides = [1, 1]} : vector<4x64xbf16> to vector<1x64xbf16>
    %196 = tpu.concatenate %194, %195 in 1 : vector<1x64xbf16>, vector<1x64xbf16> -> vector<1x128xbf16>
    %197 = tpu.concatenate %193, %196 in 0 : vector<1x128xbf16>, vector<1x128xbf16> -> vector<2x128xbf16>
    %c0_75 = arith.constant 0 : index
    %c0_76 = arith.constant 0 : index
    %198 = vector.load %arg11[%c0_75, %c0_76] : memref<128x256xbf16, #tpu.memory_space<vmem>>, vector<128x256xbf16>
    %cst_77 = arith.constant dense<0.000000e+00> : vector<2x256xf32>
    %199 = tpu.matmul %197, %198, %cst_77 {dimension_numbers = #tpu.dot_dimension_numbers<[1], [0], [0], [1], [0, 0, 1, 1], [], []>} : vector<2x128xbf16>, vector<128x256xbf16>, vector<2x256xf32> -> vector<2x256xf32>
    %c0_78 = arith.constant 0 : index
    %c0_79 = arith.constant 0 : index
    %200 = vector.load %arg13[%c0_78, %c0_79] : memref<1x256xf32, #tpu.memory_space<vmem>>, vector<1x256xf32>
    %201 = vector.broadcast %200 : vector<1x256xf32> to vector<2x256xf32>
    %202 = arith.addf %199, %201 : vector<2x256xf32>
    %c0_80 = arith.constant 0 : index
    %c0_81 = arith.constant 0 : index
    %c0_82 = arith.constant 0 : index
    %203 = vector.load %arg12[%c0_80, %c0_81, %c0_82] : memref<2x32x128xbf16, #tpu.memory_space<vmem>>, vector<2x32x128xbf16>
    %cst_83 = arith.constant 0.000000e+00 : f32
    %204 = vector.broadcast %cst_83 : f32 to vector<1x32xf32>
    %205 = vector.extract_strided_slice %202 {offsets = [0, 0], sizes = [1, 128], strides = [1, 1]} : vector<2x256xf32> to vector<1x128xf32>
    %206 = arith.truncf %204 : vector<1x32xf32> to vector<1x32xbf16>
    %207 = vector.extract_strided_slice %203 {offsets = [0, 0, 0], sizes = [1, 32, 128], strides = [1, 1, 1]} : vector<2x32x128xbf16> to vector<1x32x128xbf16>
    %208 = vector.shape_cast %207 : vector<1x32x128xbf16> to vector<32x128xbf16>
    %cst_84 = arith.constant dense<0.000000e+00> : vector<1x128xf32>
    %209 = tpu.matmul %206, %208, %cst_84 {dimension_numbers = #tpu.dot_dimension_numbers<[1], [0], [0], [1], [0, 0, 1, 1], [], []>} : vector<1x32xbf16>, vector<32x128xbf16>, vector<1x128xf32> -> vector<1x128xf32>
    %210 = arith.addf %205, %209 : vector<1x128xf32>
    %211 = vector.extract_strided_slice %210 {offsets = [0, 0], sizes = [1, 32], strides = [1, 1]} : vector<1x128xf32> to vector<1x32xf32>
    %212 = arith.negf %211 : vector<1x32xf32>
    %213 = math.exp %212 : vector<1x32xf32>
    %cst_85 = arith.constant 1.000000e+00 : f32
    %214 = vector.broadcast %cst_85 : f32 to vector<1x32xf32>
    %215 = arith.addf %214, %213 : vector<1x32xf32>
    %216 = arith.divf %214, %215 : vector<1x32xf32>
    %217 = vector.extract_strided_slice %210 {offsets = [0, 32], sizes = [1, 32], strides = [1, 1]} : vector<1x128xf32> to vector<1x32xf32>
    %218 = arith.negf %217 : vector<1x32xf32>
    %219 = math.exp %218 : vector<1x32xf32>
    %cst_86 = arith.constant 1.000000e+00 : f32
    %220 = vector.broadcast %cst_86 : f32 to vector<1x32xf32>
    %221 = arith.addf %220, %219 : vector<1x32xf32>
    %222 = arith.divf %220, %221 : vector<1x32xf32>
    %223 = vector.extract_strided_slice %210 {offsets = [0, 64], sizes = [1, 32], strides = [1, 1]} : vector<1x128xf32> to vector<1x32xf32>
    %224 = math.tanh %223 : vector<1x32xf32>
    %225 = vector.extract_strided_slice %210 {offsets = [0, 96], sizes = [1, 32], strides = [1, 1]} : vector<1x128xf32> to vector<1x32xf32>
    %226 = arith.negf %225 : vector<1x32xf32>
    %227 = math.exp %226 : vector<1x32xf32>
    %cst_87 = arith.constant 1.000000e+00 : f32
    %228 = vector.broadcast %cst_87 : f32 to vector<1x32xf32>
    %229 = arith.addf %228, %227 : vector<1x32xf32>
    %230 = arith.divf %228, %229 : vector<1x32xf32>
    %231 = arith.mulf %222, %204 : vector<1x32xf32>
    %232 = arith.mulf %216, %224 : vector<1x32xf32>
    %233 = arith.addf %231, %232 : vector<1x32xf32>
    %234 = math.tanh %233 : vector<1x32xf32>
    %235 = arith.mulf %230, %234 : vector<1x32xf32>
    %236 = vector.extract_strided_slice %202 {offsets = [1, 0], sizes = [1, 128], strides = [1, 1]} : vector<2x256xf32> to vector<1x128xf32>
    %237 = arith.truncf %235 : vector<1x32xf32> to vector<1x32xbf16>
    %238 = vector.extract_strided_slice %203 {offsets = [0, 0, 0], sizes = [1, 32, 128], strides = [1, 1, 1]} : vector<2x32x128xbf16> to vector<1x32x128xbf16>
    %239 = vector.shape_cast %238 : vector<1x32x128xbf16> to vector<32x128xbf16>
    %cst_88 = arith.constant dense<0.000000e+00> : vector<1x128xf32>
    %240 = tpu.matmul %237, %239, %cst_88 {dimension_numbers = #tpu.dot_dimension_numbers<[1], [0], [0], [1], [0, 0, 1, 1], [], []>} : vector<1x32xbf16>, vector<32x128xbf16>, vector<1x128xf32> -> vector<1x128xf32>
    %241 = arith.addf %236, %240 : vector<1x128xf32>
    %242 = vector.extract_strided_slice %241 {offsets = [0, 0], sizes = [1, 32], strides = [1, 1]} : vector<1x128xf32> to vector<1x32xf32>
    %243 = arith.negf %242 : vector<1x32xf32>
    %244 = math.exp %243 : vector<1x32xf32>
    %cst_89 = arith.constant 1.000000e+00 : f32
    %245 = vector.broadcast %cst_89 : f32 to vector<1x32xf32>
    %246 = arith.addf %245, %244 : vector<1x32xf32>
    %247 = arith.divf %245, %246 : vector<1x32xf32>
    %248 = vector.extract_strided_slice %241 {offsets = [0, 32], sizes = [1, 32], strides = [1, 1]} : vector<1x128xf32> to vector<1x32xf32>
    %249 = arith.negf %248 : vector<1x32xf32>
    %250 = math.exp %249 : vector<1x32xf32>
    %cst_90 = arith.constant 1.000000e+00 : f32
    %251 = vector.broadcast %cst_90 : f32 to vector<1x32xf32>
    %252 = arith.addf %251, %250 : vector<1x32xf32>
    %253 = arith.divf %251, %252 : vector<1x32xf32>
    %254 = vector.extract_strided_slice %241 {offsets = [0, 64], sizes = [1, 32], strides = [1, 1]} : vector<1x128xf32> to vector<1x32xf32>
    %255 = math.tanh %254 : vector<1x32xf32>
    %256 = vector.extract_strided_slice %241 {offsets = [0, 96], sizes = [1, 32], strides = [1, 1]} : vector<1x128xf32> to vector<1x32xf32>
    %257 = arith.negf %256 : vector<1x32xf32>
    %258 = math.exp %257 : vector<1x32xf32>
    %cst_91 = arith.constant 1.000000e+00 : f32
    %259 = vector.broadcast %cst_91 : f32 to vector<1x32xf32>
    %260 = arith.addf %259, %258 : vector<1x32xf32>
    %261 = arith.divf %259, %260 : vector<1x32xf32>
    %262 = arith.mulf %253, %233 : vector<1x32xf32>
    %263 = arith.mulf %247, %255 : vector<1x32xf32>
    %264 = arith.addf %262, %263 : vector<1x32xf32>
    %265 = math.tanh %264 : vector<1x32xf32>
    %266 = arith.mulf %261, %265 : vector<1x32xf32>
    %267 = vector.extract_strided_slice %202 {offsets = [1, 128], sizes = [1, 128], strides = [1, 1]} : vector<2x256xf32> to vector<1x128xf32>
    %268 = arith.truncf %204 : vector<1x32xf32> to vector<1x32xbf16>
    %269 = vector.extract_strided_slice %203 {offsets = [1, 0, 0], sizes = [1, 32, 128], strides = [1, 1, 1]} : vector<2x32x128xbf16> to vector<1x32x128xbf16>
    %270 = vector.shape_cast %269 : vector<1x32x128xbf16> to vector<32x128xbf16>
    %cst_92 = arith.constant dense<0.000000e+00> : vector<1x128xf32>
    %271 = tpu.matmul %268, %270, %cst_92 {dimension_numbers = #tpu.dot_dimension_numbers<[1], [0], [0], [1], [0, 0, 1, 1], [], []>} : vector<1x32xbf16>, vector<32x128xbf16>, vector<1x128xf32> -> vector<1x128xf32>
    %272 = arith.addf %267, %271 : vector<1x128xf32>
    %273 = vector.extract_strided_slice %272 {offsets = [0, 0], sizes = [1, 32], strides = [1, 1]} : vector<1x128xf32> to vector<1x32xf32>
    %274 = arith.negf %273 : vector<1x32xf32>
    %275 = math.exp %274 : vector<1x32xf32>
    %cst_93 = arith.constant 1.000000e+00 : f32
    %276 = vector.broadcast %cst_93 : f32 to vector<1x32xf32>
    %277 = arith.addf %276, %275 : vector<1x32xf32>
    %278 = arith.divf %276, %277 : vector<1x32xf32>
    %279 = vector.extract_strided_slice %272 {offsets = [0, 32], sizes = [1, 32], strides = [1, 1]} : vector<1x128xf32> to vector<1x32xf32>
    %280 = arith.negf %279 : vector<1x32xf32>
    %281 = math.exp %280 : vector<1x32xf32>
    %cst_94 = arith.constant 1.000000e+00 : f32
    %282 = vector.broadcast %cst_94 : f32 to vector<1x32xf32>
    %283 = arith.addf %282, %281 : vector<1x32xf32>
    %284 = arith.divf %282, %283 : vector<1x32xf32>
    %285 = vector.extract_strided_slice %272 {offsets = [0, 64], sizes = [1, 32], strides = [1, 1]} : vector<1x128xf32> to vector<1x32xf32>
    %286 = math.tanh %285 : vector<1x32xf32>
    %287 = vector.extract_strided_slice %272 {offsets = [0, 96], sizes = [1, 32], strides = [1, 1]} : vector<1x128xf32> to vector<1x32xf32>
    %288 = arith.negf %287 : vector<1x32xf32>
    %289 = math.exp %288 : vector<1x32xf32>
    %cst_95 = arith.constant 1.000000e+00 : f32
    %290 = vector.broadcast %cst_95 : f32 to vector<1x32xf32>
    %291 = arith.addf %290, %289 : vector<1x32xf32>
    %292 = arith.divf %290, %291 : vector<1x32xf32>
    %293 = arith.mulf %284, %204 : vector<1x32xf32>
    %294 = arith.mulf %278, %286 : vector<1x32xf32>
    %295 = arith.addf %293, %294 : vector<1x32xf32>
    %296 = math.tanh %295 : vector<1x32xf32>
    %297 = arith.mulf %292, %296 : vector<1x32xf32>
    %298 = vector.extract_strided_slice %202 {offsets = [0, 128], sizes = [1, 128], strides = [1, 1]} : vector<2x256xf32> to vector<1x128xf32>
    %299 = arith.truncf %297 : vector<1x32xf32> to vector<1x32xbf16>
    %300 = vector.extract_strided_slice %203 {offsets = [1, 0, 0], sizes = [1, 32, 128], strides = [1, 1, 1]} : vector<2x32x128xbf16> to vector<1x32x128xbf16>
    %301 = vector.shape_cast %300 : vector<1x32x128xbf16> to vector<32x128xbf16>
    %cst_96 = arith.constant dense<0.000000e+00> : vector<1x128xf32>
    %302 = tpu.matmul %299, %301, %cst_96 {dimension_numbers = #tpu.dot_dimension_numbers<[1], [0], [0], [1], [0, 0, 1, 1], [], []>} : vector<1x32xbf16>, vector<32x128xbf16>, vector<1x128xf32> -> vector<1x128xf32>
    %303 = arith.addf %298, %302 : vector<1x128xf32>
    %304 = vector.extract_strided_slice %303 {offsets = [0, 0], sizes = [1, 32], strides = [1, 1]} : vector<1x128xf32> to vector<1x32xf32>
    %305 = arith.negf %304 : vector<1x32xf32>
    %306 = math.exp %305 : vector<1x32xf32>
    %cst_97 = arith.constant 1.000000e+00 : f32
    %307 = vector.broadcast %cst_97 : f32 to vector<1x32xf32>
    %308 = arith.addf %307, %306 : vector<1x32xf32>
    %309 = arith.divf %307, %308 : vector<1x32xf32>
    %310 = vector.extract_strided_slice %303 {offsets = [0, 32], sizes = [1, 32], strides = [1, 1]} : vector<1x128xf32> to vector<1x32xf32>
    %311 = arith.negf %310 : vector<1x32xf32>
    %312 = math.exp %311 : vector<1x32xf32>
    %cst_98 = arith.constant 1.000000e+00 : f32
    %313 = vector.broadcast %cst_98 : f32 to vector<1x32xf32>
    %314 = arith.addf %313, %312 : vector<1x32xf32>
    %315 = arith.divf %313, %314 : vector<1x32xf32>
    %316 = vector.extract_strided_slice %303 {offsets = [0, 64], sizes = [1, 32], strides = [1, 1]} : vector<1x128xf32> to vector<1x32xf32>
    %317 = math.tanh %316 : vector<1x32xf32>
    %318 = vector.extract_strided_slice %303 {offsets = [0, 96], sizes = [1, 32], strides = [1, 1]} : vector<1x128xf32> to vector<1x32xf32>
    %319 = arith.negf %318 : vector<1x32xf32>
    %320 = math.exp %319 : vector<1x32xf32>
    %cst_99 = arith.constant 1.000000e+00 : f32
    %321 = vector.broadcast %cst_99 : f32 to vector<1x32xf32>
    %322 = arith.addf %321, %320 : vector<1x32xf32>
    %323 = arith.divf %321, %322 : vector<1x32xf32>
    %324 = arith.mulf %315, %295 : vector<1x32xf32>
    %325 = arith.mulf %309, %317 : vector<1x32xf32>
    %326 = arith.addf %324, %325 : vector<1x32xf32>
    %327 = math.tanh %326 : vector<1x32xf32>
    %328 = arith.mulf %323, %327 : vector<1x32xf32>
    %329 = tpu.concatenate %235, %328 in 1 : vector<1x32xf32>, vector<1x32xf32> -> vector<1x64xf32>
    %330 = arith.truncf %329 : vector<1x64xf32> to vector<1x64xbf16>
    %331 = tpu.concatenate %266, %297 in 1 : vector<1x32xf32>, vector<1x32xf32> -> vector<1x64xf32>
    %332 = arith.truncf %331 : vector<1x64xf32> to vector<1x64xbf16>
    %333 = tpu.concatenate %330, %332 in 0 : vector<1x64xbf16>, vector<1x64xbf16> -> vector<2x64xbf16>
    %c0_100 = arith.constant 0 : index
    %c0_101 = arith.constant 0 : index
    %334 = vector.load %arg14[%c0_100, %c0_101] : memref<64x256xbf16, #tpu.memory_space<vmem>>, vector<64x256xbf16>
    %cst_102 = arith.constant dense<0.000000e+00> : vector<2x256xf32>
    %335 = tpu.matmul %333, %334, %cst_102 {dimension_numbers = #tpu.dot_dimension_numbers<[1], [0], [0], [1], [0, 0, 1, 1], [], []>} : vector<2x64xbf16>, vector<64x256xbf16>, vector<2x256xf32> -> vector<2x256xf32>
    %c0_103 = arith.constant 0 : index
    %c0_104 = arith.constant 0 : index
    %336 = vector.load %arg16[%c0_103, %c0_104] : memref<1x256xf32, #tpu.memory_space<vmem>>, vector<1x256xf32>
    %337 = vector.broadcast %336 : vector<1x256xf32> to vector<2x256xf32>
    %338 = arith.addf %335, %337 : vector<2x256xf32>
    %c0_105 = arith.constant 0 : index
    %c0_106 = arith.constant 0 : index
    %c0_107 = arith.constant 0 : index
    %339 = vector.load %arg15[%c0_105, %c0_106, %c0_107] : memref<2x32x128xbf16, #tpu.memory_space<vmem>>, vector<2x32x128xbf16>
    %cst_108 = arith.constant 0.000000e+00 : f32
    %340 = vector.broadcast %cst_108 : f32 to vector<1x32xf32>
    %341 = vector.extract_strided_slice %338 {offsets = [0, 0], sizes = [1, 128], strides = [1, 1]} : vector<2x256xf32> to vector<1x128xf32>
    %342 = arith.truncf %340 : vector<1x32xf32> to vector<1x32xbf16>
    %343 = vector.extract_strided_slice %339 {offsets = [0, 0, 0], sizes = [1, 32, 128], strides = [1, 1, 1]} : vector<2x32x128xbf16> to vector<1x32x128xbf16>
    %344 = vector.shape_cast %343 : vector<1x32x128xbf16> to vector<32x128xbf16>
    %cst_109 = arith.constant dense<0.000000e+00> : vector<1x128xf32>
    %345 = tpu.matmul %342, %344, %cst_109 {dimension_numbers = #tpu.dot_dimension_numbers<[1], [0], [0], [1], [0, 0, 1, 1], [], []>} : vector<1x32xbf16>, vector<32x128xbf16>, vector<1x128xf32> -> vector<1x128xf32>
    %346 = arith.addf %341, %345 : vector<1x128xf32>
    %347 = vector.extract_strided_slice %346 {offsets = [0, 0], sizes = [1, 32], strides = [1, 1]} : vector<1x128xf32> to vector<1x32xf32>
    %348 = arith.negf %347 : vector<1x32xf32>
    %349 = math.exp %348 : vector<1x32xf32>
    %cst_110 = arith.constant 1.000000e+00 : f32
    %350 = vector.broadcast %cst_110 : f32 to vector<1x32xf32>
    %351 = arith.addf %350, %349 : vector<1x32xf32>
    %352 = arith.divf %350, %351 : vector<1x32xf32>
    %353 = vector.extract_strided_slice %346 {offsets = [0, 32], sizes = [1, 32], strides = [1, 1]} : vector<1x128xf32> to vector<1x32xf32>
    %354 = arith.negf %353 : vector<1x32xf32>
    %355 = math.exp %354 : vector<1x32xf32>
    %cst_111 = arith.constant 1.000000e+00 : f32
    %356 = vector.broadcast %cst_111 : f32 to vector<1x32xf32>
    %357 = arith.addf %356, %355 : vector<1x32xf32>
    %358 = arith.divf %356, %357 : vector<1x32xf32>
    %359 = vector.extract_strided_slice %346 {offsets = [0, 64], sizes = [1, 32], strides = [1, 1]} : vector<1x128xf32> to vector<1x32xf32>
    %360 = math.tanh %359 : vector<1x32xf32>
    %361 = vector.extract_strided_slice %346 {offsets = [0, 96], sizes = [1, 32], strides = [1, 1]} : vector<1x128xf32> to vector<1x32xf32>
    %362 = arith.negf %361 : vector<1x32xf32>
    %363 = math.exp %362 : vector<1x32xf32>
    %cst_112 = arith.constant 1.000000e+00 : f32
    %364 = vector.broadcast %cst_112 : f32 to vector<1x32xf32>
    %365 = arith.addf %364, %363 : vector<1x32xf32>
    %366 = arith.divf %364, %365 : vector<1x32xf32>
    %367 = arith.mulf %358, %340 : vector<1x32xf32>
    %368 = arith.mulf %352, %360 : vector<1x32xf32>
    %369 = arith.addf %367, %368 : vector<1x32xf32>
    %370 = math.tanh %369 : vector<1x32xf32>
    %371 = arith.mulf %366, %370 : vector<1x32xf32>
    %372 = vector.extract_strided_slice %338 {offsets = [1, 0], sizes = [1, 128], strides = [1, 1]} : vector<2x256xf32> to vector<1x128xf32>
    %373 = arith.truncf %371 : vector<1x32xf32> to vector<1x32xbf16>
    %374 = vector.extract_strided_slice %339 {offsets = [0, 0, 0], sizes = [1, 32, 128], strides = [1, 1, 1]} : vector<2x32x128xbf16> to vector<1x32x128xbf16>
    %375 = vector.shape_cast %374 : vector<1x32x128xbf16> to vector<32x128xbf16>
    %cst_113 = arith.constant dense<0.000000e+00> : vector<1x128xf32>
    %376 = tpu.matmul %373, %375, %cst_113 {dimension_numbers = #tpu.dot_dimension_numbers<[1], [0], [0], [1], [0, 0, 1, 1], [], []>} : vector<1x32xbf16>, vector<32x128xbf16>, vector<1x128xf32> -> vector<1x128xf32>
    %377 = arith.addf %372, %376 : vector<1x128xf32>
    %378 = vector.extract_strided_slice %377 {offsets = [0, 0], sizes = [1, 32], strides = [1, 1]} : vector<1x128xf32> to vector<1x32xf32>
    %379 = arith.negf %378 : vector<1x32xf32>
    %380 = math.exp %379 : vector<1x32xf32>
    %cst_114 = arith.constant 1.000000e+00 : f32
    %381 = vector.broadcast %cst_114 : f32 to vector<1x32xf32>
    %382 = arith.addf %381, %380 : vector<1x32xf32>
    %383 = arith.divf %381, %382 : vector<1x32xf32>
    %384 = vector.extract_strided_slice %377 {offsets = [0, 32], sizes = [1, 32], strides = [1, 1]} : vector<1x128xf32> to vector<1x32xf32>
    %385 = arith.negf %384 : vector<1x32xf32>
    %386 = math.exp %385 : vector<1x32xf32>
    %cst_115 = arith.constant 1.000000e+00 : f32
    %387 = vector.broadcast %cst_115 : f32 to vector<1x32xf32>
    %388 = arith.addf %387, %386 : vector<1x32xf32>
    %389 = arith.divf %387, %388 : vector<1x32xf32>
    %390 = vector.extract_strided_slice %377 {offsets = [0, 64], sizes = [1, 32], strides = [1, 1]} : vector<1x128xf32> to vector<1x32xf32>
    %391 = math.tanh %390 : vector<1x32xf32>
    %392 = vector.extract_strided_slice %377 {offsets = [0, 96], sizes = [1, 32], strides = [1, 1]} : vector<1x128xf32> to vector<1x32xf32>
    %393 = arith.negf %392 : vector<1x32xf32>
    %394 = math.exp %393 : vector<1x32xf32>
    %cst_116 = arith.constant 1.000000e+00 : f32
    %395 = vector.broadcast %cst_116 : f32 to vector<1x32xf32>
    %396 = arith.addf %395, %394 : vector<1x32xf32>
    %397 = arith.divf %395, %396 : vector<1x32xf32>
    %398 = arith.mulf %389, %369 : vector<1x32xf32>
    %399 = arith.mulf %383, %391 : vector<1x32xf32>
    %400 = arith.addf %398, %399 : vector<1x32xf32>
    %401 = math.tanh %400 : vector<1x32xf32>
    %402 = arith.mulf %397, %401 : vector<1x32xf32>
    %403 = vector.extract_strided_slice %338 {offsets = [1, 128], sizes = [1, 128], strides = [1, 1]} : vector<2x256xf32> to vector<1x128xf32>
    %404 = vector.extract_strided_slice %403 {offsets = [0, 0], sizes = [1, 32], strides = [1, 1]} : vector<1x128xf32> to vector<1x32xf32>
    %405 = arith.negf %404 : vector<1x32xf32>
    %406 = math.exp %405 : vector<1x32xf32>
    %cst_117 = arith.constant 1.000000e+00 : f32
    %407 = vector.broadcast %cst_117 : f32 to vector<1x32xf32>
    %408 = arith.addf %407, %406 : vector<1x32xf32>
    %409 = arith.divf %407, %408 : vector<1x32xf32>
    %410 = vector.extract_strided_slice %403 {offsets = [0, 32], sizes = [1, 32], strides = [1, 1]} : vector<1x128xf32> to vector<1x32xf32>
    %411 = arith.negf %410 : vector<1x32xf32>
    %412 = math.exp %411 : vector<1x32xf32>
    %cst_118 = arith.constant 1.000000e+00 : f32
    %413 = vector.broadcast %cst_118 : f32 to vector<1x32xf32>
    %414 = arith.addf %413, %412 : vector<1x32xf32>
    %415 = arith.divf %413, %414 : vector<1x32xf32>
    %416 = vector.extract_strided_slice %403 {offsets = [0, 64], sizes = [1, 32], strides = [1, 1]} : vector<1x128xf32> to vector<1x32xf32>
    %417 = math.tanh %416 : vector<1x32xf32>
    %418 = vector.extract_strided_slice %403 {offsets = [0, 96], sizes = [1, 32], strides = [1, 1]} : vector<1x128xf32> to vector<1x32xf32>
    %419 = arith.negf %418 : vector<1x32xf32>
    %420 = math.exp %419 : vector<1x32xf32>
    %cst_119 = arith.constant 1.000000e+00 : f32
    %421 = vector.broadcast %cst_119 : f32 to vector<1x32xf32>
    %422 = arith.addf %421, %420 : vector<1x32xf32>
    %423 = arith.divf %421, %422 : vector<1x32xf32>
    %424 = arith.mulf %415, %340 : vector<1x32xf32>
    %425 = arith.mulf %409, %417 : vector<1x32xf32>
    %426 = arith.addf %424, %425 : vector<1x32xf32>
    %427 = math.tanh %426 : vector<1x32xf32>
    %428 = arith.mulf %423, %427 : vector<1x32xf32>
    %c0_120 = arith.constant 0 : index
    %c0_121 = arith.constant 0 : index
    %429 = vector.load %arg17[%c0_120, %c0_121] : memref<64x100xbf16, #tpu.memory_space<vmem>>, vector<64x100xbf16>
    %430 = arith.truncf %402 : vector<1x32xf32> to vector<1x32xbf16>
    %431 = vector.extract_strided_slice %429 {offsets = [0, 0], sizes = [32, 100], strides = [1, 1]} : vector<64x100xbf16> to vector<32x100xbf16>
    %cst_122 = arith.constant dense<0.000000e+00> : vector<1x100xf32>
    %432 = tpu.matmul %430, %431, %cst_122 {dimension_numbers = #tpu.dot_dimension_numbers<[1], [0], [0], [1], [0, 0, 1, 1], [], []>} : vector<1x32xbf16>, vector<32x100xbf16>, vector<1x100xf32> -> vector<1x100xf32>
    %433 = arith.truncf %428 : vector<1x32xf32> to vector<1x32xbf16>
    %434 = vector.extract_strided_slice %429 {offsets = [32, 0], sizes = [32, 100], strides = [1, 1]} : vector<64x100xbf16> to vector<32x100xbf16>
    %cst_123 = arith.constant dense<0.000000e+00> : vector<1x100xf32>
    %435 = tpu.matmul %433, %434, %cst_123 {dimension_numbers = #tpu.dot_dimension_numbers<[1], [0], [0], [1], [0, 0, 1, 1], [], []>} : vector<1x32xbf16>, vector<32x100xbf16>, vector<1x100xf32> -> vector<1x100xf32>
    %436 = arith.addf %432, %435 : vector<1x100xf32>
    %c0_124 = arith.constant 0 : index
    %c0_125 = arith.constant 0 : index
    %437 = vector.load %arg18[%c0_124, %c0_125] : memref<1x100xf32, #tpu.memory_space<vmem>>, vector<1x100xf32>
    %438 = arith.addf %436, %437 : vector<1x100xf32>
    %cst_126 = arith.constant 0.000000e+00 : f32
    %439 = vector.broadcast %cst_126 : f32 to vector<1x100xf32>
    %440 = arith.maximumf %438, %439 : vector<1x100xf32>
    %441 = arith.truncf %440 : vector<1x100xf32> to vector<1x100xbf16>
    %c0_127 = arith.constant 0 : index
    %c0_128 = arith.constant 0 : index
    %442 = vector.load %arg19[%c0_127, %c0_128] : memref<100x1xbf16, #tpu.memory_space<vmem>>, vector<100x1xbf16>
    %cst_129 = arith.constant dense<0.000000e+00> : vector<1x1xf32>
    %443 = tpu.matmul %441, %442, %cst_129 {dimension_numbers = #tpu.dot_dimension_numbers<[1], [0], [0], [1], [0, 0, 1, 1], [], []>} : vector<1x100xbf16>, vector<100x1xbf16>, vector<1x1xf32> -> vector<1x1xf32>
    %c0_130 = arith.constant 0 : index
    %c0_131 = arith.constant 0 : index
    %444 = vector.load %arg20[%c0_130, %c0_131] : memref<1x1xf32, #tpu.memory_space<vmem>>, vector<1x1xf32>
    %445 = arith.addf %443, %444 : vector<1x1xf32>
    %c0_132 = arith.constant 0 : index
    %c0_133 = arith.constant 0 : index
    %c0_134 = arith.constant 0 : index
    %446 = vector.load %arg21[%c0_132, %c0_133, %c0_134] : memref<1x1x1xf32, #tpu.memory_space<vmem>>, vector<1x1x1xf32>
    %447 = vector.shape_cast %446 : vector<1x1x1xf32> to vector<1x1xf32>
    %448 = vector.shape_cast %445 : vector<1x1xf32> to vector<1x1x1xf32>
    tpu.vector_store %arg21[%c0_132, %c0_133, %c0_134], %448 {strides = array<i32>} : memref<1x1x1xf32, #tpu.memory_space<vmem>>, vector<1x1x1xf32>,
    return
  }
  func.func @transform_0(%arg0: i32) -> (i32, i32, i32) {
    %c0_i32 = arith.constant 0 : i32
    %c0_i32_0 = arith.constant 0 : i32
    %c0_i32_1 = arith.constant 0 : i32
    return %arg0, %c0_i32, %c0_i32_0 : i32, i32, i32
  }
  func.func @transform_1(%arg0: i32) -> (i32, i32) {
    %c0_i32 = arith.constant 0 : i32
    %c0_i32_0 = arith.constant 0 : i32
    %c0_i32_1 = arith.constant 0 : i32
    return %c0_i32, %c0_i32_0 : i32, i32
  }
  func.func @transform_2(%arg0: i32) -> (i32, i32) {
    %c0_i32 = arith.constant 0 : i32
    %c0_i32_0 = arith.constant 0 : i32
    %c0_i32_1 = arith.constant 0 : i32
    return %c0_i32, %c0_i32_0 : i32, i32
  }
  func.func @transform_3(%arg0: i32) -> (i32, i32) {
    %c0_i32 = arith.constant 0 : i32
    %c0_i32_0 = arith.constant 0 : i32
    %c0_i32_1 = arith.constant 0 : i32
    return %c0_i32, %c0_i32_0 : i32, i32
  }
  func.func @transform_4(%arg0: i32) -> (i32, i32) {
    %c0_i32 = arith.constant 0 : i32
    %c0_i32_0 = arith.constant 0 : i32
    %c0_i32_1 = arith.constant 0 : i32
    return %c0_i32, %c0_i32_0 : i32, i32
  }
  func.func @transform_5(%arg0: i32) -> (i32, i32) {
    %c0_i32 = arith.constant 0 : i32
    %c0_i32_0 = arith.constant 0 : i32
    %c0_i32_1 = arith.constant 0 : i32
    return %c0_i32, %c0_i32_0 : i32, i32
  }
  func.func @transform_6(%arg0: i32) -> (i32, i32) {
    %c0_i32 = arith.constant 0 : i32
    %c0_i32_0 = arith.constant 0 : i32
    %c0_i32_1 = arith.constant 0 : i32
    return %c0_i32, %c0_i32_0 : i32, i32
  }
  func.func @transform_7(%arg0: i32) -> (i32, i32) {
    %c0_i32 = arith.constant 0 : i32
    %c0_i32_0 = arith.constant 0 : i32
    %c0_i32_1 = arith.constant 0 : i32
    return %c0_i32, %c0_i32_0 : i32, i32
  }
  func.func @transform_8(%arg0: i32) -> (i32, i32) {
    %c0_i32 = arith.constant 0 : i32
    %c0_i32_0 = arith.constant 0 : i32
    %c0_i32_1 = arith.constant 0 : i32
    return %c0_i32, %c0_i32_0 : i32, i32
  }
  func.func @transform_9(%arg0: i32) -> (i32, i32) {
    %c0_i32 = arith.constant 0 : i32
    %c0_i32_0 = arith.constant 0 : i32
    %c0_i32_1 = arith.constant 0 : i32
    return %c0_i32, %c0_i32_0 : i32, i32
  }
  func.func @transform_10(%arg0: i32) -> (i32, i32) {
    %c0_i32 = arith.constant 0 : i32
    %c0_i32_0 = arith.constant 0 : i32
    %c0_i32_1 = arith.constant 0 : i32
    return %c0_i32, %c0_i32_0 : i32, i32
  }
  func.func @transform_11(%arg0: i32) -> (i32, i32, i32) {
    %c0_i32 = arith.constant 0 : i32
    %c0_i32_0 = arith.constant 0 : i32
    %c0_i32_1 = arith.constant 0 : i32
    %c0_i32_2 = arith.constant 0 : i32
    return %c0_i32, %c0_i32_0, %c0_i32_1 : i32, i32, i32
  }
  func.func @transform_12(%arg0: i32) -> (i32, i32) {
    %c0_i32 = arith.constant 0 : i32
    %c0_i32_0 = arith.constant 0 : i32
    %c0_i32_1 = arith.constant 0 : i32
    return %c0_i32, %c0_i32_0 : i32, i32
  }
  func.func @transform_13(%arg0: i32) -> (i32, i32) {
    %c0_i32 = arith.constant 0 : i32
    %c0_i32_0 = arith.constant 0 : i32
    %c0_i32_1 = arith.constant 0 : i32
    return %c0_i32, %c0_i32_0 : i32, i32
  }
  func.func @transform_14(%arg0: i32) -> (i32, i32, i32) {
    %c0_i32 = arith.constant 0 : i32
    %c0_i32_0 = arith.constant 0 : i32
    %c0_i32_1 = arith.constant 0 : i32
    %c0_i32_2 = arith.constant 0 : i32
    return %c0_i32, %c0_i32_0, %c0_i32_1 : i32, i32, i32
  }
  func.func @transform_15(%arg0: i32) -> (i32, i32) {
    %c0_i32 = arith.constant 0 : i32
    %c0_i32_0 = arith.constant 0 : i32
    %c0_i32_1 = arith.constant 0 : i32
    return %c0_i32, %c0_i32_0 : i32, i32
  }
  func.func @transform_16(%arg0: i32) -> (i32, i32) {
    %c0_i32 = arith.constant 0 : i32
    %c0_i32_0 = arith.constant 0 : i32
    %c0_i32_1 = arith.constant 0 : i32
    return %c0_i32, %c0_i32_0 : i32, i32
  }
  func.func @transform_17(%arg0: i32) -> (i32, i32) {
    %c0_i32 = arith.constant 0 : i32
    %c0_i32_0 = arith.constant 0 : i32
    %c0_i32_1 = arith.constant 0 : i32
    return %c0_i32, %c0_i32_0 : i32, i32
  }
  func.func @transform_18(%arg0: i32) -> (i32, i32) {
    %c0_i32 = arith.constant 0 : i32
    %c0_i32_0 = arith.constant 0 : i32
    %c0_i32_1 = arith.constant 0 : i32
    return %c0_i32, %c0_i32_0 : i32, i32
  }
  func.func @transform_19(%arg0: i32) -> (i32, i32) {
    %c0_i32 = arith.constant 0 : i32
    %c0_i32_0 = arith.constant 0 : i32
    %c0_i32_1 = arith.constant 0 : i32
    return %c0_i32, %c0_i32_0 : i32, i32
  }
  func.func @transform_20(%arg0: i32) -> (i32, i32, i32) {
    %c0_i32 = arith.constant 0 : i32
    %c0_i32_0 = arith.constant 0 : i32
    %c0_i32_1 = arith.constant 0 : i32
    return %arg0, %c0_i32, %c0_i32_0 : i32, i32, i32
  }
}

</mosaic_0001>

<bundles_post_ra>
// kernel: cnn_lstm_forward.1
= control target key start
LH: loop header
LB: loop body
LE: loop exit
PB: predicated region body
PF: predicated region fallthrough
CT: control target
= control target key end

     0   :  { %s5559_s23 = smov 0   ;;  %s6824_s0 = inlined_call_operand.vmem [shape: bf16[2,256,4], index: 0, kind: input, shape index: {}]   ;;  %s6825_s1 = inlined_call_operand.vmem [shape: bf16[16,16], index: 1, kind: input, shape index: {}]   ;;  %s6826_s2 = inlined_call_operand.vmem [shape: f32[1,16], index: 2, kind: input, shape index: {}]   ;;  %s6827_s3 = inlined_call_operand.vmem [shape: bf16[64,256], index: 3, kind: input, shape index: {}]   ;;  %s6828_s4 = inlined_call_operand.vmem [shape: bf16[64,32], index: 4, kind: input, shape index: {}]   ;;  %s6829_s5 = inlined_call_operand.vmem [shape: f32[1,32], index: 5, kind: input, shape index: {}]   ;;  %s6830_s6 = inlined_call_operand.vmem [shape: bf16[16,64], index: 6, kind: input, shape index: {}]   ;;  %s6831_s7 = inlined_call_operand.vmem [shape: bf16[128,64], index: 7, kind: input, shape index: {}]   ;;  %s6832_s8 = inlined_call_operand.vmem [shape: f32[1,64], index: 8, kind: input, shape index: {}]   ;;  %s6833_s9 = inlined_call_operand.vmem [shape: bf16[4,16], index: 9, kind: input, shape index: {}]   ;;  %s6834_s10 = inlined_call_operand.vmem [shape: bf16[128,256], index: 10, kind: input, shape index: {}]   ;;  %s6835_s11 = inlined_call_operand.vmem [shape: bf16[2,32,128], index: 11, kind: input, shape index: {}]   ;;  %s6836_s12 = inlined_call_operand.vmem [shape: f32[1,256], index: 12, kind: input, shape index: {}]   ;;  %s6837_s13 = inlined_call_operand.vmem [shape: bf16[64,256], index: 13, kind: input, shape index: {}]   ;;  %s6838_s14 = inlined_call_operand.vmem [shape: bf16[2,32,128], index: 14, kind: input, shape index: {}]   ;;  %s6839_s15 = inlined_call_operand.vmem [shape: f32[1,256], index: 15, kind: input, shape index: {}]   ;;  %s6840_s16 = inlined_call_operand.vmem [shape: bf16[64,100], index: 16, kind: input, shape index: {}]   ;;  %s6841_s17 = inlined_call_operand.vmem [shape: f32[1,100], index: 17, kind: input, shape index: {}]   ;;  %s6842_s18 = inlined_call_operand.vmem [shape: bf16[100,1], index: 18, kind: input, shape index: {}]   ;;  %s6843_s19 = inlined_call_operand.<no memory space> [shape: f32[1,1], index: 19, kind: input, shape index: {}]   ;;  %s6844_s20 = inlined_call_operand.vmem [shape: f32[2,1,1], index: 20, kind: output, shape index: {}]  }
   0x1   :  { %6856 = sst [smem:[#allocation3_spill]] %s6824_s0  ;;  %v25_v0 = vstv %s6843_s19 }
   0x2   :  { %6857 = sst [smem:[#allocation4_spill]] %s6825_s1  ;;  %26 = vst [vmem:[#allocation2] sm:$0x1] %v25_v0 }
   0x3   :  { %6858 = sst [smem:[#allocation5_spill]] %s6826_s2 }
   0x4   :  { %6859 = sst [smem:[#allocation6_spill]] %s6827_s3 }
   0x5   :  { %6860 = sst [smem:[#allocation7_spill]] %s6828_s4 }
   0x6 LB: > { %s4778_s24 = sadd.s32 4294967295, %s5437_s23   ;;  %p4782_p0 = scmp.ge.s32.totalorder %s5437_s23, 1  ;;  %s5437_s23 = sphi %s5559_s23, %s32_s23  }
   0x7   : > { %p564_p1 = scmp.lt.s32.totalorder %s5437_s23, 3 }
   0x9   : > { %p565_p2 = pnand %p4782_p0, %p564_p1 }
   0xa   : > { %p620_p3 = scmp.lt.s32.totalorder (!%p565_p2), %s4778_s24, 1  ;;  %s5440_s19 = smov (!%p565_p2), 4  }
   0xb   : > { %568 = sbr.rel (%p565_p2) target bundleno = 5075 (0x13d3), region = 100  ;;  %s6861_s26 = sld [smem:[#allocation4_spill]] (!%p565_p2) }
   0xc   : > { %s6862_s4 = sld [smem:[#allocation3_spill]] (!%p565_p2)  ;;  %s5442_s30 = smov (!%p565_p2), 12  }
   0xd   : > { %s5443_s0 = smov (!%p565_p2), 8   ;;  %s6912_s22 = sld [smem:[#allocation6_spill]] (!%p565_p2) }
   0xe   : > { %s6913_s25 = sld [smem:[#allocation5_spill]] (!%p565_p2) }
   0xf   : > { %s6914_s28 = sld [smem:[#allocation7_spill]] (!%p565_p2) }
  0x10   : > { %v663_v1 = vlaneseq  ;;  %v5439_v2 = vmov 0   ;;  %vm5441_vm0 = vmmov 1   ;;  %s6954_s24 = smov (!%p620_p3, %s4778_s24), 1  ;;  %vm6848_vm2 = vsmask.f32 256 }
  0x11   : > { %2204 = vrot.lane.b32.xlu0 %v5439_v2, %s5440_s19  ;;  %vm1730_vm1 = vmpackc.low %vm5441_vm0, %vm5441_vm0  ;;  %s4966_s2 = sshll.u32 %s6954_s24, 7  ;;  %vm1726_vm3 = vcmask 1040384   ;;  %v5296_v9 = vld [vmem:[%s6861_s26] sm:$0xff]   ;;  %v6863_v10 = vmov 0  ;;  %v6867_v32 = vmov 0 }
  0x12   : > { %v5572_v3 = vsel %vm1730_vm1, 65537, %v5439_v2  ;;  %v5574_v4 = vshrl.u32 %v663_v1, 7  ;;  %s5592_s29 = scalar_lea.vmem %s6862_s4, %s4966_s2  ;;  %5080 = vmatprep.subr.bf16.mxu0 %v5296_v9  ;;  %vm5642_vm9 = vmand %vm1726_vm3, %vm6848_vm2  ;;  %s5446_s2 = smov 16  }
  0x13   : > { %v4817_v5 = vcombine.low %v5572_v3, %v5572_v3  ;;  %v5280_v14 = vld [vmem:[%s5592_s29 + $0x8] sm:$0xff]   ;;  %v5281_v16 = vld [vmem:[%s5592_s29] sm:$0xff]   ;;  %5081 = vmatpush3.bf16.msra.mxu0 %v5296_v9  ;;  %v5618_v18 = vld [vmem:[%s5592_s29 + $0x10] sm:$0xff]   ;;  %v6868_v32 = vsel %vm5642_vm9, 4294967295, %v6867_v32 }
  0x14   : > { %v6847_v6 = vand.u32 15, %v5574_v4  ;;  %v5581_v7 = vadd.s32 32, %v5574_v4  ;;  %v5584_v8 = vadd.s32 16, %v5574_v4  ;;  %v5599_v11 = vadd.s32 48, %v5574_v4  ;;  %2286 = vrot.lane.b32.xlu1 %v5280_v14, %s5442_s30  ;;  %v5637_v31 = vld [vmem:[%s5592_s29 + $0x18] sm:$0xff]   ;;  %v5665_v47 = vld [vmem:[%s5592_s29 + $0x20] sm:$0xff]  }
  0x15   : > { %vm5594_vm4 = vcmp.ne.s16.totalorder %v4817_v5, 0  ;;  %v5602_v12 = vadd.s32 64, %v5574_v4  ;;  %v5605_v13 = vadd.s32 80, %v5574_v4  ;;  %2284 = vrot.lane.b32.xlu0 %v5281_v16, %s5442_s30  ;;  %v1584_v21 = vshrl.u32 %v5281_v16, 16  ;;  %v5675_v52 = vld [vmem:[%s5592_s29 + $0x28] sm:$0xff]  }
  0x16   : > { %v6864_v10 = vsel %vm5594_vm4, 4294967295, %v6863_v10  ;;  %vm5610_vm5 = vcmp.ne.s32.totalorder %v6847_v6, 0  ;;  %v728_v17 = vand.u32 15, %v5581_v7  ;;  %v2009_v19 = vsel %vm5594_vm4, %v5280_v14, 0 }
  0x17   : > { %v2008_v20 = vsel %vm5594_vm4, %v5281_v16, 0  ;;  %v1587_v22 = vshll.u32 %v5281_v16, 16  ;;  %vm1729_vm6 = vmpackc.low %vm5610_vm5, %vm5610_vm5  ;;  %v2010_v23 = vsel %vm5594_vm4, %v5618_v18, 0  ;;  %v1591_v25 = vshrl.u32 %v5280_v14, 16 }
  0x18   : > { %vm1084_vm7 = vcmp.ne.s32.totalorder %v728_v17, 0  ;;  %v1761_v24 = vsel %vm1729_vm6, 65537, %v5439_v2  ;;  %v1599_v26 = vshrl.u32 %v5618_v18, 16  ;;  %v1586_v27 = vrot.slane %v1584_v21, 7  ;;  %2210 = vrot.lane.b32.xlu1 %v2010_v23, %s5440_s19 }
  0x19   : > { %vm1733_vm8 = vmpackc.low %vm1084_vm7, %vm1084_vm7  ;;  %v4801_v28 = vcombine.low %v1761_v24, %v5572_v3  ;;  %v1602_v29 = vshll.u32 %v5618_v18, 16  ;;  %v1593_v33 = vrot.slane %v1591_v25, 7  ;;  %v714_v36 = vand.u32 15, %v5584_v8  ;;  %2206 = vrot.lane.b32.xlu0 %v2008_v20, %s5440_s19 }
  0x1a   : > { %v1765_v30 = vsel %vm1733_vm8, 65537, %v5439_v2  ;;  %v1601_v34 = vrot.slane %v1599_v26, 7  ;;  %v1589_v37 = vor.u32 %v1587_v22, %v1586_v27  ;;  %v1594_v39 = vshll.u32 %v5280_v14, 16 }
  0x1b   : > { %v4803_v35 = vcombine.low %v1765_v30, %v5572_v3  ;;  %vm5649_vm10 = vcmp.ne.s16.totalorder %v4801_v28, 0  ;;  %v742_v40 = vand.u32 15, %v5599_v11  ;;  %vm1082_vm12 = vcmp.ne.s32.totalorder %v714_v36, 0  ;;  %v5730_v28 = vld [vmem:[%s5592_s29 + $0x38] sm:$0xff]  }
  0x1c   : > { %v1604_v41 = vor.u32 %v1602_v29, %v1601_v34  ;;  %v1607_v43 = vshrl.u32 %v5637_v31, 16  ;;  %v5661_v44 = vsel %vm5642_vm9, 0, %v1589_v37  ;;  %v1596_v45 = vor.u32 %v1594_v39, %v1593_v33  ;;  %vm1731_vm13 = vmpackc.low %vm1082_vm12, %vm1082_vm12 }
  0x1d   : > { %vm5654_vm11 = vcmp.ne.s16.totalorder %v4803_v35, 0  ;;  %vm1086_vm14 = vcmp.ne.s32.totalorder %v742_v40, 0  ;;  %v1610_v46 = vshll.u32 %v5637_v31, 16  ;;  %v1857_v48 = vsel %vm5649_vm10, %v5661_v44, 0  ;;  %2208 = vrot.lane.b32.xlu0 %v2009_v19, %s5440_s19  ;;  %v5756_v40 = vld [vmem:[%s5592_s29 + $0x40] sm:$0xff]  }
  0x1e   : > { %v5671_v49 = vsel %vm6848_vm2, %v1593_v33, %v1604_v41  ;;  %v1763_v50 = vsel %vm1731_vm13, 65537, %v5439_v2  ;;  %v1609_v51 = vrot.slane %v1607_v43, 7  ;;  %vm1735_vm15 = vmpackc.low %vm1086_vm14, %vm1086_vm14  ;;  %2252 = vrot.lane.b32.xlu1 %v1857_v48, %s5443_s0  ;;  %v5680_v53 = vsel %vm6848_vm2, %v1586_v27, %v1596_v45 }
  0x1f   : > { %v4802_v54 = vcombine.low %v1763_v50, %v5572_v3  ;;  %v1767_v55 = vsel %vm1735_vm15, 65537, %v5439_v2  ;;  %v676_v56 = vadd.s32 96, %v5574_v4  ;;  %v1859_v57 = vsel %vm5654_vm11, %v5671_v49, 0 }
  0x20   : > { %v2174_v58 = vsel %vm5654_vm11, %v5680_v53, 0  ;;  %v1612_v59 = vor.u32 %v1610_v46, %v1609_v51  ;;  %v4804_v60 = vcombine.low %v1767_v55, %v5572_v3  ;;  %v756_v62 = vand.u32 15, %v5602_v12  ;;  %v5713_v12 = vld [vmem:[%s5592_s29 + $0x30] sm:$0xff]  }
  0x21   : > { %vm5692_vm0 = vcmp.ne.s16.totalorder %v4802_v54, 0  ;;  %v1615_v63 = vshrl.u32 %v5665_v47, 16  ;;  %v1618_v0 = vshll.u32 %v5665_v47, 16  ;;  %2256 = vrot.lane.b32.xlu0 %v1859_v57, %s5443_s0  ;;  %v770_v19 = vand.u32 15, %v5605_v13  ;;  %v5775_v54 = vld [vmem:[%s5592_s29 + $0x48] sm:$0xff]  }
  0x22   : > { %v1858_v1 = vsel %vm5692_vm0, %v5680_v53, 0  ;;  %v2173_v5 = vsel %vm5692_vm0, %v5661_v44, 0  ;;  %v5706_v9 = vsel %vm6848_vm2, %v1601_v34, %v1612_v59  ;;  %vm5708_vm1 = vcmp.ne.s16.totalorder %v4804_v60, 0 }
  0x23   : > { %2254 = vrot.lane.b32.xlu1 %v1858_v1, %s5443_s0  ;;  %v2175_v15 = vsel %vm5708_vm1, %v5671_v49, 0  ;;  %vm1088_vm3 = vcmp.ne.s32.totalorder %v756_v62, 0  ;;  %v1617_v16 = vrot.slane %v1615_v63, 7  ;;  %v1860_v17 = vsel %vm5708_vm1, %v5706_v9, 0  ;;  %v5792_v63 = vld [vmem:[%s5592_s29 + $0x50] sm:$0xff]  }
  0x24   : > { %vm1737_vm5 = vmpackc.low %vm1088_vm3, %vm1088_vm3  ;;  %v1623_v20 = vshrl.u32 %v5675_v52, 16  ;;  %v1626_v21 = vshll.u32 %v5675_v52, 16  ;;  %v784_v24 = vand.u32 15, %v676_v56  ;;  %vm1090_vm6 = vcmp.ne.s32.totalorder %v770_v19, 0 }
  0x25   : > { %v1620_v22 = vor.u32 %v1618_v0, %v1617_v16  ;;  %v1769_v23 = vsel %vm1737_vm5, 65537, %v5439_v2  ;;  %v1631_v27 = vshrl.u32 %v5713_v12, 16  ;;  %2288 = vrot.lane.b32.xlu0 %v5618_v18, %s5442_s30  ;;  %v2011_v13 = vsel %vm5594_vm4, %v5637_v31, 0  ;;  %vm1739_vm7 = vmpackc.low %vm1090_vm6, %vm1090_vm6 }
  0x26   : > { %v4805_v25 = vcombine.low %v1769_v23, %v5572_v3  ;;  %v1625_v26 = vrot.slane %v1623_v20, 7  ;;  %v2012_v29 = vsel %vm5594_vm4, %v5665_v47, 0  ;;  %vm1092_vm8 = vcmp.ne.s32.totalorder %v784_v24, 0 }
  0x27   : > { %2258 = vrot.lane.b32.xlu1 %v1860_v17, %s5443_s0  ;;  %v1634_v30 = vshll.u32 %v5713_v12, 16  ;;  %v1771_v34 = vsel %vm1739_vm7, 65537, %v5439_v2  ;;  %v1633_v35 = vrot.slane %v1631_v27, 7  ;;  %vm1741_vm12 = vmpackc.low %vm1092_vm8, %vm1092_vm8  ;;  %v5748_v36 = vsel %vm6848_vm2, %v1609_v51, %v1620_v22 }
  0x28   : > { %vm5742_vm10 = vcmp.ne.s16.totalorder %v4805_v25, 0  ;;  %v1628_v18 = vor.u32 %v1626_v21, %v1625_v26  ;;  %v4806_v38 = vcombine.low %v1771_v34, %v5572_v3  ;;  %v1773_v39 = vsel %vm1741_vm12, 65537, %v5439_v2 }
  0x29   : > { %v2176_v37 = vsel %vm5742_vm10, %v5706_v9, 0  ;;  %v2013_v41 = vsel %vm5594_vm4, %v5675_v52, 0  ;;  %v4807_v43 = vcombine.low %v1773_v39, %v5572_v3  ;;  %v678_v45 = vadd.s32 112, %v5574_v4  ;;  %2212 = vrot.lane.b32.xlu0 %v2011_v13, %s5440_s19 }
  0x2a   : > { %v5767_v46 = vsel %vm6848_vm2, %v1617_v16, %v1628_v18  ;;  %vm5769_vm13 = vcmp.ne.s16.totalorder %v4806_v38, 0  ;;  %v1636_v50 = vor.u32 %v1634_v30, %v1633_v35  ;;  %v1639_v51 = vshrl.u32 %v5730_v28, 16 }
  0x2b   : > { %2290 = vrot.lane.b32.xlu1 %v5637_v31, %s5442_s30  ;;  %v1861_v55 = vsel %vm5742_vm10, %v5748_v36, 0  ;;  %v2177_v31 = vsel %vm5769_vm13, %v5748_v36, 0  ;;  %vm5783_vm14 = vcmp.ne.s16.totalorder %v4807_v43, 0  ;;  %v798_v59 = vand.u32 15, %v678_v45 }
  0x2c   : > { %v2178_v57 = vsel %vm5783_vm14, %v5767_v46, 0  ;;  %v1641_v60 = vrot.slane %v1639_v51, 7  ;;  %v1642_v62 = vshll.u32 %v5730_v28, 16  ;;  %v1862_v0 = vsel %vm5769_vm13, %v5767_v46, 0 }
  0x2d   : > { %v2014_v1 = vsel %vm5594_vm4, %v5713_v12, 0  ;;  %v680_v16 = vadd.s32 128, %v5574_v4  ;;  %v1647_v17 = vshrl.u32 %v5756_v40, 16  ;;  %2260 = vrot.lane.b32.xlu0 %v1861_v55, %s5443_s0  ;;  %v5805_v19 = vsel %vm6848_vm2, %v1625_v26, %v1636_v50  ;;  %v5815_v26 = vld [vmem:[%s5592_s29 + $0x58] sm:$0xff]  }
  0x2e   : > { %vm1094_vm15 = vcmp.ne.s32.totalorder %v798_v59, 0  ;;  %v682_v20 = vadd.s32 144, %v5574_v4  ;;  %v1655_v21 = vshrl.u32 %v5775_v54, 16  ;;  %v1650_v24 = vshll.u32 %v5756_v40, 16 }
  0x2f   : > { %2214 = vrot.lane.b32.xlu1 %v2012_v29, %s5440_s19  ;;  %vm1743_vm3 = vmpackc.low %vm1094_vm15, %vm1094_vm15  ;;  %v812_v22 = vand.u32 15, %v680_v16  ;;  %v1649_v23 = vrot.slane %v1647_v17, 7  ;;  %v1658_v25 = vshll.u32 %v5775_v54, 16  ;;  %v1644_v27 = vor.u32 %v1642_v62, %v1641_v60  ;;  %v5842_v17 = vld [vmem:[%s5592_s29 + $0x60] sm:$0xff]  }
  0x30   : > { %v1775_v13 = vsel %vm1743_vm3, 65537, %v5439_v2  ;;  %v826_v30 = vand.u32 15, %v682_v20  ;;  %v5812_v29 = vrot.slane %v1655_v21, 7  ;;  %v684_v34 = vadd.s32 160, %v5574_v4 }
  0x31   : > { %v4808_v18 = vcombine.low %v1775_v13, %v5572_v3  ;;  %vm1096_vm5 = vcmp.ne.s32.totalorder %v812_v22, 0  ;;  %2292 = vrot.lane.b32.xlu0 %v5665_v47, %s5442_s30  ;;  %v1863_v38 = vsel %vm5783_vm14, %v5805_v19, 0  ;;  %v1663_v39 = vshrl.u32 %v5792_v63, 16 }
  0x32   : > { %vm1745_vm6 = vmpackc.low %vm1096_vm5, %vm1096_vm5  ;;  %vm1098_vm7 = vcmp.ne.s32.totalorder %v826_v30, 0  ;;  %v6883_v43 = vmov 0  ;;  %v840_v50 = vand.u32 15, %v684_v34  ;;  %v5832_v47 = vsel %vm6848_vm2, %v1633_v35, %v1644_v27 }
  0x33   : > { %2262 = vrot.lane.b32.xlu1 %v1862_v0, %s5443_s0  ;;  %vm5826_vm8 = vcmp.ne.s16.totalorder %v4808_v18, 0  ;;  %v1777_v45 = vsel %vm1745_vm6, 65537, %v5439_v2  ;;  %vm1747_vm12 = vmpackc.low %vm1098_vm7, %vm1098_vm7  ;;  %v1652_v55 = vor.u32 %v1650_v24, %v1649_v23  ;;  %v1660_v62 = vor.u32 %v1658_v25, %v5812_v29 }
  0x34   : > { %v6884_v43 = vsel %vm5826_vm8, 4294967295, %v6883_v43  ;;  %v4809_v59 = vcombine.low %v1777_v45, %v5572_v3  ;;  %v1779_v0 = vsel %vm1747_vm12, 65537, %v5439_v2  ;;  %vm1100_vm15 = vcmp.ne.s32.totalorder %v840_v50, 0 }
  0x35   : > { %v1666_v16 = vshll.u32 %v5792_v63, 16  ;;  %2216 = vrot.lane.b32.xlu0 %v2013_v41, %s5440_s19  ;;  %v6885_v35 = vmov 0  ;;  %v4810_v20 = vcombine.low %v1779_v0, %v5572_v3  ;;  %vm1749_vm5 = vmpackc.low %vm1100_vm15, %vm1100_vm15  ;;  %v686_v21 = vadd.s32 176, %v5574_v4 }
  0x36   : > { %vm5847_vm3 = vcmp.ne.s16.totalorder %v4809_v59, 0  ;;  %v1671_v22 = vshrl.u32 %v5815_v26, 16  ;;  %v1665_v41 = vrot.slane %v1663_v39, 7  ;;  %v1781_v25 = vsel %vm1749_vm5, 65537, %v5439_v2 }
  0x37   : > { %2294 = vrot.lane.b32.xlu1 %v5675_v52, %s5442_s30  ;;  %v6886_v35 = vsel %vm5847_vm3, 4294967295, %v6885_v35  ;;  %v5859_v52 = vsel %vm6848_vm2, %v1641_v60, %v1652_v55  ;;  %vm5861_vm6 = vcmp.ne.s16.totalorder %v4810_v20, 0  ;;  %v4811_v13 = vcombine.low %v1781_v25, %v5572_v3  ;;  %v5881_v55 = vld [vmem:[%s5592_s29 + $0x68] sm:$0xff]  }
  0x38   : > { %v854_v30 = vand.u32 15, %v686_v21  ;;  %v1673_v34 = vrot.slane %v1671_v22, 7  ;;  %v1674_v45 = vshll.u32 %v5815_v26, 16  ;;  %v5873_v60 = vsel %vm6848_vm2, %v1649_v23, %v1660_v62  ;;  %v5895_v21 = vld [vmem:[%s5592_s29 + $0x70] sm:$0xff]  }
  0x39   : > { %2264 = vrot.lane.b32.xlu0 %v1863_v38, %s5443_s0  ;;  %vm5875_vm7 = vcmp.ne.s16.totalorder %v4811_v13, 0  ;;  %v688_v50 = vadd.s32 192, %v5574_v4  ;;  %v1864_v59 = vsel %vm5826_vm8, %v5832_v47, 0  ;;  %v1668_v0 = vor.u32 %v1666_v16, %v1665_v41 }
  0x3a   : > { %vm1102_vm12 = vcmp.ne.s32.totalorder %v854_v30, 0  ;;  %v1679_v23 = vshrl.u32 %v5842_v17, 16  ;;  %v2015_v38 = vsel %vm5594_vm4, %v5730_v28, 0  ;;  %v2016_v16 = vsel %vm5594_vm4, %v5756_v40, 0 }
  0x3b   : > { %2218 = vrot.lane.b32.xlu1 %v2014_v1, %s5440_s19  ;;  %vm1751_vm15 = vmpackc.low %vm1102_vm12, %vm1102_vm12  ;;  %v868_v20 = vand.u32 15, %v688_v50  ;;  %v1676_v22 = vor.u32 %v1674_v45, %v1673_v34  ;;  %v690_v13 = vadd.s32 208, %v5574_v4  ;;  %v1682_v50 = vshll.u32 %v5842_v17, 16 }
  0x3c   : > { %v1783_v62 = vsel %vm1751_vm15, 65537, %v5439_v2  ;;  %v1681_v30 = vrot.slane %v1679_v23, 7  ;;  %v1687_v6 = vshrl.u32 %v5881_v55, 16  ;;  %v5909_v1 = vsel %vm6848_vm2, %v5812_v29, %v1668_v0 }
  0x3d   : > { %v4812_v25 = vcombine.low %v1783_v62, %v5572_v3  ;;  %2296 = vrot.lane.b32.xlu0 %v5713_v12, %s5442_s30  ;;  %vm1104_vm5 = vcmp.ne.s32.totalorder %v868_v20, 0  ;;  %v882_v62 = vand.u32 15, %v690_v13  ;;  %v692_v12 = vadd.s32 224, %v5574_v4 }
  0x3e   : > { %vm1753_vm15 = vmpackc.low %vm1104_vm5, %vm1104_vm5  ;;  %v1689_v20 = vrot.slane %v1687_v6, 7  ;;  %v1690_v18 = vshll.u32 %v5881_v55, 16  ;;  %vm6893_vm5 = vsmask.f32 256  ;;  %v1695_v6 = vshrl.u32 %v5895_v21, 16 }
  0x3f   : > { %2266 = vrot.lane.b32.xlu1 %v1864_v59, %s5443_s0  ;;  %vm5911_vm12 = vcmp.ne.s16.totalorder %v4812_v25, 0  ;;  %v1785_v23 = vsel %vm1753_vm15, 65537, %v5439_v2  ;;  %vm1106_vm2 = vcmp.ne.s32.totalorder %v882_v62, 0  ;;  %v896_v0 = vand.u32 15, %v692_v12 }
  0x40   : > { %v4813_v29 = vcombine.low %v1785_v23, %v5572_v3  ;;  %v1865_v25 = vsel %vm5847_vm3, %v5859_v52, 0  ;;  %v5929_v13 = vsel %vm6893_vm5, %v1665_v41, %v1676_v22  ;;  %v1684_v59 = vor.u32 %v1682_v50, %v1681_v30  ;;  %vm1755_vm15 = vmpackc.low %vm1106_vm2, %vm1106_vm2 }
  0x41   : > { %2220 = vrot.lane.b32.xlu0 %v2015_v38, %s5440_s19  ;;  %v1787_v38 = vsel %vm1755_vm15, 65537, %v5439_v2  ;;  %vm1108_vm8 = vcmp.ne.s32.totalorder %v896_v0, 0  ;;  %v1692_v12 = vor.u32 %v1690_v18, %v1689_v20  ;;  %v1698_v22 = vshll.u32 %v5895_v21, 16 }
  0x42   : > { %vm5932_vm9 = vcmp.ne.s16.totalorder %v4813_v29, 0  ;;  %v4814_v41 = vcombine.low %v1787_v38, %v5572_v3  ;;  %vm1757_vm2 = vmpackc.low %vm1108_vm8, %vm1108_vm8  ;;  %v1697_v50 = vrot.slane %v1695_v6, 7  ;;  %v5947_v0 = vsel %vm6893_vm5, %v1673_v34, %v1684_v59 }
  0x43   : > { %2298 = vrot.lane.b32.xlu1 %v5730_v28, %s5442_s30  ;;  %v694_v28 = vadd.s32 240, %v5574_v4  ;;  %v2184_v62 = vsel %vm5932_vm9, %v5929_v13, 0  ;;  %v1789_v29 = vsel %vm1757_vm2, 65537, %v5439_v2  ;;  %v1866_v6 = vsel %vm5861_vm6, %v5873_v60, 0  ;;  %vm6898_vm2 = vmmov %vm6893_vm5 }
  0x44   : > { %vm5949_vm15 = vcmp.ne.s16.totalorder %v4814_v41, 0  ;;  %v4815_v18 = vcombine.low %v1789_v29, %v5572_v3  ;;  %v1700_v34 = vor.u32 %v1698_v22, %v1697_v50  ;;  %v1867_v22 = vsel %vm5875_vm7, %v5909_v1, 0  ;;  %v6177_v41 = vld [vmem:[%s6913_s25] ss:$0 sm:$0xff]  ;;  %s5447_s25 = smov 32  }
  0x45   : > { %v910_v24 = vand.u32 15, %v694_v28  ;;  %2268 = vrot.lane.b32.xlu0 %v1865_v25, %s5443_s0  ;;  %v2185_v38 = vsel %vm5949_vm15, %v5947_v0, 0  ;;  %v1868_v29 = vsel %vm5911_vm12, %v5929_v13, 0  ;;  %vm6904_vm11 = vnez %v6884_v43 }
  0x46   : > { %vm5963_vm5 = vcmp.ne.s16.totalorder %v4815_v18, 0  ;;  %v5295_v18 = vld [vmem:[%s5592_s29 + $0x78] sm:$0xff]   ;;  %vm6906_vm0 = vnez %v6886_v35 }
  0x47   : > { %2222 = vrot.lane.b32.xlu1 %v2016_v16, %s5440_s19  ;;  %vm1110_vm8 = vcmp.ne.s32.totalorder %v910_v24, 0  ;;  %v5961_v16 = vsel %vm6898_vm2, %v1681_v30, %v1692_v12  ;;  %v2017_v30 = vsel %vm5594_vm4, %v5775_v54, 0  ;;  %v5979_v12 = vsel %vm6898_vm2, %v1689_v20, %v1700_v34 }
  0x48   : > { %vm1759_vm3 = vmpackc.low %vm1110_vm8, %vm1110_vm8  ;;  %v2186_v25 = vsel %vm5963_vm5, %v5961_v16, 0  ;;  %v2018_v20 = vsel %vm5594_vm4, %v5792_v63, 0  ;;  %v1703_v34 = vshrl.u32 %v5295_v18, 16 }
  0x49   : > { %v1791_v28 = vsel %vm1759_vm3, 65537, %v5439_v2  ;;  %2300 = vrot.lane.b32.xlu0 %v5756_v40, %s5442_s30  ;;  %vm6903_vm3 = vmmov %vm6898_vm2  ;;  %vm2316_vm2 = vcmask 31744  }
  0x4a   : > { %v4816_v24 = vcombine.low %v1791_v28, %v5572_v3  ;;  %v1870_v28 = vsel %vm5949_vm15, %v5961_v16, 0 }
  0x4b   : > { %2270 = vrot.lane.b32.xlu1 %v1866_v6, %s5443_s0  ;;  %v1869_v6 = vsel %vm5932_vm9, %v5947_v0, 0 }
  0x4c   : > { %vm5981_vm8 = vcmp.ne.s16.totalorder %v4816_v24, 0  ;;  %v1705_v24 = vrot.slane %v1703_v34, 7 }
  0x4d   : > { %v2187_v40 = vsel %vm5981_vm8, %v5979_v12, 0  ;;  %2224 = vrot.lane.b32.xlu0 %v2017_v30, %s5440_s19  ;;  %v1706_v30 = vshll.u32 %v5295_v18, 16 }
  0x4f   : > { %2302 = vrot.lane.b32.xlu1 %v5775_v54, %s5442_s30  ;;  %v2019_v54 = vsel %vm5594_vm4, %v5815_v26, 0 }
  0x51   : > { %2272 = vrot.lane.b32.xlu0 %v1867_v22, %s5443_s0  ;;  %v1708_v22 = vor.u32 %v1706_v30, %v1705_v24 }
  0x53   : > { %2226 = vrot.lane.b32.xlu1 %v2018_v20, %s5440_s19  ;;  %v1871_v20 = vsel %vm5963_vm5, %v5979_v12, 0  ;;  %vm3089_vm5 = vcmask 1043456  }
  0x55   : > { %2304 = vrot.lane.b32.xlu0 %v5792_v63, %s5442_s30  ;;  %v2020_v63 = vsel %vm5594_vm4, %v5842_v17, 0 }
  0x57   : > { %2274 = vrot.lane.b32.xlu1 %v1868_v29, %s5443_s0  ;;  %v1709_v29 = vsel %vm6903_vm3, %v1697_v50, %v1708_v22  ;;  %vm2365_vm3 = vcmask 64512  }
  0x59   : > { %2228 = vrot.lane.b32.xlu0 %v2019_v54, %s5440_s19  ;;  %v1872_v54 = vsel %vm5981_vm8, %v1709_v29, 0  ;;  %vm2446_vm8 = vcmask 130048  }
  0x5b   : > { %2306 = vrot.lane.b32.xlu1 %v5815_v26, %s5442_s30  ;;  %v2021_v26 = vsel %vm5594_vm4, %v5881_v55, 0 }
  0x5d   : > { %2276 = vrot.lane.b32.xlu0 %v1869_v6, %s5443_s0 }
  0x5f   : > { %2230 = vrot.lane.b32.xlu1 %v2020_v63, %s5440_s19 }
  0x61   : > { %2308 = vrot.lane.b32.xlu0 %v5842_v17, %s5442_s30  ;;  %v2022_v17 = vsel %vm5594_vm4, %v5895_v21, 0  ;;  %vm2398_vm4 = vcmask 97280  }
  0x63   : > { %2278 = vrot.lane.b32.xlu1 %v1870_v28, %s5443_s0 }
  0x65   : > { %2232 = vrot.lane.b32.xlu0 %v2021_v26, %s5440_s19 }
  0x67   : > { %2310 = vrot.lane.b32.xlu1 %v5881_v55, %s5442_s30 }
  0x69   : > { %2280 = vrot.lane.b32.xlu0 %v1871_v20, %s5443_s0 }
  0x6b   : > { %2234 = vrot.lane.b32.xlu1 %v2022_v17, %s5440_s19  ;;  %s5445_s19 = smov 48  }
  0x6d   : > { %2312 = vrot.lane.b32.xlu0 %v5895_v21, %s5442_s30 }
  0x6f   : > { %2282 = vrot.lane.b32.xlu1 %v1872_v54, %s5443_s0 }
  0x73   : > { %2314 = vrot.lane.b32.xlu1 %v5295_v18, %s5442_s30 }
  0x83   : > { %v2205_v55 = vpop.permute.xlu0 %2204 }
  0x84   : > { %v2319_v50 = vsel %vm2316_vm2, 0, %v2205_v55 }
  0x86   : > { %v2287_v6 = vpop.permute.xlu1 %2286 }
  0x87   : > { %v2285_v63 = vpop.permute.xlu0 %2284 }
  0x8a   : > { %v2211_v34 = vpop.permute.xlu1 %2210 }
  0x8b   : > { %v2207_v28 = vpop.permute.xlu0 %2206  ;;  %v2328_v42 = vsel %vm2316_vm2, %v2175_v15, %v2211_v34 }
  0x8c   : > { %v2322_v18 = vsel %vm2316_vm2, %v2173_v5, %v2207_v28 }
  0x8f   : > { %v2209_v24 = vpop.permute.xlu0 %2208 }
  0x90   : > { %v2253_v30 = vpop.permute.xlu1 %2252  ;;  %v2325_v17 = vsel %vm2316_vm2, %v2174_v58, %v2209_v24 }
  0x91   : > { %v2367_v26 = vsel %vm2365_vm3, %v2319_v50, %v2253_v30 }
  0x92   : > { %v2400_v21 = vsel %vm2398_vm4, %v2367_v26, %v2285_v63 }
  0x93   : > { %5082 = vmatprep.mubr.msk.bf16.mxu0 %vm2446_vm8, %v2400_v21  ;;  %v2257_v22 = vpop.permute.xlu0 %2256 }
  0x94   : > { %v2371_v61 = vsel %vm2365_vm3, %v2325_v17, %v2257_v22  ;;  %v6905_v17 = vsel %vm6904_vm11, %v5805_v19, 0  ;;  %vm3148_vm11 = vsmask.f32 4352 }
  0x95   : > { %v2255_v20 = vpop.permute.xlu1 %2254 }
  0x96   : > { %v2369_v29 = vsel %vm2365_vm3, %v2322_v18, %v2255_v20 }
  0x97   : > { %v2402_v54 = vsel %vm2398_vm4, %v2369_v29, %v2287_v6  ;;  %v2289_v55 = vpop.permute.xlu0 %2288 }
  0x98   : > { %5083 = vmatmul.mubr.msk.bf16.vlgmr.msra.gmra.mxu0 %vm2446_vm8, %v2402_v54  ;;  %v2404_v5 = vsel %vm2398_vm4, %v2371_v61, %v2289_v55 }
  0x99   : > { %v2259_v44 = vpop.permute.xlu1 %2258  ;;  %5086 = vmatprep.mubr.msk.bf16.mxu0 %vm2446_vm8, %v2404_v5 }
  0x9a   : > { %v2373_v53 = vsel %vm2365_vm3, %v2328_v42, %v2259_v44  ;;  %v6907_v44 = vsel %vm6906_vm0, %v5832_v47, 0  ;;  %vm3168_vm0 = vcmask 1044480  }
  0x9b   : > { %v2213_v58 = vpop.permute.xlu0 %2212 }
  0x9c   : > { %v2331_v14 = vsel %vm2316_vm2, %v2176_v37, %v2213_v58  ;;  %v6908_v58 = vsel %vm5861_vm6, %v5859_v52, 0 }
  0x9d   : > { %v2291_v6 = vpop.permute.xlu1 %2290 }
  0x9e   : > { %v2406_v63 = vsel %vm2398_vm4, %v2373_v53, %v2291_v6 }
  0x9f   : > { %v2261_v28 = vpop.permute.xlu0 %2260 }
  0xa0   : > { %5087 = vmatmul.mubr.msk.bf16.gmra.mxu0 %vm2446_vm8, %v2406_v63  ;;  %v2375_v49 = vsel %vm2365_vm3, %v2331_v14, %v2261_v28 }
  0xa1   : > { %v2215_v50 = vpop.permute.xlu1 %2214 }
  0xa2   : > { %v2334_v30 = vsel %vm2316_vm2, %v2177_v31, %v2215_v50 }
  0xa3   : > { %v2293_v24 = vpop.permute.xlu0 %2292 }
  0xa4   : > { %v2408_v34 = vsel %vm2398_vm4, %v2375_v49, %v2293_v24  ;;  %v6909_v49 = vsel %vm5875_vm7, %v5873_v60, 0 }
  0xa5   : > { %v2263_v15 = vpop.permute.xlu1 %2262  ;;  %5090 = vmatprep.mubr.msk.bf16.mxu0 %vm2446_vm8, %v2408_v34 }
  0xa6   : > { %v2377_v33 = vsel %vm2365_vm3, %v2334_v30, %v2263_v15  ;;  %v6910_v30 = vsel %vm5911_vm12, %v5909_v1, 0 }
  0xa7   : > { %v2217_v26 = vpop.permute.xlu0 %2216 }
  0xa8   : > { %v2337_v48 = vsel %vm2316_vm2, %v2178_v57, %v2217_v26 }
  0xa9   : > { %v2295_v9 = vpop.permute.xlu1 %2294 }
  0xaa   : > { %v2410_v37 = vsel %vm2398_vm4, %v2377_v33, %v2295_v9 }
  0xab   : > { %5091 = vmatmul.mubr.msk.bf16.gmra.mxu0 %vm2446_vm8, %v2410_v37  ;;  %v2265_v21 = vpop.permute.xlu0 %2264 }
  0xac   : > { %v2379_v36 = vsel %vm2365_vm3, %v2337_v48, %v2265_v21 }
  0xad   : > { %v2219_v18 = vpop.permute.xlu1 %2218 }
  0xae   : > { %v2340_v29 = vsel %vm2316_vm2, %v6905_v17, %v2219_v18 }
  0xaf   : > { %v2297_v22 = vpop.permute.xlu0 %2296 }
  0xb0   : > { %v2412_v20 = vsel %vm2398_vm4, %v2379_v36, %v2297_v22 }
  0xb1   : > { %v2267_v31 = vpop.permute.xlu1 %2266  ;;  %5094 = vmatprep.mubr.msk.bf16.mxu0 %vm2446_vm8, %v2412_v20 }
  0xb2   : > { %v2381_v56 = vsel %vm2365_vm3, %v2340_v29, %v2267_v31 }
  0xb3   : > { %v2221_v54 = vpop.permute.xlu0 %2220 }
  0xb4   : > { %v2343_v43 = vsel %vm2316_vm2, %v6907_v44, %v2221_v54 }
  0xb5   : > { %v2299_v46 = vpop.permute.xlu1 %2298 }
  0xb6   : > { %v2414_v57 = vsel %vm2398_vm4, %v2381_v56, %v2299_v46 }
  0xb7   : > { %5095 = vmatmul.mubr.msk.bf16.gmra.mxu0 %vm2446_vm8, %v2414_v57  ;;  %v2269_v61 = vpop.permute.xlu0 %2268 }
  0xb8   : > { %v2383_v19 = vsel %vm2365_vm3, %v2343_v43, %v2269_v61 }
  0xb9   : > { %v2223_v55 = vpop.permute.xlu1 %2222 }
  0xba   : > { %v2346_v6 = vsel %vm2316_vm2, %v6908_v58, %v2223_v55 }
  0xbb   : > { %v2301_v5 = vpop.permute.xlu0 %2300 }
  0xbc   : > { %v2416_v53 = vsel %vm2398_vm4, %v2383_v19, %v2301_v5 }
  0xbd   : > { %v2271_v42 = vpop.permute.xlu1 %2270  ;;  %5098 = vmatprep.mubr.msk.bf16.mxu0 %vm2446_vm8, %v2416_v53 }
  0xbe   : > { %v2385_v35 = vsel %vm2365_vm3, %v2346_v6, %v2271_v42 }
  0xbf   : > { %v2225_v63 = vpop.permute.xlu0 %2224 }
  0xc0   : > { %v2349_v27 = vsel %vm2316_vm2, %v6909_v49, %v2225_v63 }
  0xc1   : > { %v2303_v47 = vpop.permute.xlu1 %2302 }
  0xc2   : > { %v2418_v28 = vsel %vm2398_vm4, %v2385_v35, %v2303_v47 }
  0xc3   : > { %5099 = vmatmul.mubr.msk.bf16.gmra.mxu0 %vm2446_vm8, %v2418_v28  ;;  %v2273_v50 = vpop.permute.xlu0 %2272 }
  0xc4   : > { %v2387_v52 = vsel %vm2365_vm3, %v2349_v27, %v2273_v50 }
  0xc5   : > { %v2227_v14 = vpop.permute.xlu1 %2226 }
  0xc6   : > { %v2352_v33 = vsel %vm2316_vm2, %v6910_v30, %v2227_v14 }
  0xc7   : > { %v2305_v24 = vpop.permute.xlu0 %2304 }
  0xc8   : > { %v2420_v34 = vsel %vm2398_vm4, %v2387_v52, %v2305_v24 }
  0xc9   : > { %v2275_v15 = vpop.permute.xlu1 %2274  ;;  %5102 = vmatprep.mubr.msk.bf16.mxu0 %vm2446_vm8, %v2420_v34 }
  0xca   : > { %v2389_v39 = vsel %vm2365_vm3, %v2352_v33, %v2275_v15 }
  0xcb   : > { %v2229_v26 = vpop.permute.xlu0 %2228 }
  0xcc   : > { %v2355_v45 = vsel %vm2316_vm2, %v2184_v62, %v2229_v26 }
  0xcd   : > { %v2307_v60 = vpop.permute.xlu1 %2306 }
  0xce   : > { %v2422_v9 = vsel %vm2398_vm4, %v2389_v39, %v2307_v60 }
  0xcf   : > { %5103 = vmatmul.mubr.msk.bf16.gmra.mxu0 %vm2446_vm8, %v2422_v9  ;;  %v2277_v37 = vpop.permute.xlu0 %2276 }
  0xd0   : > { %v2391_v1 = vsel %vm2365_vm3, %v2355_v45, %v2277_v37 }
  0xd1   : > { %v2231_v21 = vpop.permute.xlu1 %2230 }
  0xd2   : > { %v2358_v22 = vsel %vm2316_vm2, %v2185_v38, %v2231_v21 }
  0xd3   : > { %v2309_v18 = vpop.permute.xlu0 %2308 }
  0xd4   : > { %v2424_v36 = vsel %vm2398_vm4, %v2391_v1, %v2309_v18 }
  0xd5   : > { %v2279_v48 = vpop.permute.xlu1 %2278  ;;  %5106 = vmatprep.mubr.msk.bf16.mxu0 %vm2446_vm8, %v2424_v36 }
  0xd6   : > { %v2393_v23 = vsel %vm2365_vm3, %v2358_v22, %v2279_v48 }
  0xd7   : > { %v2233_v31 = vpop.permute.xlu0 %2232 }
  0xd8   : > { %v2361_v51 = vsel %vm2316_vm2, %v2186_v25, %v2233_v31  ;;  %v5299_v25 = vld [vmem:[%s6912_s22 + $0x4] ss:$8 sps:$4 sm:$0xff]  }
  0xd9   : > { %v2311_v13 = vpop.permute.xlu1 %2310  ;;  %2768 = vmatprep.mubr.bf16.mxu1 %v5299_v25 }
  0xda   : > { %v2426_v62 = vsel %vm2398_vm4, %v2393_v23, %v2311_v13 }
  0xdb   : > { %5107 = vmatmul.mubr.msk.bf16.gmra.mxu0 %vm2446_vm8, %v2426_v62  ;;  %v2281_v20 = vpop.permute.xlu0 %2280 }
  0xdc   : > { %v2395_v0 = vsel %vm2365_vm3, %v2361_v51, %v2281_v20 }
  0xdd   : > { %v2235_v17 = vpop.permute.xlu1 %2234 }
  0xde   : > { %v2364_v54 = vsel %vm2316_vm2, %v2187_v40, %v2235_v17 }
  0xdf   : > { %v2313_v29 = vpop.permute.xlu0 %2312 }
  0xe0   : > { %v2428_v56 = vsel %vm2398_vm4, %v2395_v0, %v2313_v29 }
  0xe1   : > { %v2283_v38 = vpop.permute.xlu1 %2282  ;;  %5110 = vmatprep.mubr.msk.bf16.mxu0 %vm2446_vm8, %v2428_v56 }
  0xe2   : > { %v2397_v59 = vsel %vm2365_vm3, %v2364_v54, %v2283_v38 }
  0xe5   : > { %v2315_v46 = vpop.permute.xlu1 %2314 }
  0xe6   : > { %v2430_v16 = vsel %vm2398_vm4, %v2397_v59, %v2315_v46  ;;  %vm5444_vm4 = vmmov 0  }
  0xe7   : > { %5111 = vmatmul.mubr.msk.bf16.gmra.mxu0 %vm2446_vm8, %v2430_v16  ;;  %vm3104_vm1 = vmpackc.low %vm5444_vm4, %vm5444_vm4 }
 0x158   : > { %v5084_v57 = vpop.f32.mrf.mxu0 }
 0x159   : > { %v2522_v40 = vadd.f32 %v5084_v57, %v6177_v41 }
 0x15a   : > { %v2513_v12 = vpop.f32.mrf.mxu0 }
 0x15b   : > { %v2514_v55 = vadd.f32 %v6177_v41, %v2513_v12  ;;  %v2642_v19 = vmax.f32 %v2522_v40, 0.0 }
 0x15c   : > { %v5085_v61 = vpop.f32.mrf.mxu0 }
 0x15d   : > { %v2525_v44 = vadd.f32 %v5085_v61, %v6177_v41  ;;  %v2640_v58 = vmax.f32 %v2514_v55, 0.0 }
 0x15e   : > { %v2516_v43 = vpop.f32.mrf.mxu0 }
 0x15f   : > { %v2643_v5 = vmax.f32 %v2525_v44, 0.0  ;;  %v2517_v42 = vadd.f32 %v6177_v41, %v2516_v43 }
 0x160   : > { %v5088_v53 = vpop.f32.mrf.mxu0 }
 0x161   : > { %v6183_v6 = vpack.c.bf16 %v2643_v5, %v2642_v19  ;;  %v2641_v35 = vmax.f32 %v2517_v42, 0.0  ;;  %v2538_v28 = vadd.f32 %v5088_v53, %v6177_v41 }
 0x162   : > { %v2529_v63 = vpop.f32.mrf.mxu0 }
 0x163   : > { %v6185_v47 = vpack.c.bf16 %v2641_v35, %v2640_v58  ;;  %v2530_v14 = vadd.f32 %v6177_v41, %v2529_v63  ;;  %v2646_v52 = vmax.f32 %v2538_v28, 0.0 }
 0x164   : > { %v5089_v50 = vpop.f32.mrf.mxu0 }
 0x165   : > { %v2541_v49 = vadd.f32 %v5089_v50, %v6177_v41  ;;  %v2644_v34 = vmax.f32 %v2530_v14, 0.0 }
 0x166   : > { %v2532_v27 = vpop.f32.mrf.mxu0 }
 0x167   : > { %v2647_v24 = vmax.f32 %v2541_v49, 0.0  ;;  %v2533_v15 = vadd.f32 %v6177_v41, %v2532_v27 }
 0x169   : > { %v6191_v30 = vpack.c.bf16 %v2647_v24, %v2646_v52  ;;  %v2645_v33 = vmax.f32 %v2533_v15, 0.0 }
 0x16b   : > { %v6193_v39 = vpack.c.bf16 %v2645_v33, %v2644_v34  ;;  %v5092_v26 = vpop.f32.mrf.mxu0 }
 0x16c   : > { %v2554_v24 = vadd.f32 %v5092_v26, %v6177_v41 }
 0x16d   : > { %v2545_v60 = vpop.f32.mrf.mxu0 }
 0x16f   : > { %v5093_v9 = vpop.f32.mrf.mxu0 }
 0x170   : > { %v2557_v28 = vadd.f32 %v5093_v9, %v6177_v41 }
 0x171   : > { %v2548_v37 = vpop.f32.mrf.mxu0 }
 0x177   : > { %v5096_v21 = vpop.f32.mrf.mxu0 }
 0x178   : > { %v2570_v46 = vadd.f32 %v5096_v21, %v6177_v41  ;;  %v2651_v21 = vmax.f32 %v2557_v28, 0.0  ;;  %v5309_v28 = vld [vmem:[%s6914_s28 + $0x18] sm:$0xff]  }
 0x179   : > { %v2561_v45 = vpop.f32.mrf.mxu0 }
 0x17a   : > { %v2654_v5 = vmax.f32 %v2570_v46, 0.0  ;;  %v2562_v42 = vadd.f32 %v6177_v41, %v2561_v45  ;;  %v2549_v45 = vadd.f32 %v6177_v41, %v2548_v37 }
 0x17b   : > { %v5097_v1 = vpop.f32.mrf.mxu0 }
 0x17c   : > { %v2573_v56 = vadd.f32 %v5097_v1, %v6177_v41  ;;  %v2652_v15 = vmax.f32 %v2562_v42, 0.0 }
 0x17d   : > { %v2564_v18 = vpop.f32.mrf.mxu0 }
 0x17e   : > { %v2655_v12 = vmax.f32 %v2573_v56, 0.0  ;;  %v2565_v40 = vadd.f32 %v6177_v41, %v2564_v18 }
 0x180   : > { %v2653_v50 = vmax.f32 %v2565_v40, 0.0  ;;  %v2687_v14 = vpack.c.bf16 %v2655_v12, %v2654_v5  ;;  %v6257_v5 = vadd.s32 8, %v5574_v4 }
 0x182   : > { %v2686_v1 = vpack.c.bf16 %v2653_v50, %v2652_v15  ;;  %v2816_v42 = vand.u32 7, %v6257_v5  ;;  %v667_v50 = vadd.s32 24, %v5574_v4  ;;  %v5310_v15 = vld [vmem:[%s6914_s28 + $0x10] sm:$0xff]  }
 0x183   : > { %v6195_v48 = vpop.f32.mrf.mxu0 }
 0x184   : > { %v2586_v12 = vadd.f32 %v6195_v48, %v6177_v41  ;;  %vm2902_vm10 = vcmp.ne.s32.totalorder %v2816_v42, 0 }
 0x185   : > { %v6197_v36 = vpop.f32.mrf.mxu0  ;;  %vm3050_vm13 = vmpackc.low %vm2902_vm10, %vm2902_vm10 }
 0x186   : > { %vm6334_vm10 = vmand %vm3168_vm0, %vm3148_vm11 }
 0x187   : > { %v6199_v22 = vpop.f32.mrf.mxu0 }
 0x189   : > { %v6201_v23 = vpop.f32.mrf.mxu0 }
 0x18f   : > { %v5104_v31 = vpop.f32.mrf.mxu0 }
 0x190   : > { %v2602_v26 = vadd.f32 %v5104_v31, %v6177_v41 }
 0x191   : > { %v2593_v13 = vpop.f32.mrf.mxu0 }
 0x193   : > { %v5105_v62 = vpop.f32.mrf.mxu0 }
 0x194   : > { %v2605_v9 = vadd.f32 %v5105_v62, %v6177_v41  ;;  %v2594_v62 = vadd.f32 %v6177_v41, %v2593_v13  ;;  %v2658_v13 = vmax.f32 %v2586_v12, 0.0 }
 0x195   : > { %v2596_v20 = vpop.f32.mrf.mxu0 }
 0x196   : > { %v2660_v40 = vmax.f32 %v2594_v62, 0.0 }
 0x19b   : > { %v5108_v17 = vpop.f32.mrf.mxu0 }
 0x19c   : > { %v2618_v53 = vadd.f32 %v5108_v17, %v6177_v41 }
 0x19d   : > { %v2609_v51 = vpop.f32.mrf.mxu0 }
 0x19e   : > { %v2666_v34 = vmax.f32 %v2618_v53, 0.0  ;;  %v2610_v33 = vadd.f32 %v6177_v41, %v2609_v51  ;;  %v2663_v51 = vmax.f32 %v2605_v9, 0.0  ;;  %v3112_v53 = vsel %vm3104_vm1, 65537, %v5439_v2 }
 0x19f   : > { %v5109_v0 = vpop.f32.mrf.mxu0 }
 0x1a0   : > { %v2621_v55 = vadd.f32 %v5109_v0, %v6177_v41  ;;  %v2650_v0 = vmax.f32 %v2554_v24, 0.0  ;;  %v2830_v24 = vand.u32 7, %v667_v50 }
 0x1a1   : > { %v2612_v29 = vpop.f32.mrf.mxu0 }
 0x1a2   : > { %v2667_v49 = vmax.f32 %v2621_v55, 0.0  ;;  %v2613_v27 = vadd.f32 %v6177_v41, %v2612_v29  ;;  %v2546_v29 = vadd.f32 %v6177_v41, %v2545_v60  ;;  %v2685_v56 = vpack.c.bf16 %v2651_v21, %v2650_v0 }
 0x1a3   : > { %v2589_v60 = vadd.f32 %v6199_v22, %v6177_v41  ;;  %vm6285_vm12 = vcmp.ne.s32.totalorder %v2830_v24, 0 }
 0x1a4   : > { %v2693_v18 = vpack.c.bf16 %v2667_v49, %v2666_v34  ;;  %v2665_v17 = vmax.f32 %v2613_v27, 0.0  ;;  %v2648_v37 = vmax.f32 %v2546_v29, 0.0  ;;  %v2823_v27 = vand.u32 7, %v5584_v8  ;;  %vm3052_vm2 = vmpackc.low %vm6285_vm12, %vm6285_vm12 }
 0x1a5   : > { %v4877_v8 = vcombine.low %v3112_v53, %v5572_v3  ;;  %v669_v29 = vadd.s32 40, %v5574_v4 }
 0x1a6   : > { %vm6280_vm7 = vcmp.ne.s32.totalorder %v2823_v27, 0  ;;  %v2851_v27 = vand.u32 7, %v5599_v11 }
 0x1a7   : > { %v5112_v38 = vpop.f32.mrf.mxu0  ;;  %vm3051_vm15 = vmpackc.low %vm6280_vm7, %vm6280_vm7  ;;  %vm6300_vm3 = vcmp.ne.s16.totalorder %v4877_v8, 0 }
 0x1a8   : > { %v2634_v59 = vadd.f32 %v5112_v38, %v6177_v41  ;;  %v2664_v38 = vmax.f32 %v2610_v33, 0.0  ;;  %vm6386_vm0 = vcmp.ne.s32.totalorder %v2851_v27, 0 }
 0x1a9   : > { %v2625_v54 = vpop.f32.mrf.mxu0 }
 0x1aa   : > { %v2626_v25 = vadd.f32 %v6177_v41, %v2625_v54  ;;  %v2670_v44 = vmax.f32 %v2634_v59, 0.0  ;;  %v2649_v54 = vmax.f32 %v2549_v45, 0.0  ;;  %v2597_v59 = vadd.f32 %v6177_v41, %v2596_v20 }
 0x1ab   : > { %v5113_v16 = vpop.f32.mrf.mxu0  ;;  %v2692_v46 = vpack.c.bf16 %v2665_v17, %v2664_v38  ;;  %v2659_v20 = vmax.f32 %v2589_v60, 0.0  ;;  %v2844_v60 = vand.u32 7, %v669_v29 }
 0x1ac   : > { %v2637_v57 = vadd.f32 %v5113_v16, %v6177_v41  ;;  %v2668_v58 = vmax.f32 %v2626_v25, 0.0  ;;  %v2662_v16 = vmax.f32 %v2602_v26, 0.0  ;;  %v2684_v25 = vpack.c.bf16 %v2649_v54, %v2648_v37 }
 0x1ad   : > { %v2628_v61 = vpop.f32.mrf.mxu0  ;;  %v2661_v31 = vmax.f32 %v2597_v59, 0.0  ;;  %v2689_v22 = vpack.c.bf16 %v2659_v20, %v2658_v13  ;;  %v5312_v59 = vld [vmem:[%s6914_s28] sm:$0xff]  }
 0x1ae   : > { %v2671_v43 = vmax.f32 %v2637_v57, 0.0  ;;  %v2629_v19 = vadd.f32 %v6177_v41, %v2628_v61  ;;  %v2691_v57 = vpack.c.bf16 %v2663_v51, %v2662_v16  ;;  %v2581_v61 = vadd.f32 %v6177_v41, %v6201_v23  ;;  %v5297_v23 = vld [vmem:[%s6912_s22] ss:$8 sps:$4 sm:$0xff]  }
 0x1af   : > { %v2690_v55 = vpack.c.bf16 %v2661_v31, %v2660_v40  ;;  %v2837_v51 = vand.u32 7, %v5581_v7  ;;  %v3060_v7 = vsel %vm3052_vm2, 65537, %v5439_v2  ;;  %vm6936_vm2 = vnez %v6864_v10 }
 0x1b0   : > { %v2669_v35 = vmax.f32 %v2629_v19, 0.0  ;;  %v2695_v63 = vpack.c.bf16 %v2671_v43, %v2670_v44  ;;  %v2578_v44 = vadd.f32 %v6177_v41, %v6197_v36  ;;  %v2657_v43 = vmax.f32 %v2581_v61, 0.0  ;;  %v5300_v41 = vld [vmem:[%s6912_s22 + $0x14] ss:$8 sps:$4 sm:$0xff]   ;;  %v5308_v36 = vld [vmem:[%s6912_s22 + $0x30] ss:$8 sps:$4 sm:$0xff]  }
 0x1b1   : > { %vm6328_vm1 = vcmp.ne.s32.totalorder %v2837_v51, 0 }
 0x1b2   : > { %v2694_v52 = vpack.c.bf16 %v2669_v35, %v2668_v58  ;;  %4984 = vmatprep.subr.bf16.mxu1 %v2695_v63  ;;  %v2656_v19 = vmax.f32 %v2578_v44, 0.0  ;;  %v3058_v58 = vsel %vm3050_vm13, 65537, %v5439_v2  ;;  %v2809_v63 = vand.u32 7, %v5574_v4  ;;  %vm3053_vm7 = vmpackc.low %vm6328_vm1, %vm6328_vm1 }
 0x1b3   : > { %4985 = vmatpush3.bf16.msra.mxu1 %v2687_v14  ;;  %v4881_v35 = vcombine.low %v3112_v53, %v3058_v58  ;;  %v3061_v8 = vsel %vm3053_vm7, 65537, %v5439_v2  ;;  %vm3055_vm1 = vmpackc.low %vm6386_vm0, %vm6386_vm0 }
 0x1b4   : > { %4986 = vmatprep.subr.bf16.mxu1 %v2694_v52  ;;  %v2688_v48 = vpack.c.bf16 %v2657_v43, %v2656_v19  ;;  %vm6269_vm14 = vcmp.ne.s32.totalorder %v2809_v63, 0 }
 0x1b5   : > { %vm3049_vm6 = vmpackc.low %vm6269_vm14, %vm6269_vm14  ;;  %vm6338_vm13 = vcmp.ne.s16.totalorder %v4881_v35, 0  ;;  %vm6343_vm14 = vcmp.ne.s32.totalorder %v2844_v60, 0 }
 0x1b6   : > { %v3057_v17 = vsel %vm3049_vm6, 65537, %v5439_v2  ;;  %vm6933_vm6 = vnez %v6868_v32  ;;  %vm3054_vm12 = vmpackc.low %vm6343_vm14, %vm6343_vm14 }
 0x1b7   : > { %4987 = vmatpush3.bf16.msra.mxu1 %v2686_v1  ;;  %v5311_v1 = vld [vmem:[%s6914_s28 + $0x8] sm:$0xff]   ;;  %v4873_v54 = vcombine.low %v3057_v17, %v3058_v58  ;;  %v671_v58 = vadd.s32 56, %v5574_v4  ;;  %v3062_v45 = vsel %vm3054_vm12, 65537, %v5439_v2 }
 0x1b8   : > { %4988 = vmatprep.subr.bf16.mxu1 %v2693_v18 }
 0x1b9   : > { %vm6324_vm9 = vcmp.ne.s16.totalorder %v4873_v54, 0 }
 0x1bb   : > { %4989 = vmatpush3.bf16.msra.mxu1 %v2685_v56 }
 0x1bc   : > { %4990 = vmatprep.subr.bf16.mxu1 %v2692_v46 }
 0x1bf   : > { %4991 = vmatpush3.bf16.msra.mxu1 %v2684_v25  ;;  %v3059_v25 = vsel %vm3051_vm15, 65537, %v5439_v2 }
 0x1c0   : > { %4992 = vmatprep.subr.bf16.mxu1 %v2691_v57 }
 0x1c3   : > { %4993 = vmatpush3.bf16.msra.mxu1 %v6191_v30  ;;  %v5302_v30 = vld [vmem:[%s6912_s22 + $0x10] ss:$8 sps:$4 sm:$0xff]  }
 0x1c4   : > { %4994 = vmatprep.subr.bf16.mxu1 %v2690_v55 }
 0x1c7   : > { %4995 = vmatpush3.bf16.msra.mxu1 %v6193_v39  ;;  %v5306_v39 = vld [vmem:[%s6912_s22 + $0x34] ss:$8 sps:$4 sm:$0xff]  }
 0x1c8   : > { %4996 = vmatprep.subr.bf16.mxu1 %v2689_v22 }
 0x1cb   : > { %4997 = vmatpush3.bf16.msra.mxu1 %v6183_v6  ;;  %v5303_v6 = vld [vmem:[%s6912_s22 + $0x24] ss:$8 sps:$4 sm:$0xff]  }
 0x1cc   : > { %4998 = vmatprep.subr.bf16.mxu1 %v2688_v48 }
 0x1cf   : > { %4999 = vmatpush3.bf16.msra.mxu1 %v6185_v47  ;;  %v5305_v47 = vld [vmem:[%s6912_s22 + $0x20] ss:$8 sps:$4 sm:$0xff]  }
 0x1d0   : > { %5114 = vmatprep.subr.bf16.mxu1 %v5309_v28 }
 0x1d2   : > { %2769 = vmatmul.mubr.bf16.vlgmr.msra.gmra.mxu1 %v5297_v23 }
 0x1d3   : > { %2776 = vmatprep.mubr.bf16.mxu1 %v5300_v41  ;;  %5115 = vmatpush3.bf16.msra.mxu1 %v5309_v28 }
 0x1d4   : > { %5116 = vmatprep.subr.bf16.mxu1 %v5310_v15 }
 0x1d7   : > { %5117 = vmatpush3.bf16.msra.mxu1 %v5310_v15 }
 0x1d8   : > { %5118 = vmatprep.subr.bf16.mxu1 %v5311_v1 }
 0x1da   : > { %2777 = vmatmul.mubr.bf16.gmra.mxu1 %v5302_v30  ;;  %v4874_v30 = vcombine.low %v3059_v25, %v3060_v7 }
 0x1db   : > { %2784 = vmatprep.mubr.bf16.mxu1 %v5303_v6  ;;  %5119 = vmatpush3.bf16.msra.mxu1 %v5311_v1  ;;  %v2858_v1 = vand.u32 7, %v671_v58 }
 0x1dc   : > { %5120 = vmatprep.subr.bf16.mxu1 %v5312_v59  ;;  %vm6366_vm15 = vcmp.ne.s16.totalorder %v4874_v30, 0 }
 0x1df   : > { %5121 = vmatpush3.bf16.msra.mxu1 %v5312_v59 }
 0x1e2   : > { %2785 = vmatmul.mubr.bf16.gmra.mxu1 %v5305_v47 }
 0x1e3   : > { %2792 = vmatprep.mubr.bf16.mxu1 %v5306_v39 }
 0x1ea   : > { %2793 = vmatmul.mubr.bf16.gmra.mxu1 %v5308_v36 }
 0x292   : > { %v5000_v14 = vpop.f32.mrf.mxu1 }
 0x294   : > { %v5001_v52 = vpop.f32.mrf.mxu1 }
 0x295   : > { %v5002_v9 = vadd.f32 %v5001_v52, %v5000_v14 }
 0x296   : > { %v5003_v34 = vpop.f32.mrf.mxu1 }
 0x298   : > { %v5004_v21 = vpop.f32.mrf.mxu1 }
 0x299   : > { %v5005_v18 = vadd.f32 %v5004_v21, %v5003_v34 }
 0x29a   : > { %v5006_v0 = vpop.f32.mrf.mxu1 }
 0x29b   : > { %v2801_v26 = vpack.c.bf16 %v5005_v18, %v5002_v9 }
 0x29c   : > { %v5007_v38 = vpop.f32.mrf.mxu1 }
 0x29d   : > { %3231 = vrot.lane.b32.xlu0 %v2801_v26, %s5445_s19  ;;  %v3090_v46 = vrot.slane %v2801_v26, 4  ;;  %v3014_v37 = vshrl.u32 %v2801_v26, 16  ;;  %v3017_v16 = vshll.u32 %v2801_v26, 16  ;;  %v5008_v43 = vadd.f32 %v5007_v38, %v5006_v0 }
 0x29e   : > { %v5009_v62 = vpop.f32.mrf.mxu1 }
 0x29f   : > { %v3102_v57 = vsel %vm3089_vm5, 0, %v3090_v46  ;;  %v3016_v31 = vrot.slane %v3014_v37, 7  ;;  %v3149_v12 = vrot.slane %v3014_v37, 3  ;;  %v3150_v40 = vrot.slane %v3017_v16, 4 }
 0x2a0   : > { %v5010_v20 = vpop.f32.mrf.mxu1  ;;  %v3136_v61 = vsel %vm6300_vm3, %v3102_v57, 0  ;;  %vm6937_vm3 = vsmask.f32 256 }
 0x2a1   : > { %v5011_v19 = vadd.f32 %v5010_v20, %v5009_v62  ;;  %3211 = vrot.lane.b32.xlu0 %v3136_v61, %s5446_s2  ;;  %v3019_v48 = vor.u32 %v3017_v16, %v3016_v31  ;;  %v3151_v23 = vor.u32 %v3150_v40, %v3149_v12  ;;  %vm6944_vm14 = vmmov %vm6937_vm3 }
 0x2a2   : > { %v5012_v41 = vpop.f32.mrf.mxu1  ;;  %vm6947_vm12 = vmmov %vm6937_vm3 }
 0x2a3   : > { %v2802_v47 = vpack.c.bf16 %v5011_v19, %v5008_v43  ;;  %v3048_v39 = vsel %vm6933_vm6, 0, %v3019_v48  ;;  %v3170_v36 = vsel %vm6334_vm10, 0, %v3151_v23  ;;  %v3063_v43 = vsel %vm3055_vm1, 65537, %v5439_v2 }
 0x2a4   : > { %v5013_v42 = vpop.f32.mrf.mxu1  ;;  %v3081_v53 = vsel %vm6324_vm9, %v3048_v39, 0  ;;  %v6359_v35 = vsel %vm6338_vm13, %v3170_v36, 0  ;;  %vm6395_vm9 = vcmp.ne.s32.totalorder %v2858_v1, 0 }
 0x2a5   : > { %v3021_v63 = vshrl.u32 %v2802_v47, 16  ;;  %3233 = vrot.lane.b32.xlu1 %v2802_v47, %s5445_s19  ;;  %3223 = vrot.lane.b32.xlu0 %v3081_v53, %s5447_s25  ;;  %v3091_v28 = vrot.slane %v2802_v47, 4  ;;  %v3024_v50 = vshll.u32 %v2802_v47, 16  ;;  %v5014_v11 = vadd.f32 %v5013_v42, %v5012_v41  ;;  %vm3056_vm10 = vmpackc.low %vm6395_vm9, %vm6395_vm9 }
 0x2a6   : > { %v5015_v14 = vpop.f32.mrf.mxu1  ;;  %v3064_v19 = vsel %vm3056_vm10, 65537, %v5439_v2 }
 0x2a7   : > { %v3092_v52 = vsel %vm3089_vm5, %v3090_v46, %v3091_v28  ;;  %v3023_v24 = vrot.slane %v3021_v63, 7  ;;  %v3152_v15 = vrot.slane %v3021_v63, 3  ;;  %v3153_v34 = vrot.slane %v3024_v50, 4 }
 0x2a8   : > { %v5016_v33 = vpop.f32.mrf.mxu1  ;;  %v3137_v21 = vsel %vm6936_vm2, %v3092_v52, 0  ;;  %v4875_v46 = vcombine.low %v3061_v8, %v3062_v45  ;;  %v4876_v42 = vcombine.low %v3063_v43, %v3064_v19 }
 0x2a9   : > { %v5017_v9 = vadd.f32 %v5016_v33, %v5015_v14  ;;  %3213 = vrot.lane.b32.xlu1 %v3137_v21, %s5446_s2  ;;  %v3026_v18 = vor.u32 %v3024_v50, %v3023_v24  ;;  %v3154_v17 = vor.u32 %v3153_v34, %v3152_v15 }
 0x2aa   : > { %v5018_v0 = vpop.f32.mrf.mxu1  ;;  %vm6409_vm13 = vcmp.ne.s16.totalorder %v4875_v46, 0  ;;  %vm6428_vm7 = vcmp.ne.s16.totalorder %v4876_v42, 0 }
 0x2ab   : > { %v2803_v29 = vpack.c.bf16 %v5017_v9, %v5014_v11  ;;  %v3027_v26 = vsel %vm6937_vm3, %v3016_v31, %v3026_v18  ;;  %v6384_v38 = vsel %vm3148_vm11, %v3151_v23, %v3154_v17 }
 0x2ac   : > { %v5019_v54 = vpop.f32.mrf.mxu1  ;;  %v3082_v51 = vsel %vm6366_vm15, %v3027_v26, 0  ;;  %v3204_v59 = vsel %vm6366_vm15, %v6384_v38, 0 }
 0x2ad   : > { %v3029_v16 = vshrl.u32 %v2803_v29, 16  ;;  %3225 = vrot.lane.b32.xlu1 %v3082_v51, %s5447_s25  ;;  %v3093_v62 = vrot.slane %v2803_v29, 4  ;;  %v3032_v25 = vshll.u32 %v2803_v29, 16  ;;  %v5020_v55 = vadd.f32 %v5019_v54, %v5018_v0 }
 0x2ae   : > { %v5021_v7 = vpop.f32.mrf.mxu1 }
 0x2af   : > { %v3094_v60 = vsel %vm3089_vm5, %v3091_v28, %v3093_v62  ;;  %v3031_v57 = vrot.slane %v3029_v16, 7  ;;  %v3156_v31 = vrot.slane %v3029_v16, 3  ;;  %v3157_v12 = vrot.slane %v3032_v25, 4 }
 0x2b0   : > { %v5022_v40 = vpop.f32.mrf.mxu1  ;;  %v3138_v20 = vsel %vm6936_vm2, %v3094_v60, 0 }
 0x2b1   : > { %v5023_v13 = vadd.f32 %v5022_v40, %v5021_v7  ;;  %3215 = vrot.lane.b32.xlu0 %v3138_v20, %s5446_s2  ;;  %v3034_v44 = vor.u32 %v3032_v25, %v3031_v57  ;;  %v3158_v22 = vor.u32 %v3157_v12, %v3156_v31  ;;  %v5448_v7 = vmov 0.0   ;;  %v4885_v20 = vld [vmem:[%s6829_s5] ss:$0 sm:$0xff] }
 0x2b2   : > { %5130 = vmatprep.subr.bf16.mxu1 %v5448_v7  ;;  %5162 = vmatprep.subr.bf16.mxu0 %v5448_v7 }
 0x2b3   : > { %v2804_v48 = vpack.c.bf16 %v5023_v13, %v5020_v55  ;;  %v3035_v23 = vsel %vm6944_vm14, %v3023_v24, %v3034_v44  ;;  %v3159_v41 = vsel %vm3148_vm11, %v3154_v17, %v3158_v22  ;;  %5164 = vmatprep.mubr.msk.bf16.mxu0 %vm5444_vm4, %v5448_v7 }
 0x2b4   : > { %v3083_v30 = vsel %vm6409_vm13, %v3035_v23, 0  ;;  %v3205_v6 = vsel %vm6409_vm13, %v3159_v41, 0 }
 0x2b5   : > { %v3037_v47 = vshrl.u32 %v2804_v48, 16  ;;  %3227 = vrot.lane.b32.xlu0 %v3083_v30, %s5447_s25  ;;  %v3095_v39 = vrot.slane %v2804_v48, 4  ;;  %v3040_v36 = vshll.u32 %v2804_v48, 16 }
 0x2b7   : > { %v3096_v53 = vsel %vm3089_vm5, %v3093_v62, %v3095_v39  ;;  %v3039_v58 = vrot.slane %v3037_v47, 7  ;;  %v3160_v63 = vrot.slane %v3037_v47, 3  ;;  %v3161_v28 = vrot.slane %v3040_v36, 4 }
 0x2b8   : > { %v3139_v50 = vsel %vm6936_vm2, %v3096_v53, 0  ;;  %vm3251_vm5 = vcmask 261120   ;;  %vm3260_vm2 = vcmask 392192  }
 0x2b9   : > { %3217 = vrot.lane.b32.xlu1 %v3139_v50, %s5446_s2  ;;  %3235 = vrot.lane.b32.xlu0 %v2803_v29, %s5445_s19  ;;  %v3042_v14 = vor.u32 %v3040_v36, %v3039_v58  ;;  %v3162_v52 = vor.u32 %v3161_v28, %v3160_v63  ;;  %s5450_s2 = smov 64  }
 0x2bb   : > { %v3043_v24 = vsel %vm6947_vm12, %v3031_v57, %v3042_v14  ;;  %v3163_v15 = vsel %vm3148_vm11, %v3158_v22, %v3162_v52  ;;  %vm3308_vm11 = vcmask 523264   ;;  %v5313_v52 = vld [vmem:[%s6830_s6] sm:$0xff]  }
 0x2bc   : > { %v3084_v34 = vsel %vm6428_vm7, %v3043_v24, 0  ;;  %v3206_v10 = vsel %vm6428_vm7, %v3163_v15, 0  ;;  %v3450_v24 = vand.u32 3, %v5574_v4  ;;  %v3457_v15 = vand.u32 3, %v6257_v5 }
 0x2bd   : > { %3229 = vrot.lane.b32.xlu1 %v3084_v34, %s5447_s25  ;;  %v6948_v34 = vand.u32 15, %v5574_v4  ;;  %vm3494_vm7 = vcmask 1041408  }
 0x2be   : > { %vm6488_vm3 = vcmp.ne.s32.totalorder %v3450_v24, 0  ;;  %vm3471_vm0 = vcmp.ne.s32.totalorder %v3457_v15, 0  ;;  %v5330_v24 = vld [vmem:[%s6834_s10 + $0x54] ss:$8 sps:$4 sm:$0xff]   ;;  %v5328_v15 = vld [vmem:[%s6834_s10 + $0x50] ss:$8 sps:$4 sm:$0xff]  }
 0x2bf   : > { %vm6484_vm15 = vcmp.ge.s32.totalorder %v6948_v34, 4  ;;  %vm3484_vm1 = vmpackc.low %vm3471_vm0, %vm3471_vm0  ;;  %v5333_v34 = vld [vmem:[%s6834_s10 + $0x44] ss:$8 sps:$4 sm:$0xff]  }
 0x2c0   : > { %vm3507_vm9 = vmand %vm6488_vm3, %vm6484_vm15 }
 0x2c1   : > { %3237 = vrot.lane.b32.xlu1 %v2804_v48, %s5445_s19  ;;  %vm3517_vm10 = vmpackc.low %vm3507_vm9, %vm3507_vm9  ;;  %s5449_s19 = smov 96  }
 0x2c2   : > { %v3519_v5 = vsel %vm3517_vm10, 65537, %v5439_v2  ;;  %vm3498_vm13 = vmpackc.low %vm6484_vm15, %vm6484_vm15  ;;  %vm3514_vm15 = vsmask.f32 2304 }
 0x2c3   : > { %vm3483_vm14 = vmpackc.low %vm6488_vm3, %vm6488_vm3 }
 0x30f   : > { %v3232_v33 = vpop.permute.xlu0 %3231 }
 0x313   : > { %v3212_v21 = vpop.permute.xlu0 %3211 }
 0x314   : > { %v3241_v8 = vsel %vm2446_vm8, %v6359_v35, %v3212_v21  ;;  %v3486_v21 = vsel %vm3484_vm1, 65537, %v5439_v2  ;;  %vm3539_vm1 = vcmask 785408  }
 0x317   : > { %v3234_v45 = vpop.permute.xlu1 %3233  ;;  %v3224_v1 = vpop.permute.xlu0 %3223 }
 0x318   : > { %v3253_v11 = vsel %vm3251_vm5, %v3241_v8, %v3224_v1  ;;  %v4898_v8 = vcombine.low %v3519_v5, %v3486_v21  ;;  %v5315_v1 = vld [vmem:[%s6831_s7 + $0x30] sm:$0xff]   ;;  %v5339_v5 = vld [vmem:[%s6834_s10 + $0x24] ss:$8 sps:$4 sm:$0xff]  }
 0x319   : > { %v3262_v9 = vsel %vm3260_vm2, %v3253_v11, %v3232_v33  ;;  %v5316_v11 = vld [vmem:[%s6831_s7 + $0x28] sm:$0xff]   ;;  %v5336_v33 = vld [vmem:[%s6834_s10 + $0x34] ss:$8 sps:$4 sm:$0xff]  }
 0x31a   : > { %5122 = vmatprep.mubr.msk.bf16.mxu1 %vm3308_vm11, %v3262_v9  ;;  %v5317_v9 = vld [vmem:[%s6831_s7 + $0x20] sm:$0xff]   ;;  %vm3524_vm9 = vcmp.ne.s16.totalorder %v4898_v8, 0 }
 0x31b   : > { %v3214_v18 = vpop.permute.xlu1 %3213  ;;  %v5337_v8 = vld [vmem:[%s6834_s10 + $0x20] ss:$8 sps:$4 sm:$0xff]  }
 0x31c   : > { %v3244_v17 = vsel %vm2446_vm8, %v3204_v59, %v3214_v18  ;;  %v5318_v18 = vld [vmem:[%s6831_s7 + $0x18] sm:$0xff]  }
 0x31f   : > { %v3226_v0 = vpop.permute.xlu1 %3225 }
 0x320   : > { %v3255_v29 = vsel %vm3251_vm5, %v3244_v17, %v3226_v0  ;;  %v5319_v17 = vld [vmem:[%s6831_s7 + $0x10] sm:$0xff]   ;;  %v5320_v0 = vld [vmem:[%s6831_s7 + $0x8] sm:$0xff]  }
 0x321   : > { %v3264_v35 = vsel %vm3260_vm2, %v3255_v29, %v3234_v45  ;;  %v5314_v45 = vld [vmem:[%s6831_s7 + $0x38] sm:$0xff]   ;;  %v5321_v29 = vld [vmem:[%s6831_s7] sm:$0xff]  }
 0x322   : > { %5123 = vmatmul.mubr.msk.bf16.vlgmr.msra.gmra.mxu1 %vm3308_vm11, %v3264_v35  ;;  %v3500_v35 = vsel %vm3498_vm13, 65537, %v5439_v2 }
 0x323   : > { %v3216_v26 = vpop.permute.xlu0 %3215 }
 0x324   : > { %v3247_v54 = vsel %vm2446_vm8, %v3205_v6, %v3216_v26 }
 0x327   : > { %v3228_v56 = vpop.permute.xlu0 %3227 }
 0x328   : > { %v3257_v51 = vsel %vm3251_vm5, %v3247_v54, %v3228_v56  ;;  %v4897_v54 = vcombine.low %v3500_v35, %v5572_v3 }
 0x32a   : > { %vm3505_vm12 = vcmp.ne.s16.totalorder %v4897_v54, 0 }
 0x32b   : > { %v3218_v46 = vpop.permute.xlu1 %3217  ;;  %v3236_v37 = vpop.permute.xlu0 %3235 }
 0x32c   : > { %v3266_v49 = vsel %vm3260_vm2, %v3257_v51, %v3236_v37  ;;  %v3250_v59 = vsel %vm2446_vm8, %v3206_v10, %v3218_v46  ;;  %v3485_v46 = vsel %vm3483_vm14, 65537, %v5439_v2  ;;  %v5331_v10 = vld [vmem:[%s6834_s10 + $0x40] ss:$8 sps:$4 sm:$0xff]  }
 0x32d   : > { %5126 = vmatprep.mubr.msk.bf16.mxu1 %vm3308_vm11, %v3266_v49 }
 0x32f   : > { %v3230_v38 = vpop.permute.xlu1 %3229 }
 0x330   : > { %v3259_v16 = vsel %vm3251_vm5, %v3250_v59, %v3230_v38 }
 0x333   : > { %v3238_v62 = vpop.permute.xlu1 %3237 }
 0x334   : > { %v3268_v25 = vsel %vm3260_vm2, %v3259_v16, %v3238_v62  ;;  %vm3513_vm2 = vcmask 1042432   ;;  %v4896_v62 = vcombine.low %v3485_v46, %v3486_v21  ;;  %v5334_v21 = vld [vmem:[%s6834_s10 + $0x30] ss:$8 sps:$4 sm:$0xff]  }
 0x335   : > { %5127 = vmatmul.mubr.msk.bf16.gmra.mxu1 %vm3308_vm11, %v3268_v25  ;;  %vm3515_vm3 = vmand %vm3513_vm2, %vm3514_vm15 }
 0x336   : > { %5138 = vmatprep.mubr.msk.bf16.mxu1 %vm5444_vm4, %v5448_v7  ;;  %vm3490_vm0 = vcmp.ne.s16.totalorder %v4896_v62, 0 }
 0x3e2   : > { %v5124_v60 = vpop.f32.mrf.mxu1 }
 0x3e3   : > { %v3360_v47 = vadd.f32 %v5124_v60, %v4885_v20 }
 0x3e4   : > { %v3351_v57 = vpop.f32.mrf.mxu1 }
 0x3e5   : > { %v3384_v58 = vmax.f32 %v3360_v47, 0.0  ;;  %v3352_v63 = vadd.f32 %v4885_v20, %v3351_v57 }
 0x3e6   : > { %v5125_v31 = vpop.f32.mrf.mxu1 }
 0x3e7   : > { %v3363_v41 = vadd.f32 %v5125_v31, %v4885_v20  ;;  %v3382_v14 = vmax.f32 %v3352_v63, 0.0 }
 0x3e8   : > { %v3354_v12 = vpop.f32.mrf.mxu1 }
 0x3e9   : > { %v3385_v36 = vmax.f32 %v3363_v41, 0.0  ;;  %v3355_v42 = vadd.f32 %v4885_v20, %v3354_v12  ;;  %v4899_v41 = vld [vmem:[%s6832_s8] ss:$0 sm:$0xff] }
 0x3eb   : > { %v3393_v28 = vpack.c.bf16 %v3385_v36, %v3384_v58  ;;  %v3383_v50 = vmax.f32 %v3355_v42, 0.0 }
 0x3ed   : > { %v3392_v27 = vpack.c.bf16 %v3383_v50, %v3382_v14  ;;  %v5322_v50 = vld [vmem:[%s6834_s10 + $0x70] ss:$8 sps:$4 sm:$0xff]   ;;  %v5324_v14 = vld [vmem:[%s6834_s10 + $0x74] ss:$8 sps:$4 sm:$0xff]  }
 0x3f5   : > { %v5128_v40 = vpop.f32.mrf.mxu1 }
 0x3f6   : > { %v3376_v55 = vadd.f32 %v5128_v40, %v4885_v20 }
 0x3f7   : > { %v3367_v61 = vpop.f32.mrf.mxu1 }
 0x3f8   : > { %v3388_v43 = vmax.f32 %v3376_v55, 0.0  ;;  %v3368_v19 = vadd.f32 %v4885_v20, %v3367_v61 }
 0x3f9   : > { %v5129_v13 = vpop.f32.mrf.mxu1 }
 0x3fa   : > { %v3379_v44 = vadd.f32 %v5129_v13, %v4885_v20  ;;  %v3386_v39 = vmax.f32 %v3368_v19, 0.0 }
 0x3fb   : > { %v3370_v22 = vpop.f32.mrf.mxu1 }
 0x3fc   : > { %v3389_v48 = vmax.f32 %v3379_v44, 0.0  ;;  %v3371_v23 = vadd.f32 %v4885_v20, %v3370_v22 }
 0x3fe   : > { %v3395_v30 = vpack.c.bf16 %v3389_v48, %v3388_v43  ;;  %v3387_v6 = vmax.f32 %v3371_v23, 0.0 }
 0x400   : > { %5131 = vmatpush3.bf16.msra.mxu1 %v3395_v30  ;;  %v3394_v53 = vpack.c.bf16 %v3387_v6, %v3386_v39 }
 0x401   : > { %5132 = vmatprep.subr.bf16.mxu1 %v5448_v7 }
 0x404   : > { %5133 = vmatpush3.bf16.msra.mxu1 %v3394_v53 }
 0x405   : > { %5134 = vmatprep.subr.bf16.mxu1 %v5448_v7 }
 0x408   : > { %5135 = vmatpush3.bf16.msra.mxu1 %v3393_v28  ;;  %v3657_v28 = vld [vmem:[%s6833_s9] sm:$0x3] }
 0x409   : > { %5136 = vmatprep.subr.bf16.mxu1 %v5448_v7 }
 0x40c   : > { %5137 = vmatpush3.bf16.msra.mxu1 %v3392_v27  ;;  %v5327_v27 = vld [vmem:[%s6834_s10 + $0x64] ss:$8 sps:$4 sm:$0xff]  }
 0x40d   : > { %5142 = vmatprep.subr.bf16.mxu1 %v5448_v7 }
 0x40f   : > { %5139 = vmatmul.mubr.msk.bf16.vlgmr.msra.gmra.mxu1 %vm3308_vm11, %v5313_v52  ;;  %v5325_v52 = vld [vmem:[%s6834_s10 + $0x60] ss:$8 sps:$4 sm:$0xff]  }
 0x410   : > { %5158 = vmatprep.mubr.msk.bf16.mxu1 %vm5444_vm4, %v5448_v7  ;;  %5143 = vmatpush3.bf16.msra.mxu1 %v5314_v45  ;;  %v5342_v45 = vld [vmem:[%s6834_s10 + $0x14] ss:$8 sps:$4 sm:$0xff]  }
 0x411   : > { %5144 = vmatprep.subr.bf16.mxu1 %v5448_v7 }
 0x414   : > { %5145 = vmatpush3.bf16.msra.mxu1 %v5315_v1  ;;  %v5340_v1 = vld [vmem:[%s6834_s10 + $0x10] ss:$8 sps:$4 sm:$0xff]  }
 0x415   : > { %5146 = vmatprep.subr.bf16.mxu1 %v5448_v7 }
 0x418   : > { %5147 = vmatpush3.bf16.msra.mxu1 %v5316_v11  ;;  %v5343_v11 = vld [vmem:[%s6835_s11 + $0x8] sm:$0xff]  }
 0x419   : > { %5148 = vmatprep.subr.bf16.mxu1 %v5448_v7 }
 0x41c   : > { %5149 = vmatpush3.bf16.msra.mxu1 %v5317_v9  ;;  %v5347_v9 = vld [vmem:[%s6835_s11] sm:$0xff]  }
 0x41d   : > { %5150 = vmatprep.subr.bf16.mxu1 %v5448_v7 }
 0x420   : > { %5151 = vmatpush3.bf16.msra.mxu1 %v5318_v18  ;;  %v5346_v18 = vld [vmem:[%s6834_s10 + $0x4] ss:$8 sps:$4 sm:$0xff]  }
 0x421   : > { %5152 = vmatprep.subr.bf16.mxu1 %v5448_v7 }
 0x424   : > { %5153 = vmatpush3.bf16.msra.mxu1 %v5319_v17  ;;  %v5344_v17 = vld [vmem:[%s6834_s10] ss:$8 sps:$4 sm:$0xff]  }
 0x425   : > { %5154 = vmatprep.subr.bf16.mxu1 %v5448_v7 }
 0x428   : > { %5155 = vmatpush3.bf16.msra.mxu1 %v5320_v0 }
 0x429   : > { %5156 = vmatprep.subr.bf16.mxu1 %v5448_v7 }
 0x42c   : > { %5157 = vmatpush3.bf16.msra.mxu1 %v5321_v29 }
 0x42d   : > { %5168 = vmatprep.subr.bf16.mxu1 %v5448_v7 }
 0x4cf   : > { %v3438_v26 = vpop.f32.mrf.mxu1 }
 0x4d1   : > { %v5140_v56 = vpop.f32.mrf.mxu1 }
 0x4d3   : > { %v3441_v51 = vpop.f32.mrf.mxu1 }
 0x4d4   : > { %v3445_v37 = vpack.c.bf16 %v3441_v51, %v3438_v26 }
 0x4d5   : > { %v5141_v49 = vpop.f32.mrf.mxu1 }
 0x4d6   : > { %v3475_v38 = vshrl.u32 %v3445_v37, 16  ;;  %v3493_v59 = vrot.slane %v3445_v37, 6  ;;  %v3478_v16 = vshll.u32 %v3445_v37, 16 }
 0x4d8   : > { %v3496_v25 = vsel %vm3494_vm7, 0, %v3493_v59  ;;  %v3477_v60 = vrot.slane %v3475_v38, 7  ;;  %v3510_v57 = vrot.slane %v3478_v16, 6  ;;  %v3509_v31 = vrot.slane %v3475_v38, 5  ;;  %v6623_v38 = vld [vmem:[%s6835_s11 + $0x18] sm:$0xff]  }
 0x4d9   : > { %v3506_v12 = vsel %vm3505_vm12, %v3496_v25, 0 }
 0x4da   : > { %3527 = vrot.lane.b32.xlu0 %v3506_v12, %s5447_s25  ;;  %v3480_v3 = vor.u32 %v3478_v16, %v3477_v60  ;;  %v3511_v40 = vor.u32 %v3510_v57, %v3509_v31  ;;  %v6631_v16 = vld [vmem:[%s6835_s11 + $0x10] sm:$0xff]   ;;  %v3736_v31 = vsub.s32 0, %v5574_v4  ;;  %v3732_v12 = vld [vmem:[%s6836_s12] sm:$0x3] }
 0x4dc   : > { %v3482_v20 = vsel %vm6933_vm6, 0, %v3480_v3  ;;  %v3516_v61 = vsel %vm3515_vm3, 0, %v3511_v40  ;;  %v3737_v3 = vrot.slane %v3732_v12, %v3736_v31 }
 0x4dd   : > { %v3491_v55 = vsel %vm3490_vm0, %v3482_v20, 0  ;;  %v3525_v13 = vsel %vm3524_vm9, %v3516_v61, 0  ;;  %v3740_v61 = vsub.s32 1, %v5574_v4 }
 0x4de   : > { %3532 = vrot.lane.b32.xlu0 %v3445_v37, %s5449_s19  ;;  %3530 = vrot.lane.b32.xlu1 %v3491_v55, %s5450_s2 }
 0x54c   : > { %v3528_v44 = vpop.permute.xlu0 %3527 }
 0x54d   : > { %v3536_v22 = vsel %vm3251_vm5, %v3525_v13, %v3528_v44 }
 0x550   : > { %v3533_v43 = vpop.permute.xlu0 %3532  ;;  %v3531_v19 = vpop.permute.xlu1 %3530 }
 0x551   : > { %v3538_v48 = vsel %vm3308_vm11, %v3536_v22, %v3531_v19  ;;  %v3741_v22 = vrot.slane %v3732_v12, %v3740_v61 }
 0x552   : > { %v3541_v23 = vsel %vm3539_vm1, %v3538_v48, %v3533_v43 }
 0x553   : > { %5159 = vmatmul.mubr.bf16.vlgmr.msra.gmra.mxu1 %v3541_v23 }
 0x554   : > { %5172 = vmatprep.mubr.msk.bf16.mxu1 %vm5444_vm4, %v5448_v7  ;;  %5169 = vmatpush3.bf16.msra.mxu1 %v5343_v11 }
 0x555   : > { %5170 = vmatprep.subr.bf16.mxu1 %v5448_v7 }
 0x558   : > { %5171 = vmatpush3.bf16.msra.mxu1 %v5347_v9 }
 0x559   : > { %5176 = vmatprep.subr.bf16.mxu1 %v5448_v7 }
 0x55b   : > { %5173 = vmatmul.mubr.bf16.vlgmr.msra.gmra.mxu1 %v5439_v2 }
 0x55c   : > { %5177 = vmatpush3.bf16.msra.mxu1 %v5343_v11  ;;  %5180 = vmatprep.mubr.msk.bf16.mxu1 %vm5444_vm4, %v5448_v7 }
 0x55d   : > { %5178 = vmatprep.subr.bf16.mxu1 %v5448_v7 }
 0x560   : > { %5179 = vmatpush3.bf16.msra.mxu1 %v5347_v9 }
 0x561   : > { %5192 = vmatprep.subr.bf16.mxu1 %v5448_v7 }
 0x613   : > { %v3648_v30 = vpop.f32.mrf.mxu1 }
 0x614   : > { %v3649_v47 = vadd.f32 %v4899_v41, %v3648_v30 }
 0x615   : > { %v5160_v6 = vpop.f32.mrf.mxu1 }
 0x616   : > { %v3655_v53 = vmax.f32 %v3649_v47, 0.0 }
 0x617   : > { %v3651_v39 = vpop.f32.mrf.mxu1 }
 0x618   : > { %v3652_v36 = vadd.f32 %v4899_v41, %v3651_v39 }
 0x619   : > { %v5161_v42 = vpop.f32.mrf.mxu1 }
 0x61a   : > { %v3656_v58 = vmax.f32 %v3652_v36, 0.0 }
 0x61b   : > { %v3921_v62 = vpop.f32.mrf.mxu1 }
 0x61c   : > { %v3658_v63 = vpack.c.bf16 %v3656_v58, %v3655_v53 }
 0x61d   : > { %v5174_v25 = vpop.f32.mrf.mxu1 }
 0x61e   : > { %5163 = vmatpush3.bf16.msra.mxu0 %v3658_v63 }
 0x61f   : > { %3824 = vmatprep.subr.bf16.mxu0 %v5324_v14  ;;  %v3924_v60 = vpop.f32.mrf.mxu1 }
 0x621   : > { %5165 = vmatmul.mubr.msk.bf16.vlgmr.msra.gmra.mxu0 %vm2446_vm8, %v3657_v28  ;;  %v5175_v57 = vpop.f32.mrf.mxu1  ;;  %vm4682_vm8 = vcmask 818176  }
 0x622   : > { %3856 = vmatprep.mubr.bf16.mxu0 %v5439_v2  ;;  %3825 = vmatpush1.bf16.msra.mxu0 %v5322_v50 }
 0x623   : > { %3826 = vmatprep.subr.bf16.mxu0 %v5327_v27 }
 0x626   : > { %3827 = vmatpush1.bf16.msra.mxu0 %v5325_v52 }
 0x627   : > { %3828 = vmatprep.subr.bf16.mxu0 %v5330_v24 }
 0x62a   : > { %3829 = vmatpush1.bf16.msra.mxu0 %v5328_v15 }
 0x62b   : > { %3830 = vmatprep.subr.bf16.mxu0 %v5333_v34 }
 0x62e   : > { %3831 = vmatpush1.bf16.msra.mxu0 %v5331_v10 }
 0x62f   : > { %3832 = vmatprep.subr.bf16.mxu0 %v5336_v33 }
 0x632   : > { %3833 = vmatpush1.bf16.msra.mxu0 %v5334_v21 }
 0x633   : > { %3834 = vmatprep.subr.bf16.mxu0 %v5339_v5 }
 0x636   : > { %3835 = vmatpush1.bf16.msra.mxu0 %v5337_v8 }
 0x637   : > { %3836 = vmatprep.subr.bf16.mxu0 %v5342_v45 }
 0x63a   : > { %3837 = vmatpush1.bf16.msra.mxu0 %v5340_v1 }
 0x63b   : > { %3838 = vmatprep.subr.bf16.mxu0 %v5346_v18 }
 0x63e   : > { %3839 = vmatpush1.bf16.msra.mxu0 %v5344_v17 }
 0x63f   : > { %5184 = vmatprep.subr.bf16.mxu0 %v5448_v7 }
 0x6e1   : > { %v3696_v0 = vpop.f32.mrf.mxu0 }
 0x6e2   : > { %v3702_v29 = vpack.c.bf16 %v3696_v0, %v3696_v0 }
 0x6e3   : > { %v5166_v35 = vpop.f32.mrf.mxu0 }
 0x6e4   : > { %v3704_v26 = vshrl.u32 %v3702_v29, 16 }
 0x6e5   : > { %v3699_v56 = vpop.f32.mrf.mxu0 }
 0x6e6   : > { %3706 = vrot.lane.b32.xlu1 %v3704_v26, %s5450_s2 }
 0x6e7   : > { %v5167_v54 = vpop.f32.mrf.mxu0 }
 0x758   : > { %v3707_v51 = vpop.permute.xlu1 %3706 }
 0x759   : > { %v3709_v46 = vsel %vm3308_vm11, %v3702_v29, %v3707_v51 }
 0x75a   : > { %v3711_v37 = vshll.u32 %v3709_v46, 16 }
 0x75c   : > { %v3713_v49 = vrot.slane %v3711_v37, 1 }
 0x75e   : > { %v3715_v59 = vsel %vm6933_vm6, %v3709_v46, %v3713_v49 }
 0x75f   : > { %3857 = vmatmul.mubr.bf16.vlgmr.msra.gmra.mxu0 %v3715_v59 }
 0x760   : > { %5185 = vmatpush3.bf16.msra.mxu0 %v6623_v38  ;;  %5188 = vmatprep.mubr.msk.bf16.mxu0 %vm5444_vm4, %v5448_v7 }
 0x761   : > { %5186 = vmatprep.subr.bf16.mxu0 %v5448_v7 }
 0x764   : > { %5187 = vmatpush3.bf16.msra.mxu0 %v6631_v16 }
 0x767   : > { %5189 = vmatmul.mubr.bf16.vlgmr.msra.gmra.mxu0 %v5439_v2 }
 0x768   : > { %4303 = vmatprep.mubr.bf16.mxu0 %v5439_v2 }
 0x81f   : > { %v3858_v40 = vpop.f32.mrf.mxu0 }
 0x820   : > { %v6645_v20 = vadd.f32 %v3858_v40, %v3737_v3 }
 0x821   : > { %v3860_v55 = vpop.f32.mrf.mxu0 }
 0x822   : > { %v3927_v13 = vadd.f32 %v3921_v62, %v6645_v20  ;;  %v6651_v48 = vadd.f32 %v3860_v55, %v3741_v22 }
 0x823   : > { %v3862_v44 = vpop.f32.mrf.mxu0 }
 0x824   : > { %5375 = vtanh.f32 %v3927_v13  ;;  %v4927_v42 = vmul.f32 -1.442695, %v3927_v13 }
 0x825   : > { %v3863_v43 = vpop.f32.mrf.mxu0 }
 0x827   : > { %v4076_v19 = vpop.f32.mrf.mxu0 }
 0x828   : > { %v4083_v23 = vrot.slane %v4076_v19, 7 }
 0x829   : > { %v5190_v41 = vpop.f32.mrf.mxu0 }
 0x82a   : > { %v4085_v30 = vadd.f32 %v4083_v23, %v6651_v48 }
 0x82b   : > { %v4079_v6 = vpop.f32.mrf.mxu0 }
 0x82c   : > { %5377 = vtanh.f32 %v4085_v30  ;;  %v4932_v53 = vmul.f32 -1.442695, %v4085_v30 }
 0x82d   : > { %v5191_v47 = vpop.f32.mrf.mxu0  ;;  %5379 = vpow2.f32 %v4927_v42 }
 0x82e   : > { %5381 = vpow2.f32 %v4932_v53 }
 0x831   : > { %v5376_v39 = vpop.eup %5375 }
 0x832   : > { %3937 = vrot.lane.b32.xlu0 %v5376_v39, %s5450_s2 }
 0x839   : > { %v5378_v36 = vpop.eup %5377 }
 0x83a   : > { %4095 = vrot.lane.b32.xlu1 %v5378_v36, %s5450_s2  ;;  %v5380_v58 = vpop.eup %5379 }
 0x83b   : > { %v3931_v63 = vadd.f32 1.0, %v5380_v58  ;;  %v5382_v28 = vpop.eup %5381 }
 0x83c   : > { %v4089_v50 = vadd.f32 1.0, %v5382_v28 }
 0x83d   : > { %5383 = vrcp.f32 %v3931_v63 }
 0x83e   : > { %5385 = vrcp.f32 %v4089_v50  ;;  %v5350_v50 = vld [vmem:[%s6837_s13 + $0x30] ss:$8 sps:$4 sm:$0xff]  }
 0x84a   : > { %v5384_v14 = vpop.eup %5383 }
 0x84b   : > { %v5386_v24 = vpop.eup %5385  ;;  %v3935_v10 = vmul.f32 0.0, %v5384_v14 }
 0x84c   : > { %v4093_v5 = vmul.f32 0.0, %v5386_v24 }
 0x8a4   : > { %v3938_v27 = vpop.permute.xlu0 %3937 }
 0x8a5   : > { %v3940_v52 = vmul.f32 %v5384_v14, %v3938_v27 }
 0x8a7   : > { %3942 = vrot.lane.b32.xlu0 %v3940_v52, %s5447_s25  ;;  %v5353_v52 = vld [vmem:[%s6837_s13 + $0x20] ss:$8 sps:$4 sm:$0xff]  }
 0x8ac   : > { %v4096_v15 = vpop.permute.xlu1 %4095 }
 0x8ad   : > { %v4098_v34 = vmul.f32 %v5386_v24, %v4096_v15  ;;  %v5358_v15 = vld [vmem:[%s6837_s13 + $0x14] ss:$8 sps:$4 sm:$0xff]  }
 0x8af   : > { %4100 = vrot.lane.b32.xlu1 %v4098_v34, %s5447_s25  ;;  %v5359_v34 = vld [vmem:[%s6838_s14 + $0x8] sm:$0xff]  }
 0x919   : > { %v3943_v33 = vpop.permute.xlu0 %3942 }
 0x91a   : > { %v6658_v21 = vadd.f32 %v3943_v33, %v3935_v10  ;;  %v5356_v10 = vld [vmem:[%s6837_s13 + $0x10] ss:$8 sps:$4 sm:$0xff]   ;;  %v5363_v33 = vld [vmem:[%s6838_s14] sm:$0xff]  }
 0x91c   : > { %5387 = vtanh.f32 %v6658_v21  ;;  %v4011_v6 = vrot.slane %v6658_v21, 7 }
 0x921   : > { %v4101_v8 = vpop.permute.xlu1 %4100 }
 0x922   : > { %v6661_v45 = vadd.f32 %v4101_v8, %v4093_v5  ;;  %v5362_v5 = vld [vmem:[%s6837_s13 + $0x4] ss:$8 sps:$4 sm:$0xff]  }
 0x924   : > { %5389 = vtanh.f32 %v6661_v45  ;;  %v4168_v42 = vrot.slane %v6661_v45, 1  ;;  %v5360_v45 = vld [vmem:[%s6837_s13] ss:$8 sps:$4 sm:$0xff]  }
 0x929   : > { %v5388_v1 = vpop.eup %5387 }
 0x92a   : > { %3948 = vrot.lane.b32.xlu0 %v5388_v1, %s5450_s2 }
 0x931   : > { %v5390_v11 = vpop.eup %5389 }
 0x932   : > { %4106 = vrot.lane.b32.xlu1 %v5390_v11, %s5450_s2 }
 0x99c   : > { %v3949_v9 = vpop.permute.xlu0 %3948 }
 0x99d   : > { %v6666_v18 = vmul.f32 %v5384_v14, %v3949_v9  ;;  %v5352_v14 = vld [vmem:[%s6837_s13 + $0x34] ss:$8 sps:$4 sm:$0xff]  }
 0x99e   : > { %4279 = vmatprep.subr.bf16.mxu0 %v5352_v14 }
 0x99f   : > { %v3952_v17 = vpack.c.bf16 %v6666_v18, %v6666_v18  ;;  %4280 = vmatpush1.bf16.msra.mxu0 %v5350_v50 }
 0x9a1   : > { %3954 = vrot.lane.b32.xlu0 %v3952_v17, %s5447_s25 }
 0x9a4   : > { %v4107_v0 = vpop.permute.xlu1 %4106 }
 0x9a5   : > { %v6671_v29 = vmul.f32 %v5386_v24, %v4107_v0  ;;  %v5355_v24 = vld [vmem:[%s6837_s13 + $0x24] ss:$8 sps:$4 sm:$0xff]  }
 0x9a6   : > { %4281 = vmatprep.subr.bf16.mxu0 %v5355_v24 }
 0x9a7   : > { %v4110_v35 = vpack.c.bf16 %v6671_v29, %v6671_v29  ;;  %4282 = vmatpush1.bf16.msra.mxu0 %v5353_v52 }
 0x9a8   : > { %4283 = vmatprep.subr.bf16.mxu0 %v5358_v15 }
 0x9a9   : > { %v4112_v26 = vshrl.u32 %v4110_v35, 16 }
 0x9ab   : > { %4114 = vrot.lane.b32.xlu1 %v4112_v26, %s5447_s25  ;;  %4284 = vmatpush1.bf16.msra.mxu0 %v5356_v10 }
 0x9ac   : > { %4285 = vmatprep.subr.bf16.mxu0 %v5362_v5 }
 0x9af   : > { %4286 = vmatpush1.bf16.msra.mxu0 %v5360_v45 }
 0x9b0   : > { %5216 = vmatprep.subr.bf16.mxu0 %v5448_v7 }
 0xa13   : > { %v3955_v56 = vpop.permute.xlu0 %3954 }
 0xa14   : > { %5181 = vmatmul.mubr.msk.bf16.vlgmr.msra.gmra.mxu1 %vm3251_vm5, %v3955_v56 }
 0xa15   : > { %5193 = vmatpush3.bf16.msra.mxu1 %v6623_v38  ;;  %5196 = vmatprep.mubr.msk.bf16.mxu1 %vm5444_vm4, %v5448_v7 }
 0xa16   : > { %5194 = vmatprep.subr.bf16.mxu1 %v5448_v7 }
 0xa19   : > { %5195 = vmatpush3.bf16.msra.mxu1 %v6631_v16 }
 0xa1a   : > { %5200 = vmatprep.subr.bf16.mxu1 %v5448_v7 }
 0xa1d   : > { %v4115_v54 = vpop.permute.xlu1 %4114 }
 0xa1e   : > { %5197 = vmatmul.mubr.msk.bf16.vlgmr.msra.gmra.mxu1 %vm3251_vm5, %v4115_v54 }
 0xa1f   : > { %5204 = vmatprep.mubr.msk.bf16.mxu1 %vm5444_vm4, %v5448_v7  ;;  %5201 = vmatpush3.bf16.msra.mxu1 %v5359_v34 }
 0xa20   : > { %5202 = vmatprep.subr.bf16.mxu1 %v5448_v7 }
 0xa23   : > { %5203 = vmatpush3.bf16.msra.mxu1 %v5363_v33 }
 0xa24   : > { %5208 = vmatprep.subr.bf16.mxu1 %v5448_v7 }
 0xa26   : > { %5205 = vmatmul.mubr.bf16.vlgmr.msra.gmra.mxu1 %v5439_v2 }
 0xa27   : > { %5209 = vmatpush3.bf16.msra.mxu1 %v5359_v34  ;;  %5212 = vmatprep.mubr.msk.bf16.mxu1 %vm5444_vm4, %v5448_v7 }
 0xa28   : > { %5210 = vmatprep.subr.bf16.mxu1 %v5448_v7 }
 0xa2b   : > { %5211 = vmatpush3.bf16.msra.mxu1 %v5363_v33 }
 0xa2c   : > { %5224 = vmatprep.subr.bf16.mxu1 %v5448_v7 }
 0xad4   : > { %v3993_v51 = vpop.f32.mrf.mxu1 }
 0xad5   : > { %v4000_v46 = vrot.slane %v3993_v51, 7 }
 0xad6   : > { %v5182_v37 = vpop.f32.mrf.mxu1 }
 0xad7   : > { %v4002_v49 = vadd.f32 %v4000_v46, %v6645_v20 }
 0xad8   : > { %v3996_v38 = vpop.f32.mrf.mxu1 }
 0xad9   : > { %5391 = vtanh.f32 %v4002_v49  ;;  %v4929_v40 = vmul.f32 -1.442695, %v4002_v49 }
 0xada   : > { %v5183_v59 = vpop.f32.mrf.mxu1 }
 0xade   : > { %v4153_v62 = vpop.f32.mrf.mxu1 }
 0xadf   : > { %v4159_v25 = vadd.f32 %v4153_v62, %v6651_v48 }
 0xae0   : > { %v5198_v16 = vpop.f32.mrf.mxu1 }
 0xae1   : > { %5393 = vtanh.f32 %v4159_v25  ;;  %v4934_v55 = vmul.f32 -1.442695, %v4159_v25  ;;  %v4216_v25 = vld [vmem:[%s6839_s15] sm:$0x3] }
 0xae2   : > { %v4156_v60 = vpop.f32.mrf.mxu1  ;;  %5395 = vpow2.f32 %v4929_v40  ;;  %v4221_v16 = vrot.slane %v4216_v25, %v3736_v31 }
 0xae3   : > { %5397 = vpow2.f32 %v4934_v55 }
 0xae4   : > { %v5199_v57 = vpop.f32.mrf.mxu1 }
 0xae6   : > { %v5392_v12 = vpop.eup %5391 }
 0xae7   : > { %4015 = vrot.lane.b32.xlu0 %v5392_v12, %s5450_s2 }
 0xaee   : > { %v5394_v3 = vpop.eup %5393 }
 0xaef   : > { %4172 = vrot.lane.b32.xlu1 %v5394_v3, %s5450_s2  ;;  %v5396_v20 = vpop.eup %5395 }
 0xaf0   : > { %v4006_v13 = vadd.f32 1.0, %v5396_v20  ;;  %v5398_v44 = vpop.eup %5397 }
 0xaf1   : > { %v4163_v22 = vadd.f32 1.0, %v5398_v44 }
 0xaf2   : > { %5399 = vrcp.f32 %v4006_v13 }
 0xaf3   : > { %5401 = vrcp.f32 %v4163_v22 }
 0xaff   : > { %v5400_v43 = vpop.eup %5399 }
 0xb00   : > { %v5402_v23 = vpop.eup %5401  ;;  %v4013_v47 = vmul.f32 %v5400_v43, %v4011_v6 }
 0xb01   : > { %v4170_v53 = vmul.f32 %v5402_v23, %v4168_v42 }
 0xb59   : > { %v4016_v19 = vpop.permute.xlu0 %4015 }
 0xb5a   : > { %v4018_v48 = vmul.f32 %v5400_v43, %v4016_v19 }
 0xb5c   : > { %4020 = vrot.lane.b32.xlu0 %v4018_v48, %s5447_s25 }
 0xb61   : > { %v4173_v41 = vpop.permute.xlu1 %4172 }
 0xb62   : > { %v4175_v30 = vmul.f32 %v5402_v23, %v4173_v41 }
 0xb64   : > { %4177 = vrot.lane.b32.xlu1 %v4175_v30, %s5447_s25  ;;  %v4225_v30 = vrot.slane %v4216_v25, %v3740_v61 }
 0xbce   : > { %v4021_v39 = vpop.permute.xlu0 %4020 }
 0xbcf   : > { %v4023_v36 = vadd.f32 %v4021_v39, %v4013_v47 }
 0xbd1   : > { %5403 = vtanh.f32 %v4023_v36 }
 0xbd6   : > { %v4178_v58 = vpop.permute.xlu1 %4177 }
 0xbd7   : > { %v4180_v63 = vadd.f32 %v4178_v58, %v4170_v53 }
 0xbd9   : > { %5405 = vtanh.f32 %v4180_v63 }
 0xbde   : > { %v5404_v28 = vpop.eup %5403 }
 0xbdf   : > { %4026 = vrot.lane.b32.xlu0 %v5404_v28, %s5450_s2 }
 0xbe6   : > { %v5406_v27 = vpop.eup %5405 }
 0xbe7   : > { %4183 = vrot.lane.b32.xlu1 %v5406_v27, %s5450_s2 }
 0xc51   : > { %v4027_v21 = vpop.permute.xlu0 %4026 }
 0xc52   : > { %v4029_v8 = vmul.f32 %v5400_v43, %v4027_v21 }
 0xc54   : > { %v5270_v1 = vpack.i.bf16 %v4029_v8, %v6666_v18 }
 0xc56   : > { %5271 = vrot.lane.b32.xlu0 %v5270_v1, %s5447_s25 }
 0xc59   : > { %v4184_v11 = vpop.permute.xlu1 %4183 }
 0xc5a   : > { %v4186_v9 = vmul.f32 %v5402_v23, %v4184_v11 }
 0xc5c   : > { %v5275_v2 = vpack.i.bf16 %v6671_v29, %v4186_v9  ;;  %v4362_v29 = vpop.f32.mrf.mxu1 }
 0xc5e   : > { %5276 = vrot.lane.b32.xlu1 %v5275_v2, %s5450_s2  ;;  %v5206_v38 = vpop.f32.mrf.mxu1 }
 0xc60   : > { %v4365_v59 = vpop.f32.mrf.mxu1 }
 0xc62   : > { %v5207_v62 = vpop.f32.mrf.mxu1 }
 0xcc8   : > { %v5272_v18 = vpop.permute.xlu0 %5271 }
 0xcc9   : > { %v5274_v0 = vunpack.i.h.bf16 %v5272_v18  ;;  %v5273_v35 = vunpack.i.l.bf16 %v5272_v18 }
 0xcd0   : > { %v5277_v17 = vpop.permute.xlu1 %5276 }
 0xcd1   : > { %v5279_v26 = vunpack.i.h.bf16 %v5277_v17  ;;  %v5278_v56 = vunpack.i.l.bf16 %v5277_v17  ;;  %v5364_v17 = vld [vmem:[%s6840_s16 + $0x18] sm:$0xff]  }
 0xcd3   : > { %v4205_v54 = vsel %vm3251_vm5, %v5274_v0, %v5279_v26  ;;  %v4195_v51 = vsel %vm3251_vm5, %v5273_v35, %v5278_v56 }
 0xcd4   : > { %v4206_v46 = vpack.c.bf16 %v4205_v54, %v4205_v54  ;;  %v4196_v37 = vpack.c.bf16 %v4195_v51, %v4195_v51  ;;  %v5365_v54 = vld [vmem:[%s6840_s16 + $0x10] sm:$0xff]  }
 0xcd6   : > { %v4207_v49 = vsel %vm6933_vm6, %v4196_v37, %v4206_v46  ;;  %v5366_v46 = vld [vmem:[%s6840_s16 + $0x8] sm:$0xff]  }
 0xcd7   : > { %4943 = vmatmul.mubr.msk.bf16.vlgmr.msra.gmra.mxu0 %vm3308_vm11, %v4207_v49  ;;  %v5367_v49 = vld [vmem:[%s6840_s16] sm:$0xff]  }
 0xcd8   : > { %5220 = vmatprep.mubr.msk.bf16.mxu0 %vm5444_vm4, %v5448_v7  ;;  %5217 = vmatpush3.bf16.msra.mxu0 %v5364_v17 }
 0xcd9   : > { %5218 = vmatprep.subr.bf16.mxu0 %v5448_v7 }
 0xcdc   : > { %5219 = vmatpush3.bf16.msra.mxu0 %v5365_v54 }
 0xcdd   : > { %5232 = vmatprep.subr.bf16.mxu0 %v5448_v7 }
 0xd97   : > { %v4305_v60 = vpop.f32.mrf.mxu0 }
 0xd98   : > { %v4306_v57 = vadd.f32 %v4305_v60, %v4221_v16 }
 0xd99   : > { %v4307_v32 = vpop.f32.mrf.mxu0 }
 0xd9a   : > { %v4368_v12 = vadd.f32 %v4362_v29, %v4306_v57  ;;  %v4308_v6 = vadd.f32 %v4307_v32, %v4225_v30  ;;  %v5368_v32 = vld [vmem:[%s6842_s18 + $0x30] ss:$0 sps:$4 sm:$0x33]  }
 0xd9b   : > { %v4309_v3 = vpop.f32.mrf.mxu0 }
 0xd9c   : > { %5407 = vtanh.f32 %v4368_v12  ;;  %v4946_v20 = vmul.f32 -1.442695, %v4368_v12  ;;  %v4949_v53 = vmul.f32 -1.442695, %v4308_v6  ;;  %v4687_v12 = vsel %vm3494_vm7, %v5368_v32, 0  ;;  %v5369_v3 = vld [vmem:[%s6842_s18 + $0x28] sm:$0xff]  }
 0xd9d   : > { %v4310_v40 = vpop.f32.mrf.mxu0 }
 0xd9e   : > { %5409 = vpow2.f32 %v4946_v20  ;;  %v5370_v40 = vld [vmem:[%s6842_s18 + $0x20] sm:$0xff]   ;;  %v5372_v20 = vld [vmem:[%s6842_s18 + $0x10] sm:$0xff]  }
 0xda9   : > { %v5408_v55 = vpop.eup %5407 }
 0xdaa   : > { %4378 = vrot.lane.b32.xlu0 %v5408_v55, %s5450_s2  ;;  %v5371_v55 = vld [vmem:[%s6842_s18 + $0x18] sm:$0xff]  }
 0xdab   : > { %v5410_v13 = vpop.eup %5409 }
 0xdac   : > { %v4372_v44 = vadd.f32 1.0, %v5410_v13 }
 0xdae   : > { %5411 = vrcp.f32 %v4372_v44  ;;  %v5373_v44 = vld [vmem:[%s6842_s18 + $0x8] sm:$0xff]  }
 0xdbb   : > { %v5412_v22 = vpop.eup %5411 }
 0xdbc   : > { %v4376_v31 = vmul.f32 0.0, %v5412_v22 }
 0xe1c   : > { %v4379_v43 = vpop.permute.xlu0 %4378 }
 0xe1d   : > { %v4381_v19 = vmul.f32 %v5412_v22, %v4379_v43 }
 0xe1f   : > { %4383 = vrot.lane.b32.xlu1 %v4381_v19, %s5447_s25 }
 0xe91   : > { %v4384_v48 = vpop.permute.xlu1 %4383 }
 0xe92   : > { %v4386_v23 = vadd.f32 %v4384_v48, %v4376_v31 }
 0xe94   : > { %5413 = vtanh.f32 %v4386_v23  ;;  %v4452_v0 = vrot.slane %v4386_v23, 7 }
 0xe95   : > { %5415 = vtanh.f32 %v4308_v6 }
 0xe96   : > { %5417 = vpow2.f32 %v4949_v53  ;;  %v4642_v53 = vld [vmem:[#allocation2] sm:$0x1] }
 0xea1   : > { %v5414_v41 = vpop.eup %5413 }
 0xea2   : > { %4389 = vrot.lane.b32.xlu0 %v5414_v41, %s5450_s2  ;;  %v5416_v42 = vpop.eup %5415  ;;  %v4625_v41 = vld [vmem:[%s6841_s17] sm:$0x1] }
 0xea3   : > { %v5418_v58 = vpop.eup %5417 }
 0xea4   : > { %v4474_v63 = vadd.f32 1.0, %v5418_v58 }
 0xea6   : > { %5419 = vrcp.f32 %v4474_v63 }
 0xeb3   : > { %v5420_v4 = vpop.eup %5419 }
 0xeb4   : > { %v4478_v14 = vmul.f32 0.0, %v5420_v4 }
 0xf14   : > { %v4390_v47 = vpop.permute.xlu0 %4389 }
 0xf15   : > { %v4392_v39 = vmul.f32 %v5412_v22, %v4390_v47  ;;  %v5374_v22 = vld [vmem:[%s6842_s18] sm:$0xff]  }
 0xf17   : > { %v4393_v36 = vpack.c.bf16 %v4392_v39, %v4392_v39 }
 0xf19   : > { %4395 = vrot.lane.b32.xlu1 %v4393_v36, %s5447_s25 }
 0xf1d   : > { %4480 = vrot.lane.b32.xlu1 %v5416_v42, %s5450_s2 }
 0xf8b   : > { %v4396_v28 = vpop.permute.xlu1 %4395 }
 0xf8c   : > { %5213 = vmatmul.mubr.msk.bf16.vlgmr.msra.gmra.mxu1 %vm3251_vm5, %v4396_v28 }
 0xf8d   : > { %5228 = vmatprep.mubr.msk.bf16.mxu1 %vm5444_vm4, %v5448_v7  ;;  %5225 = vmatpush3.bf16.msra.mxu1 %v5366_v46 }
 0xf8e   : > { %5226 = vmatprep.subr.bf16.mxu1 %v5448_v7 }
 0xf8f   : > { %v4481_v61 = vpop.permute.xlu1 %4480 }
 0xf90   : > { %v4483_v50 = vmul.f32 %v5420_v4, %v4481_v61 }
 0xf91   : > { %5227 = vmatpush3.bf16.msra.mxu1 %v5367_v49 }
 0xf92   : > { %4485 = vrot.lane.b32.xlu1 %v4483_v50, %s5447_s25 }
0x1004   : > { %v4486_v27 = vpop.permute.xlu1 %4485 }
0x1005   : > { %v4488_v52 = vadd.f32 %v4486_v27, %v4478_v14 }
0x1007   : > { %5421 = vtanh.f32 %v4488_v52 }
0x1014   : > { %v5422_v24 = vpop.eup %5421 }
0x1015   : > { %4491 = vrot.lane.b32.xlu1 %v5422_v24, %s5450_s2 }
0x104c   : > { %v4434_v15 = vpop.f32.mrf.mxu1 }
0x104d   : > { %v4441_v34 = vrot.slane %v4434_v15, 7 }
0x104e   : > { %v5214_v10 = vpop.f32.mrf.mxu1 }
0x104f   : > { %v4443_v33 = vadd.f32 %v4441_v34, %v4306_v57 }
0x1050   : > { %v4437_v21 = vpop.f32.mrf.mxu1 }
0x1051   : > { %5423 = vtanh.f32 %v4443_v33  ;;  %v4948_v45 = vmul.f32 -1.442695, %v4443_v33 }
0x1052   : > { %v5215_v5 = vpop.f32.mrf.mxu1 }
0x1053   : > { %5425 = vpow2.f32 %v4948_v45 }
0x105e   : > { %v5424_v8 = vpop.eup %5423 }
0x105f   : > { %4456 = vrot.lane.b32.xlu0 %v5424_v8, %s5450_s2 }
0x1060   : > { %v5426_v1 = vpop.eup %5425 }
0x1061   : > { %v4447_v11 = vadd.f32 1.0, %v5426_v1 }
0x1063   : > { %5427 = vrcp.f32 %v4447_v11 }
0x1070   : > { %v5428_v9 = vpop.eup %5427 }
0x1071   : > { %v4454_v35 = vmul.f32 %v5428_v9, %v4452_v0 }
0x1087   : > { %v4492_v51 = vpop.permute.xlu1 %4491 }
0x1088   : > { %v4494_v37 = vmul.f32 %v5420_v4, %v4492_v51 }
0x108a   : > { %v4504_v29 = vpack.c.bf16 %v4494_v37, %v4494_v37 }
0x108c   : > { %v4506_v59 = vshrl.u32 %v4504_v29, 16 }
0x10d1   : > { %v4457_v2 = vpop.permute.xlu0 %4456 }
0x10d2   : > { %v4459_v18 = vmul.f32 %v5428_v9, %v4457_v2 }
0x10d4   : > { %4461 = vrot.lane.b32.xlu0 %v4459_v18, %s5447_s25 }
0x1146   : > { %v4462_v26 = vpop.permute.xlu0 %4461 }
0x1147   : > { %v4464_v56 = vadd.f32 %v4462_v26, %v4454_v35 }
0x1149   : > { %5429 = vtanh.f32 %v4464_v56 }
0x1156   : > { %v5430_v38 = vpop.eup %5429 }
0x1157   : > { %4467 = vrot.lane.b32.xlu0 %v5430_v38, %s5450_s2 }
0x115b   : > { %4508 = vrot.lane.b32.xlu0 %v4506_v59, %s5447_s25 }
0x11c9   : > { %v4468_v62 = vpop.permute.xlu0 %4467 }
0x11ca   : > { %v4470_v25 = vmul.f32 %v5428_v9, %v4468_v62 }
0x11cc   : > { %v4503_v16 = vpack.c.bf16 %v4470_v25, %v4470_v25 }
0x11cd   : > { %v4509_v60 = vpop.permute.xlu0 %4508 }
0x11ce   : > { %v4566_v57 = vshrl.u32 %v4503_v16, 16  ;;  %5221 = vmatmul.mubr.msk.bf16.vlgmr.msra.gmra.mxu0 %vm3251_vm5, %v4509_v60 }
0x11cf   : > { %5246 = vmatprep.mubr.msk.bf16.mxu0 %vm5444_vm4, %v5448_v7  ;;  %5233 = vmatpush3.bf16.msra.mxu0 %v4687_v12  ;;  %vm4729_vm4 = vcmask 0  }
0x11d0   : > { %4568 = vrot.lane.b32.xlu1 %v4566_v57, %s5447_s25  ;;  %5234 = vmatprep.subr.bf16.mxu0 %v5448_v7  ;;  %s627_s25 = scalar_lea.vmem %s6844_s20, %s6954_s24 }
0x11d3   : > { %5235 = vmatpush3.bf16.msra.mxu0 %v5369_v3 }
0x11d4   : > { %5236 = vmatprep.subr.bf16.mxu0 %v5448_v7 }
0x11d7   : > { %5237 = vmatpush3.bf16.msra.mxu0 %v5370_v40 }
0x11d8   : > { %5238 = vmatprep.subr.bf16.mxu0 %v5448_v7 }
0x11db   : > { %5239 = vmatpush3.bf16.msra.mxu0 %v5371_v55 }
0x11dc   : > { %5240 = vmatprep.subr.bf16.mxu0 %v5448_v7 }
0x11df   : > { %5241 = vmatpush3.bf16.msra.mxu0 %v5372_v20 }
0x11e0   : > { %5242 = vmatprep.subr.bf16.mxu0 %v5448_v7 }
0x11e3   : > { %5243 = vmatpush3.bf16.msra.mxu0 %v5373_v44 }
0x11e4   : > { %5244 = vmatprep.subr.bf16.mxu0 %v5448_v7 }
0x11e7   : > { %5245 = vmatpush3.bf16.msra.mxu0 %v5374_v22 }
0x1242   : > { %v4569_v13 = vpop.permute.xlu1 %4568 }
0x1243   : > { %5229 = vmatmul.mubr.msk.bf16.vlgmr.msra.gmra.mxu1 %vm3251_vm5, %v4569_v13 }
0x128e   : > { %v4559_v43 = vpop.f32.mrf.mxu0 }
0x1290   : > { %v5222_v19 = vpop.f32.mrf.mxu0 }
0x1292   : > { %v4562_v31 = vpop.f32.mrf.mxu0 }
0x1294   : > { %v5223_v48 = vpop.f32.mrf.mxu0 }
0x1303   : > { %v4619_v23 = vpop.f32.mrf.mxu1 }
0x1304   : > { %v4620_v30 = vadd.f32 %v4619_v23, %v4559_v43 }
0x1305   : > { %v5230_v6 = vpop.f32.mrf.mxu1 }
0x1306   : > { %v4626_v47 = vadd.f32 %v4625_v41, %v4620_v30 }
0x1307   : > { %v4622_v39 = vpop.f32.mrf.mxu1 }
0x1308   : > { %v4627_v7 = vmax.f32 %v4626_v47, 0.0 }
0x1309   : > { %v5231_v36 = vpop.f32.mrf.mxu1 }
0x130a   : > { %v4628_v42 = vpack.c.bf16 %v4627_v7, %v4627_v7 }
0x130c   : > { %5247 = vmatmul.mubr.msk.bf16.vlgmr.msra.gmra.mxu0 %vm4682_vm8, %v4628_v42 }
0x13cc   : > { %v4723_v58 = vpop.f32.mrf.mxu0 }
0x13cd   : > { %v4724_v63 = vadd.f32 %v4723_v58, %v4642_v53 }
0x13ce   : > { %v5248_v28 = vpop.f32.mrf.mxu0 }
0x13cf   : > { %4730 = vst.msk [vmem:[%s627_s25] sm:$0x1] %vm4729_vm4, %v4724_v63 }
0x13d0   : > { %v4726_v4 = vpop.f32.mrf.mxu0 }
0x13d2   : > { %v5249_v61 = vpop.f32.mrf.mxu0 }
0x13d3 PF: > { %s32_s23 = sadd.s32 1, %s5437_s23  }
0x13d4   : > { %p29_p4 = scmp.ge.s32.totalorder %s32_s23, 4  }
0x13d6   :  { %31 = sbr.rel (!%p29_p4) target bundleno = 6 (0x6), region = 130 }

</bundles_post_ra>
